<compile_context>
chip_gen: v7x
topology: tpu7x:2x2x1
jax: 0.10.0
libtpu: 0.0.40
codegen_flags: <defaults>
</compile_context>

<pallas_src>
import math
import functools

import numpy as np
import jax
import jax.numpy as jnp
from jax import lax
from jax.experimental import pallas as pl
from jax.experimental.pallas import tpu as pltpu

# ----------------------- model hyper-parameters (small) -----------------------
VOCAB = 33          # ESM-1b alphabet size
PAD_IDX = 1
MASK_IDX = 32
CLS_IDX = 0
EOS_IDX = 2

NUM_LAYERS = 2
EMBED_DIM = 32
NUM_HEADS = 4
HEAD_DIM = EMBED_DIM // NUM_HEADS
FFN_DIM = 4 * EMBED_DIM
TASK_DIM = 16               # adapter task embedding dim (train_task_embeddings=False)
REDUCTION = 4
DOWN_DIM = EMBED_DIM // REDUCTION
LN_EPS = 1e-5               # ESM1bLayerNorm == nn.LayerNorm default eps

B, T = 2, 8

_SQRT1_2 = 1.0 / math.sqrt(2.0)
_NEG_BIG = -1e9             # finite "-inf" for key-padding bias (exp underflows to 0)

# per-layer chunk layout of the fused hyper-net output:
#   [ up_w (E*D) | up_b (E) | down_w (D*E) | down_b (D) ]
_ADAPTER_CHUNK = EMBED_DIM * DOWN_DIM + EMBED_DIM + DOWN_DIM * EMBED_DIM + DOWN_DIM


# ------------------------------- Pallas kernels --------------------------------
def _erf_f32(z):
    # Exact torch.erf has no guaranteed Mosaic lowering; use the Abramowitz &
    # Stegun 7.1.26 polynomial (|abs err| <= 1.5e-7, i.e. fp32-level).
    # TODO(synk): switch to lax.erf if/when Mosaic grows an erf lowering rule.
    a1, a2, a3, a4, a5 = 0.254829592, -0.284496736, 1.421413741, -1.453152027, 1.061405429
    p = 0.3275911
    az = jnp.abs(z)
    t = 1.0 / (1.0 + p * az)
    poly = ((((a5 * t + a4) * t + a3) * t + a2) * t + a1) * t
    y = 1.0 - poly * jnp.exp(-az * az)
    return jnp.where(z < 0, -y, y)


def _gelu_exact(x):
    # ESM gelu: x * 0.5 * (1 + erf(x / sqrt(2)))
    return x * 0.5 * (1.0 + _erf_f32(x * _SQRT1_2))


def _linear_kernel(x_ref, w_ref, b_ref, o_ref):
    o_ref[...] = (jnp.dot(x_ref[...], w_ref[...], preferred_element_type=jnp.float32)
                  + b_ref[...]).astype(o_ref.dtype)


def pallas_linear(x, w_t, b2d):
    """y = x @ w_t + b  (full-array blocks; used once per forward for the hyper-nets)."""
    M, K = x.shape
    _, N = w_t.shape
    return pl.pallas_call(
        _linear_kernel,
        out_shape=jax.ShapeDtypeStruct((M, N), jnp.float32),
        grid=(1,),
        in_specs=[
            pl.BlockSpec((M, K), lambda i: (0, 0)),
            pl.BlockSpec((K, N), lambda i: (0, 0)),
            pl.BlockSpec((1, N), lambda i: (0, 0)),
        ],
        out_specs=pl.BlockSpec((M, N), lambda i: (0, 0)),
    )(x, w_t, b2d)


def _layer_kernel(x_ref, bias_ref, cos_ref, sin_ref, rot_ref,
                  ln1_w_ref, ln1_b_ref, wqkv_ref, bqkv_ref, wo_ref, bo_ref,
                  wdn_ref, bdn_ref, wup_ref, bup_ref,
                  ln2_w_ref, ln2_b_ref, fc1_w_ref, fc1_b_ref, fc2_w_ref, fc2_b_ref,
                  lnf_w_ref, lnf_b_ref, o_ref, *, apply_final_ln):
    """Fused TransformerLayer (one batch element per grid step, rows = tokens)."""
    Tt = x_ref.shape[0]
    E = EMBED_DIM
    Dh = HEAD_DIM

    x0 = x_ref[...].astype(jnp.float32)                       # (T, E)

    def ln(v, w_ref_, b_ref_):
        mu = jnp.mean(v, axis=-1, keepdims=True)
        vc = v - mu
        var = jnp.mean(vc * vc, axis=-1, keepdims=True)
        return vc / jnp.sqrt(var + LN_EPS) * w_ref_[...] + b_ref_[...]

    def adapter(v):
        # MetaAdapterController.call_adapter (relu non-linearity) followed by the
        # controller's own "+ inputs" residual.
        # TODO(synk): get_activation() is not defined in the reference snippet; relu assumed.
        dn = jnp.maximum(
            jnp.dot(v, wdn_ref[...], preferred_element_type=jnp.float32) + bdn_ref[...], 0.0)
        up = jnp.dot(dn, wup_ref[...], preferred_element_type=jnp.float32) + bup_ref[...]
        return up + v

    # ---------------- self-attention block ----------------
    xn = ln(x0, ln1_w_ref, ln1_b_ref)
    qkv = jnp.dot(xn, wqkv_ref[...], preferred_element_type=jnp.float32) + bqkv_ref[...]  # (T, 3E)

    # rotary on the whole q||k slab: x*cos + (x @ rotate_half_perm)*sin
    qk = qkv[:, :2 * E]                                        # (T, 2E)
    v_all = qkv[:, 2 * E:]                                     # (T, E)
    qk = qk * cos_ref[...] + jnp.dot(qk, rot_ref[...],
                                     preferred_element_type=jnp.float32) * sin_ref[...]

    bias = bias_ref[0]                                         # (1, T) additive key mask
    wo = wo_ref[...]                                           # (E, E)

    # per-head attention; accumulate the out-projection head-by-head so the
    # lane-sparse (T, Dh) head outputs never leave vregs.
    attn_out = jnp.zeros((Tt, E), jnp.float32)
    for h in range(NUM_HEADS):
        qh = qk[:, h * Dh:(h + 1) * Dh]                        # (T, Dh)  (already scaled)
        kh = qk[:, E + h * Dh:E + (h + 1) * Dh]                # (T, Dh)
        vh = v_all[:, h * Dh:(h + 1) * Dh]                     # (T, Dh)
        s = lax.dot_general(qh, kh, (((1,), (1,)), ((), ())),
                            preferred_element_type=jnp.float32)  # (T, T) = q @ k.T
        s = s + bias
        s = s - jnp.max(s, axis=-1, keepdims=True)
        p = jnp.exp(s)
        o = jnp.dot(p, vh, preferred_element_type=jnp.float32)  # (T, Dh), unnormalized
        o = o * pl.reciprocal(jnp.sum(p, axis=-1, keepdims=True), approx=True)
        attn_out = attn_out + jnp.dot(o, wo[h * Dh:(h + 1) * Dh, :],
                                      preferred_element_type=jnp.float32)
    attn_out = attn_out + bo_ref[...]

    # TransformerLayer wiring: adapter controller returns adapter(x)+x, and the
    # layer adds adapter_residual (= attn_out) plus the pre-LN residual again.
    x1 = x0 + attn_out + adapter(attn_out)

    # ---------------- feed-forward block ----------------
    xn2 = ln(x1, ln2_w_ref, ln2_b_ref)
    h1 = jnp.dot(xn2, fc1_w_ref[...], preferred_element_type=jnp.float32) + fc1_b_ref[...]
    h1 = _gelu_exact(h1)
    h2 = jnp.dot(h1, fc2_w_ref[...], preferred_element_type=jnp.float32) + fc2_b_ref[...]
    x2 = x1 + h2 + adapter(h2)

    if apply_final_ln:                                         # emb_layer_norm_after fused in
        x2 = ln(x2, lnf_w_ref, lnf_b_ref)

    o_ref[...] = x2.astype(o_ref.dtype)


def fused_layer(x2d, bias3d, cos2, sin2, rot, weights, *, apply_final_ln):
    """x2d: (B*T, E) batch-major rows; bias3d: (B, 1, T); weights: list of 18 2-D arrays."""
    BT, E = x2d.shape
    Bb = bias3d.shape[0]
    Tt = BT // Bb
    const_args = [cos2, sin2, rot] + list(weights)
    in_specs = (
        [pl.BlockSpec((Tt, E), lambda i: (i, 0)),
         pl.BlockSpec((1, 1, bias3d.shape[2]), lambda i: (i, 0, 0))]
        + [pl.BlockSpec(a.shape, lambda i: (0, 0)) for a in const_args]
    )
    return pl.pallas_call(
        functools.partial(_layer_kernel, apply_final_ln=apply_final_ln),
        out_shape=jax.ShapeDtypeStruct((BT, E), jnp.float32),
        grid=(Bb,),
        in_specs=in_specs,
        out_specs=pl.BlockSpec((Tt, E), lambda i: (i, 0)),
        compiler_params=pltpu.CompilerParams(dimension_semantics=("parallel",)),
    )(x2d, bias3d, *const_args)


# ------------------------------ parameter prep ---------------------------------
def prepare_params(params, seq_len):
    """Fold scaling into Wq, concat QKV / hyper-net weights, build rotary tables."""
    E, Dh = EMBED_DIM, HEAD_DIM
    scaling = Dh ** -0.5

    prepared = {
        "embed": params["embed"],
        "task_emb": params["task_emb"].reshape(1, TASK_DIM),
        "lnf_w": params["ln_f_w"].reshape(1, E),
        "lnf_b": params["ln_f_b"].reshape(1, E),
    }

    gen_w_cols, gen_b_cols, layers = [], [], []
    for lp in params["layers"]:
        ap = lp["adapter"]
        gen_w_cols += [ap["up_w_gen_t"], ap["up_b_gen_t"], ap["down_w_gen_t"], ap["down_b_gen_t"]]
        gen_b_cols += [ap["up_w_gen_b"], ap["up_b_gen_b"], ap["down_w_gen_b"], ap["down_b_gen_b"]]
        wqkv_t = jnp.concatenate([lp["wq_t"] * scaling, lp["wk_t"], lp["wv_t"]], axis=1)
        bqkv = jnp.concatenate([lp["bq"] * scaling, lp["bk"], lp["bv"]]).reshape(1, 3 * E)
        layers.append({
            "ln1_w": lp["ln1_w"].reshape(1, E), "ln1_b": lp["ln1_b"].reshape(1, E),
            "wqkv_t": wqkv_t, "bqkv": bqkv,
            "wo_t": lp["wo_t"], "bo": lp["bo"].reshape(1, E),
            "ln2_w": lp["ln2_w"].reshape(1, E), "ln2_b": lp["ln2_b"].reshape(1, E),
            "fc1_t": lp["fc1_t"], "fc1_b": lp["fc1_b"].reshape(1, FFN_DIM),
            "fc2_t": lp["fc2_t"], "fc2_b": lp["fc2_b"].reshape(1, E),
        })
    prepared["layers"] = layers
    prepared["gen_w_all"] = jnp.concatenate(gen_w_cols, axis=1)            # (TASK_DIM, L*552)
    prepared["gen_b_all"] = jnp.concatenate(gen_b_cols).reshape(1, -1)     # (1, L*552)

    # rotary cos/sin tables tiled over all q and k heads: (T, 2E)
    inv_freq = 1.0 / (10000.0 ** (np.arange(0, Dh, 2, dtype=np.float32) / Dh))
    t = np.arange(seq_len, dtype=np.float32)
    freqs = np.einsum("i,j->ij", t, inv_freq)
    emb = np.concatenate([freqs, freqs], axis=-1)                          # (T, Dh)
    reps = 2 * E // Dh
    prepared["cos2"] = jnp.asarray(np.tile(np.cos(emb), (1, reps)), jnp.float32)
    prepared["sin2"] = jnp.asarray(np.tile(np.sin(emb), (1, reps)), jnp.float32)

    # signed permutation implementing per-head rotate_half on the q||k slab:
    # (x @ rot)[j] = -x[j+half] for first half, x[j-half] for second half.
    rot = np.zeros((2 * E, 2 * E), np.float32)
    half = Dh // 2
    for blk in range(reps):
        base = blk * Dh
        for j in range(half):
            rot[base + j + half, base + j] = -1.0
            rot[base + j, base + j + half] = 1.0
    prepared["rot"] = jnp.asarray(rot)
    return prepared


def _split_adapter_weights(gen_row, layer_idx):
    """Slice one layer's generated adapter params out of the fused hyper-net output."""
    E, D = EMBED_DIM, DOWN_DIM
    base = layer_idx * _ADAPTER_CHUNK
    up_w = gen_row[base:base + E * D].reshape(E, D)                        # (E, D)
    b_up = gen_row[base + E * D:base + E * D + E].reshape(1, E)
    down_w = gen_row[base + E * D + E:base + E * D + E + D * E].reshape(D, E)
    b_down = gen_row[base + E * D + E + D * E:base + _ADAPTER_CHUNK].reshape(1, D)
    # F.linear(x, W) == x @ W.T  -> kernel consumes the transposed weights
    return down_w.T, b_down, up_w.T, b_up          # wdn_t (E,D), bdn, wup_t (D,E), bup


# ---------------------------------- forward -------------------------------------
@jax.jit
def esm2_forward(prepared, tokens):
    assert tokens.ndim == 2
    Bb, Tt = tokens.shape
    padding_mask = tokens == PAD_IDX                                       # (B, T)

    # embed_scale = 1; embedding gather kept as XLA glue
    x = prepared["embed"][tokens]                                          # (B, T, E)

    # token_dropout
    mask_tok = tokens == MASK_IDX
    x = jnp.where(mask_tok[..., None], 0.0, x)
    mask_ratio_train = 0.15 * 0.8
    src_lengths = (~padding_mask).sum(-1).astype(x.dtype)
    mask_ratio_observed = mask_tok.sum(-1).astype(x.dtype) / src_lengths
    x = x * (1 - mask_ratio_train) / (1 - mask_ratio_observed)[:, None, None]

    # zero out padding positions
    x = x * (1 - padding_mask[..., None].astype(x.dtype))

    # compact additive key-padding bias (finite large-negative, NaN-safe)
    bias3d = jnp.where(padding_mask, _NEG_BIG, 0.0).astype(jnp.float32)[:, None, :]  # (B,1,T)

    # all adapter hyper-nets for all layers in ONE matmul (activation-independent)
    gen = pallas_linear(prepared["task_emb"], prepared["gen_w_all"], prepared["gen_b_all"])[0]

    x2d = x.reshape(Bb * Tt, EMBED_DIM).astype(jnp.float32)                # batch-major rows
    n_layers = len(prepared["layers"])
    for l, lw in enumerate(prepared["layers"]):
        wdn_t, bdn, wup_t, bup = _split_adapter_weights(gen, l)
        weights = [lw["ln1_w"], lw["ln1_b"], lw["wqkv_t"], lw["bqkv"], lw["wo_t"], lw["bo"],
                   wdn_t, bdn, wup_t, bup,
                   lw["ln2_w"], lw["ln2_b"], lw["fc1_t"], lw["fc1_b"], lw["fc2_t"], lw["fc2_b"],
                   prepared["lnf_w"], prepared["lnf_b"]]
        x2d = fused_layer(x2d, bias3d, prepared["cos2"], prepared["sin2"], prepared["rot"],
                          weights, apply_final_ln=(l == n_layers - 1))

    x = x2d.reshape(Bb, Tt, EMBED_DIM)
    # TODO(synk): ContactPredictionHead / attention-weight outputs only exist when
    # need_head_weights/return_contacts=True; default path does not build them.
    return {"embedding": x, "representations": {}}


# ------------------------------ parameter init ---------------------------------
def init_params(key):
    keys = iter(jax.random.split(key, 128))

    def nrm(shape, std=0.02):
        return (std * jax.random.normal(next(keys), shape)).astype(jnp.float32)

    params = {}
    emb = nrm((VOCAB, EMBED_DIM))
    emb = emb.at[PAD_IDX].set(0.0)       # nn.Embedding padding_idx row is zero
    params["embed"] = emb
    params["task_emb"] = jax.random.normal(next(keys), (TASK_DIM,)).astype(jnp.float32)

    layers = []
    for _ in range(NUM_LAYERS):
        lp = {
            "ln1_w": jnp.ones((EMBED_DIM,), jnp.float32),
            "ln1_b": jnp.zeros((EMBED_DIM,), jnp.float32),
            "wq_t": nrm((EMBED_DIM, EMBED_DIM)), "bq": nrm((EMBED_DIM,), 0.01),
            "wk_t": nrm((EMBED_DIM, EMBED_DIM)), "bk": nrm((EMBED_DIM,), 0.01),
            "wv_t": nrm((EMBED_DIM, EMBED_DIM)), "bv": nrm((EMBED_DIM,), 0.01),
            "wo_t": nrm((EMBED_DIM, EMBED_DIM)), "bo": nrm((EMBED_DIM,), 0.01),
            "ln2_w": jnp.ones((EMBED_DIM,), jnp.float32),
            "ln2_b": jnp.zeros((EMBED_DIM,), jnp.float32),
            "fc1_t": nrm((EMBED_DIM, FFN_DIM)), "fc1_b": nrm((FFN_DIM,), 0.01),
            "fc2_t": nrm((FFN_DIM, EMBED_DIM)), "fc2_b": nrm((EMBED_DIM,), 0.01),
            # AdapterHyperNet linears: normal(std=0.01) weights, zero biases
            "adapter": {
                "up_w_gen_t": nrm((TASK_DIM, EMBED_DIM * DOWN_DIM), 0.01),
                "up_w_gen_b": jnp.zeros((EMBED_DIM * DOWN_DIM,), jnp.float32),
                "up_b_gen_t": nrm((TASK_DIM, EMBED_DIM), 0.01),
                "up_b_gen_b": jnp.zeros((EMBED_DIM,), jnp.float32),
                "down_w_gen_t": nrm((TASK_DIM, DOWN_DIM * EMBED_DIM), 0.01),
                "down_w_gen_b": jnp.zeros((DOWN_DIM * EMBED_DIM,), jnp.float32),
                "down_b_gen_t": nrm((TASK_DIM, DOWN_DIM), 0.01),
                "down_b_gen_b": jnp.zeros((DOWN_DIM,), jnp.float32),
            },
        }
        layers.append(lp)
    params["layers"] = layers
    params["ln_f_w"] = jnp.ones((EMBED_DIM,), jnp.float32)
    params["ln_f_b"] = jnp.zeros((EMBED_DIM,), jnp.float32)
    return params


# ------------------------------------ main --------------------------------------
if __name__ == "__main__":
    key = jax.random.PRNGKey(0)
    params = init_params(key)
    prepared = prepare_params(params, seq_len=T)

    # deterministic small token batch: <cls>=0, <eos>=2, <pad>=1, <mask>=32, aa tokens 4..23
    tokens = jnp.array(
        [
            [CLS_IDX, 5, 6, MASK_IDX, 7, 8, 9, EOS_IDX],
            [CLS_IDX, 10, MASK_IDX, 11, EOS_IDX, PAD_IDX, PAD_IDX, PAD_IDX],
        ],
        dtype=jnp.int32,
    )

    result = esm2_forward(prepared, tokens)
    emb = jax.block_until_ready(result["embedding"])
    assert emb.shape == (B, T, EMBED_DIM)
    assert bool(jnp.all(jnp.isfinite(emb)))
    print("KERNEL_OK")
</pallas_src>

<mosaic_0001>
module attributes {stable_mosaic.version = 11 : i64} {
  func.func @_linear_kernel(%arg0: i32, %arg1: memref<1x16xf32, #tpu.memory_space<vmem>>, %arg2: memref<16x1104xf32, #tpu.memory_space<vmem>>, %arg3: memref<1x1104xf32, #tpu.memory_space<vmem>>, %arg4: memref<1x1104xf32, #tpu.memory_space<vmem>>) attributes {dimension_semantics = [#tpu.dimension_semantics<arbitrary>], iteration_bounds = array<i64: 1>, scalar_prefetch = 0 : i64, scratch_operands = 0 : i64, tpu.core_type = #tpu.core_type<tc>, window_params = [{pipeline_mode = #tpu.pipeline_mode<synchronous>, transform_indices = @transform_0, window_bounds = array<i64: 1, 16>}, {pipeline_mode = #tpu.pipeline_mode<synchronous>, transform_indices = @transform_1, window_bounds = array<i64: 16, 1104>}, {pipeline_mode = #tpu.pipeline_mode<synchronous>, transform_indices = @transform_2, window_bounds = array<i64: 1, 1104>}, {pipeline_mode = #tpu.pipeline_mode<synchronous>, transform_indices = @transform_3, window_bounds = array<i64: 1, 1104>}]} {
    %c0 = arith.constant 0 : index
    %c0_0 = arith.constant 0 : index
    %0 = vector.load %arg1[%c0, %c0_0] : memref<1x16xf32, #tpu.memory_space<vmem>>, vector<1x16xf32>
    %c0_1 = arith.constant 0 : index
    %c0_2 = arith.constant 0 : index
    %1 = vector.load %arg2[%c0_1, %c0_2] : memref<16x1104xf32, #tpu.memory_space<vmem>>, vector<16x1104xf32>
    %cst = arith.constant dense<0.000000e+00> : vector<1x1104xf32>
    %2 = tpu.matmul %0, %1, %cst {dimension_numbers = #tpu.dot_dimension_numbers<[1], [0], [0], [1], [0, 0, 1, 1], [], []>} : vector<1x16xf32>, vector<16x1104xf32>, vector<1x1104xf32> -> vector<1x1104xf32>
    %c0_3 = arith.constant 0 : index
    %c0_4 = arith.constant 0 : index
    %3 = vector.load %arg3[%c0_3, %c0_4] : memref<1x1104xf32, #tpu.memory_space<vmem>>, vector<1x1104xf32>
    %4 = arith.addf %2, %3 : vector<1x1104xf32>
    %c0_5 = arith.constant 0 : index
    %c0_6 = arith.constant 0 : index
    %5 = vector.load %arg4[%c0_5, %c0_6] : memref<1x1104xf32, #tpu.memory_space<vmem>>, vector<1x1104xf32>
    tpu.vector_store %arg4[%c0_5, %c0_6], %4 {strides = array<i32>} : memref<1x1104xf32, #tpu.memory_space<vmem>>, vector<1x1104xf32>,
    return
  }
  func.func @transform_0(%arg0: i32) -> (i32, i32) {
    %c0_i32 = arith.constant 0 : i32
    %c0_i32_0 = arith.constant 0 : i32
    %c0_i32_1 = arith.constant 0 : i32
    return %c0_i32, %c0_i32_0 : i32, i32
  }
  func.func @transform_1(%arg0: i32) -> (i32, i32) {
    %c0_i32 = arith.constant 0 : i32
    %c0_i32_0 = arith.constant 0 : i32
    %c0_i32_1 = arith.constant 0 : i32
    return %c0_i32, %c0_i32_0 : i32, i32
  }
  func.func @transform_2(%arg0: i32) -> (i32, i32) {
    %c0_i32 = arith.constant 0 : i32
    %c0_i32_0 = arith.constant 0 : i32
    %c0_i32_1 = arith.constant 0 : i32
    return %c0_i32, %c0_i32_0 : i32, i32
  }
  func.func @transform_3(%arg0: i32) -> (i32, i32) {
    %c0_i32 = arith.constant 0 : i32
    %c0_i32_0 = arith.constant 0 : i32
    %c0_i32_1 = arith.constant 0 : i32
    return %c0_i32, %c0_i32_0 : i32, i32
  }
}

module attributes {stable_mosaic.version = 11 : i64} {
  func.func @_layer_kernel(%arg0: i32, %arg1: memref<8x32xf32, #tpu.memory_space<vmem>>, %arg2: memref<1x1x8xf32, #tpu.memory_space<vmem>>, %arg3: memref<8x64xf32, #tpu.memory_space<vmem>>, %arg4: memref<8x64xf32, #tpu.memory_space<vmem>>, %arg5: memref<64x64xf32, #tpu.memory_space<vmem>>, %arg6: memref<1x32xf32, #tpu.memory_space<vmem>>, %arg7: memref<1x32xf32, #tpu.memory_space<vmem>>, %arg8: memref<32x96xf32, #tpu.memory_space<vmem>>, %arg9: memref<1x96xf32, #tpu.memory_space<vmem>>, %arg10: memref<32x32xf32, #tpu.memory_space<vmem>>, %arg11: memref<1x32xf32, #tpu.memory_space<vmem>>, %arg12: memref<32x8xf32, #tpu.memory_space<vmem>>, %arg13: memref<1x8xf32, #tpu.memory_space<vmem>>, %arg14: memref<8x32xf32, #tpu.memory_space<vmem>>, %arg15: memref<1x32xf32, #tpu.memory_space<vmem>>, %arg16: memref<1x32xf32, #tpu.memory_space<vmem>>, %arg17: memref<1x32xf32, #tpu.memory_space<vmem>>, %arg18: memref<32x128xf32, #tpu.memory_space<vmem>>, %arg19: memref<1x128xf32, #tpu.memory_space<vmem>>, %arg20: memref<128x32xf32, #tpu.memory_space<vmem>>, %arg21: memref<1x32xf32, #tpu.memory_space<vmem>>, %arg22: memref<1x32xf32, #tpu.memory_space<vmem>>, %arg23: memref<1x32xf32, #tpu.memory_space<vmem>>, %arg24: memref<8x32xf32, #tpu.memory_space<vmem>>) attributes {dimension_semantics = [#tpu.dimension_semantics<parallel>], iteration_bounds = array<i64: 2>, scalar_prefetch = 0 : i64, scratch_operands = 0 : i64, tpu.core_type = #tpu.core_type<tc>, window_params = [{transform_indices = @transform_0, window_bounds = array<i64: 8, 32>}, {transform_indices = @transform_1, window_bounds = array<i64: 1, 1, 8>}, {pipeline_mode = #tpu.pipeline_mode<synchronous>, transform_indices = @transform_2, window_bounds = array<i64: 8, 64>}, {pipeline_mode = #tpu.pipeline_mode<synchronous>, transform_indices = @transform_3, window_bounds = array<i64: 8, 64>}, {pipeline_mode = #tpu.pipeline_mode<synchronous>, transform_indices = @transform_4, window_bounds = array<i64: 64, 64>}, {pipeline_mode = #tpu.pipeline_mode<synchronous>, transform_indices = @transform_5, window_bounds = array<i64: 1, 32>}, {pipeline_mode = #tpu.pipeline_mode<synchronous>, transform_indices = @transform_6, window_bounds = array<i64: 1, 32>}, {pipeline_mode = #tpu.pipeline_mode<synchronous>, transform_indices = @transform_7, window_bounds = array<i64: 32, 96>}, {pipeline_mode = #tpu.pipeline_mode<synchronous>, transform_indices = @transform_8, window_bounds = array<i64: 1, 96>}, {pipeline_mode = #tpu.pipeline_mode<synchronous>, transform_indices = @transform_9, window_bounds = array<i64: 32, 32>}, {pipeline_mode = #tpu.pipeline_mode<synchronous>, transform_indices = @transform_10, window_bounds = array<i64: 1, 32>}, {pipeline_mode = #tpu.pipeline_mode<synchronous>, transform_indices = @transform_11, window_bounds = array<i64: 32, 8>}, {pipeline_mode = #tpu.pipeline_mode<synchronous>, transform_indices = @transform_12, window_bounds = array<i64: 1, 8>}, {pipeline_mode = #tpu.pipeline_mode<synchronous>, transform_indices = @transform_13, window_bounds = array<i64: 8, 32>}, {pipeline_mode = #tpu.pipeline_mode<synchronous>, transform_indices = @transform_14, window_bounds = array<i64: 1, 32>}, {pipeline_mode = #tpu.pipeline_mode<synchronous>, transform_indices = @transform_15, window_bounds = array<i64: 1, 32>}, {pipeline_mode = #tpu.pipeline_mode<synchronous>, transform_indices = @transform_16, window_bounds = array<i64: 1, 32>}, {pipeline_mode = #tpu.pipeline_mode<synchronous>, transform_indices = @transform_17, window_bounds = array<i64: 32, 128>}, {pipeline_mode = #tpu.pipeline_mode<synchronous>, transform_indices = @transform_18, window_bounds = array<i64: 1, 128>}, {pipeline_mode = #tpu.pipeline_mode<synchronous>, transform_indices = @transform_19, window_bounds = array<i64: 128, 32>}, {pipeline_mode = #tpu.pipeline_mode<synchronous>, transform_indices = @transform_20, window_bounds = array<i64: 1, 32>}, {pipeline_mode = #tpu.pipeline_mode<synchronous>, transform_indices = @transform_21, window_bounds = array<i64: 1, 32>}, {pipeline_mode = #tpu.pipeline_mode<synchronous>, transform_indices = @transform_22, window_bounds = array<i64: 1, 32>}, {transform_indices = @transform_23, window_bounds = array<i64: 8, 32>}]} {
    %c0 = arith.constant 0 : index
    %c0_0 = arith.constant 0 : index
    %0 = vector.load %arg1[%c0, %c0_0] : memref<8x32xf32, #tpu.memory_space<vmem>>, vector<8x32xf32>
    %cst = arith.constant dense<0.000000e+00> : vector<8xf32>
    %1 = vector.multi_reduction <add>, %0, %cst [1] : vector<8x32xf32> to vector<8xf32>
    %2 = vector.shape_cast %1 : vector<8xf32> to vector<8x1xf32>
    %cst_1 = arith.constant 3.200000e+01 : f32
    %3 = vector.broadcast %cst_1 : f32 to vector<8x1xf32>
    %4 = arith.divf %2, %3 : vector<8x1xf32>
    %5 = vector.broadcast %4 : vector<8x1xf32> to vector<8x32xf32>
    %6 = arith.subf %0, %5 : vector<8x32xf32>
    %7 = arith.mulf %6, %6 : vector<8x32xf32>
    %cst_2 = arith.constant dense<0.000000e+00> : vector<8xf32>
    %8 = vector.multi_reduction <add>, %7, %cst_2 [1] : vector<8x32xf32> to vector<8xf32>
    %9 = vector.shape_cast %8 : vector<8xf32> to vector<8x1xf32>
    %cst_3 = arith.constant 3.200000e+01 : f32
    %10 = vector.broadcast %cst_3 : f32 to vector<8x1xf32>
    %11 = arith.divf %9, %10 : vector<8x1xf32>
    %cst_4 = arith.constant 9.99999974E-6 : f32
    %12 = vector.broadcast %cst_4 : f32 to vector<8x1xf32>
    %13 = arith.addf %11, %12 : vector<8x1xf32>
    %14 = math.sqrt %13 : vector<8x1xf32>
    %15 = vector.broadcast %14 : vector<8x1xf32> to vector<8x32xf32>
    %16 = arith.divf %6, %15 : vector<8x32xf32>
    %c0_5 = arith.constant 0 : index
    %c0_6 = arith.constant 0 : index
    %17 = vector.load %arg6[%c0_5, %c0_6] : memref<1x32xf32, #tpu.memory_space<vmem>>, vector<1x32xf32>
    %18 = vector.broadcast %17 : vector<1x32xf32> to vector<8x32xf32>
    %19 = arith.mulf %16, %18 : vector<8x32xf32>
    %c0_7 = arith.constant 0 : index
    %c0_8 = arith.constant 0 : index
    %20 = vector.load %arg7[%c0_7, %c0_8] : memref<1x32xf32, #tpu.memory_space<vmem>>, vector<1x32xf32>
    %21 = vector.broadcast %20 : vector<1x32xf32> to vector<8x32xf32>
    %22 = arith.addf %19, %21 : vector<8x32xf32>
    %c0_9 = arith.constant 0 : index
    %c0_10 = arith.constant 0 : index
    %23 = vector.load %arg8[%c0_9, %c0_10] : memref<32x96xf32, #tpu.memory_space<vmem>>, vector<32x96xf32>
    %cst_11 = arith.constant dense<0.000000e+00> : vector<8x96xf32>
    %24 = tpu.matmul %22, %23, %cst_11 {dimension_numbers = #tpu.dot_dimension_numbers<[1], [0], [0], [1], [0, 0, 1, 1], [], []>} : vector<8x32xf32>, vector<32x96xf32>, vector<8x96xf32> -> vector<8x96xf32>
    %c0_12 = arith.constant 0 : index
    %c0_13 = arith.constant 0 : index
    %25 = vector.load %arg9[%c0_12, %c0_13] : memref<1x96xf32, #tpu.memory_space<vmem>>, vector<1x96xf32>
    %26 = vector.broadcast %25 : vector<1x96xf32> to vector<8x96xf32>
    %27 = arith.addf %24, %26 : vector<8x96xf32>
    %28 = vector.extract_strided_slice %27 {offsets = [0, 0], sizes = [8, 64], strides = [1, 1]} : vector<8x96xf32> to vector<8x64xf32>
    %29 = vector.extract_strided_slice %27 {offsets = [0, 64], sizes = [8, 32], strides = [1, 1]} : vector<8x96xf32> to vector<8x32xf32>
    %c0_14 = arith.constant 0 : index
    %c0_15 = arith.constant 0 : index
    %30 = vector.load %arg3[%c0_14, %c0_15] : memref<8x64xf32, #tpu.memory_space<vmem>>, vector<8x64xf32>
    %31 = arith.mulf %28, %30 : vector<8x64xf32>
    %c0_16 = arith.constant 0 : index
    %c0_17 = arith.constant 0 : index
    %32 = vector.load %arg5[%c0_16, %c0_17] : memref<64x64xf32, #tpu.memory_space<vmem>>, vector<64x64xf32>
    %cst_18 = arith.constant dense<0.000000e+00> : vector<8x64xf32>
    %33 = tpu.matmul %28, %32, %cst_18 {dimension_numbers = #tpu.dot_dimension_numbers<[1], [0], [0], [1], [0, 0, 1, 1], [], []>} : vector<8x64xf32>, vector<64x64xf32>, vector<8x64xf32> -> vector<8x64xf32>
    %c0_19 = arith.constant 0 : index
    %c0_20 = arith.constant 0 : index
    %34 = vector.load %arg4[%c0_19, %c0_20] : memref<8x64xf32, #tpu.memory_space<vmem>>, vector<8x64xf32>
    %35 = arith.mulf %33, %34 : vector<8x64xf32>
    %36 = arith.addf %31, %35 : vector<8x64xf32>
    %c0_21 = arith.constant 0 : index
    %c0_22 = arith.constant 0 : index
    %c0_23 = arith.constant 0 : index
    %37 = vector.load %arg2[%c0_21, %c0_22, %c0_23] : memref<1x1x8xf32, #tpu.memory_space<vmem>>, vector<1x1x8xf32>
    %38 = vector.shape_cast %37 : vector<1x1x8xf32> to vector<1x8xf32>
    %c0_24 = arith.constant 0 : index
    %c0_25 = arith.constant 0 : index
    %39 = vector.load %arg10[%c0_24, %c0_25] : memref<32x32xf32, #tpu.memory_space<vmem>>, vector<32x32xf32>
    %cst_26 = arith.constant 0.000000e+00 : f32
    %40 = vector.broadcast %cst_26 : f32 to vector<8x32xf32>
    %41 = vector.extract_strided_slice %36 {offsets = [0, 0], sizes = [8, 8], strides = [1, 1]} : vector<8x64xf32> to vector<8x8xf32>
    %42 = vector.extract_strided_slice %36 {offsets = [0, 32], sizes = [8, 8], strides = [1, 1]} : vector<8x64xf32> to vector<8x8xf32>
    %43 = vector.extract_strided_slice %29 {offsets = [0, 0], sizes = [8, 8], strides = [1, 1]} : vector<8x32xf32> to vector<8x8xf32>
    %cst_27 = arith.constant dense<0.000000e+00> : vector<8x8xf32>
    %44 = tpu.matmul %41, %42, %cst_27 {dimension_numbers = #tpu.dot_dimension_numbers<[1], [1], [0], [0], [0, 0, 1, 0], [], []>} : vector<8x8xf32>, vector<8x8xf32>, vector<8x8xf32> -> vector<8x8xf32>
    %45 = vector.broadcast %38 : vector<1x8xf32> to vector<8x8xf32>
    %46 = arith.addf %44, %45 : vector<8x8xf32>
    %cst_28 = arith.constant dense<0xFF800000> : vector<8xf32>
    %47 = vector.multi_reduction <maximumf>, %46, %cst_28 [1] : vector<8x8xf32> to vector<8xf32>
    %48 = vector.shape_cast %47 : vector<8xf32> to vector<8x1xf32>
    %49 = vector.broadcast %48 : vector<8x1xf32> to vector<8x8xf32>
    %50 = arith.subf %46, %49 : vector<8x8xf32>
    %51 = math.exp %50 : vector<8x8xf32>
    %cst_29 = arith.constant dense<0.000000e+00> : vector<8x8xf32>
    %52 = tpu.matmul %51, %43, %cst_29 {dimension_numbers = #tpu.dot_dimension_numbers<[1], [0], [0], [1], [0, 0, 1, 1], [], []>} : vector<8x8xf32>, vector<8x8xf32>, vector<8x8xf32> -> vector<8x8xf32>
    %cst_30 = arith.constant dense<0.000000e+00> : vector<8xf32>
    %53 = vector.multi_reduction <add>, %51, %cst_30 [1] : vector<8x8xf32> to vector<8xf32>
    %54 = vector.shape_cast %53 : vector<8xf32> to vector<8x1xf32>
    %55 = tpu.reciprocal %54 {approx = true} : vector<8x1xf32> -> vector<8x1xf32>
    %56 = vector.broadcast %55 : vector<8x1xf32> to vector<8x8xf32>
    %57 = arith.mulf %52, %56 : vector<8x8xf32>
    %58 = vector.extract_strided_slice %39 {offsets = [0, 0], sizes = [8, 32], strides = [1, 1]} : vector<32x32xf32> to vector<8x32xf32>
    %cst_31 = arith.constant dense<0.000000e+00> : vector<8x32xf32>
    %59 = tpu.matmul %57, %58, %cst_31 {dimension_numbers = #tpu.dot_dimension_numbers<[1], [0], [0], [1], [0, 0, 1, 1], [], []>} : vector<8x8xf32>, vector<8x32xf32>, vector<8x32xf32> -> vector<8x32xf32>
    %60 = arith.addf %40, %59 : vector<8x32xf32>
    %61 = vector.extract_strided_slice %36 {offsets = [0, 8], sizes = [8, 8], strides = [1, 1]} : vector<8x64xf32> to vector<8x8xf32>
    %62 = vector.extract_strided_slice %36 {offsets = [0, 40], sizes = [8, 8], strides = [1, 1]} : vector<8x64xf32> to vector<8x8xf32>
    %63 = vector.extract_strided_slice %29 {offsets = [0, 8], sizes = [8, 8], strides = [1, 1]} : vector<8x32xf32> to vector<8x8xf32>
    %cst_32 = arith.constant dense<0.000000e+00> : vector<8x8xf32>
    %64 = tpu.matmul %61, %62, %cst_32 {dimension_numbers = #tpu.dot_dimension_numbers<[1], [1], [0], [0], [0, 0, 1, 0], [], []>} : vector<8x8xf32>, vector<8x8xf32>, vector<8x8xf32> -> vector<8x8xf32>
    %65 = vector.broadcast %38 : vector<1x8xf32> to vector<8x8xf32>
    %66 = arith.addf %64, %65 : vector<8x8xf32>
    %cst_33 = arith.constant dense<0xFF800000> : vector<8xf32>
    %67 = vector.multi_reduction <maximumf>, %66, %cst_33 [1] : vector<8x8xf32> to vector<8xf32>
    %68 = vector.shape_cast %67 : vector<8xf32> to vector<8x1xf32>
    %69 = vector.broadcast %68 : vector<8x1xf32> to vector<8x8xf32>
    %70 = arith.subf %66, %69 : vector<8x8xf32>
    %71 = math.exp %70 : vector<8x8xf32>
    %cst_34 = arith.constant dense<0.000000e+00> : vector<8x8xf32>
    %72 = tpu.matmul %71, %63, %cst_34 {dimension_numbers = #tpu.dot_dimension_numbers<[1], [0], [0], [1], [0, 0, 1, 1], [], []>} : vector<8x8xf32>, vector<8x8xf32>, vector<8x8xf32> -> vector<8x8xf32>
    %cst_35 = arith.constant dense<0.000000e+00> : vector<8xf32>
    %73 = vector.multi_reduction <add>, %71, %cst_35 [1] : vector<8x8xf32> to vector<8xf32>
    %74 = vector.shape_cast %73 : vector<8xf32> to vector<8x1xf32>
    %75 = tpu.reciprocal %74 {approx = true} : vector<8x1xf32> -> vector<8x1xf32>
    %76 = vector.broadcast %75 : vector<8x1xf32> to vector<8x8xf32>
    %77 = arith.mulf %72, %76 : vector<8x8xf32>
    %78 = vector.extract_strided_slice %39 {offsets = [8, 0], sizes = [8, 32], strides = [1, 1]} : vector<32x32xf32> to vector<8x32xf32>
    %cst_36 = arith.constant dense<0.000000e+00> : vector<8x32xf32>
    %79 = tpu.matmul %77, %78, %cst_36 {dimension_numbers = #tpu.dot_dimension_numbers<[1], [0], [0], [1], [0, 0, 1, 1], [], []>} : vector<8x8xf32>, vector<8x32xf32>, vector<8x32xf32> -> vector<8x32xf32>
    %80 = arith.addf %60, %79 : vector<8x32xf32>
    %81 = vector.extract_strided_slice %36 {offsets = [0, 16], sizes = [8, 8], strides = [1, 1]} : vector<8x64xf32> to vector<8x8xf32>
    %82 = vector.extract_strided_slice %36 {offsets = [0, 48], sizes = [8, 8], strides = [1, 1]} : vector<8x64xf32> to vector<8x8xf32>
    %83 = vector.extract_strided_slice %29 {offsets = [0, 16], sizes = [8, 8], strides = [1, 1]} : vector<8x32xf32> to vector<8x8xf32>
    %cst_37 = arith.constant dense<0.000000e+00> : vector<8x8xf32>
    %84 = tpu.matmul %81, %82, %cst_37 {dimension_numbers = #tpu.dot_dimension_numbers<[1], [1], [0], [0], [0, 0, 1, 0], [], []>} : vector<8x8xf32>, vector<8x8xf32>, vector<8x8xf32> -> vector<8x8xf32>
    %85 = vector.broadcast %38 : vector<1x8xf32> to vector<8x8xf32>
    %86 = arith.addf %84, %85 : vector<8x8xf32>
    %cst_38 = arith.constant dense<0xFF800000> : vector<8xf32>
    %87 = vector.multi_reduction <maximumf>, %86, %cst_38 [1] : vector<8x8xf32> to vector<8xf32>
    %88 = vector.shape_cast %87 : vector<8xf32> to vector<8x1xf32>
    %89 = vector.broadcast %88 : vector<8x1xf32> to vector<8x8xf32>
    %90 = arith.subf %86, %89 : vector<8x8xf32>
    %91 = math.exp %90 : vector<8x8xf32>
    %cst_39 = arith.constant dense<0.000000e+00> : vector<8x8xf32>
    %92 = tpu.matmul %91, %83, %cst_39 {dimension_numbers = #tpu.dot_dimension_numbers<[1], [0], [0], [1], [0, 0, 1, 1], [], []>} : vector<8x8xf32>, vector<8x8xf32>, vector<8x8xf32> -> vector<8x8xf32>
    %cst_40 = arith.constant dense<0.000000e+00> : vector<8xf32>
    %93 = vector.multi_reduction <add>, %91, %cst_40 [1] : vector<8x8xf32> to vector<8xf32>
    %94 = vector.shape_cast %93 : vector<8xf32> to vector<8x1xf32>
    %95 = tpu.reciprocal %94 {approx = true} : vector<8x1xf32> -> vector<8x1xf32>
    %96 = vector.broadcast %95 : vector<8x1xf32> to vector<8x8xf32>
    %97 = arith.mulf %92, %96 : vector<8x8xf32>
    %98 = vector.extract_strided_slice %39 {offsets = [16, 0], sizes = [8, 32], strides = [1, 1]} : vector<32x32xf32> to vector<8x32xf32>
    %cst_41 = arith.constant dense<0.000000e+00> : vector<8x32xf32>
    %99 = tpu.matmul %97, %98, %cst_41 {dimension_numbers = #tpu.dot_dimension_numbers<[1], [0], [0], [1], [0, 0, 1, 1], [], []>} : vector<8x8xf32>, vector<8x32xf32>, vector<8x32xf32> -> vector<8x32xf32>
    %100 = arith.addf %80, %99 : vector<8x32xf32>
    %101 = vector.extract_strided_slice %36 {offsets = [0, 24], sizes = [8, 8], strides = [1, 1]} : vector<8x64xf32> to vector<8x8xf32>
    %102 = vector.extract_strided_slice %36 {offsets = [0, 56], sizes = [8, 8], strides = [1, 1]} : vector<8x64xf32> to vector<8x8xf32>
    %103 = vector.extract_strided_slice %29 {offsets = [0, 24], sizes = [8, 8], strides = [1, 1]} : vector<8x32xf32> to vector<8x8xf32>
    %cst_42 = arith.constant dense<0.000000e+00> : vector<8x8xf32>
    %104 = tpu.matmul %101, %102, %cst_42 {dimension_numbers = #tpu.dot_dimension_numbers<[1], [1], [0], [0], [0, 0, 1, 0], [], []>} : vector<8x8xf32>, vector<8x8xf32>, vector<8x8xf32> -> vector<8x8xf32>
    %105 = vector.broadcast %38 : vector<1x8xf32> to vector<8x8xf32>
    %106 = arith.addf %104, %105 : vector<8x8xf32>
    %cst_43 = arith.constant dense<0xFF800000> : vector<8xf32>
    %107 = vector.multi_reduction <maximumf>, %106, %cst_43 [1] : vector<8x8xf32> to vector<8xf32>
    %108 = vector.shape_cast %107 : vector<8xf32> to vector<8x1xf32>
    %109 = vector.broadcast %108 : vector<8x1xf32> to vector<8x8xf32>
    %110 = arith.subf %106, %109 : vector<8x8xf32>
    %111 = math.exp %110 : vector<8x8xf32>
    %cst_44 = arith.constant dense<0.000000e+00> : vector<8x8xf32>
    %112 = tpu.matmul %111, %103, %cst_44 {dimension_numbers = #tpu.dot_dimension_numbers<[1], [0], [0], [1], [0, 0, 1, 1], [], []>} : vector<8x8xf32>, vector<8x8xf32>, vector<8x8xf32> -> vector<8x8xf32>
    %cst_45 = arith.constant dense<0.000000e+00> : vector<8xf32>
    %113 = vector.multi_reduction <add>, %111, %cst_45 [1] : vector<8x8xf32> to vector<8xf32>
    %114 = vector.shape_cast %113 : vector<8xf32> to vector<8x1xf32>
    %115 = tpu.reciprocal %114 {approx = true} : vector<8x1xf32> -> vector<8x1xf32>
    %116 = vector.broadcast %115 : vector<8x1xf32> to vector<8x8xf32>
    %117 = arith.mulf %112, %116 : vector<8x8xf32>
    %118 = vector.extract_strided_slice %39 {offsets = [24, 0], sizes = [8, 32], strides = [1, 1]} : vector<32x32xf32> to vector<8x32xf32>
    %cst_46 = arith.constant dense<0.000000e+00> : vector<8x32xf32>
    %119 = tpu.matmul %117, %118, %cst_46 {dimension_numbers = #tpu.dot_dimension_numbers<[1], [0], [0], [1], [0, 0, 1, 1], [], []>} : vector<8x8xf32>, vector<8x32xf32>, vector<8x32xf32> -> vector<8x32xf32>
    %120 = arith.addf %100, %119 : vector<8x32xf32>
    %c0_47 = arith.constant 0 : index
    %c0_48 = arith.constant 0 : index
    %121 = vector.load %arg11[%c0_47, %c0_48] : memref<1x32xf32, #tpu.memory_space<vmem>>, vector<1x32xf32>
    %122 = vector.broadcast %121 : vector<1x32xf32> to vector<8x32xf32>
    %123 = arith.addf %120, %122 : vector<8x32xf32>
    %124 = arith.addf %0, %123 : vector<8x32xf32>
    %c0_49 = arith.constant 0 : index
    %c0_50 = arith.constant 0 : index
    %125 = vector.load %arg12[%c0_49, %c0_50] : memref<32x8xf32, #tpu.memory_space<vmem>>, vector<32x8xf32>
    %cst_51 = arith.constant dense<0.000000e+00> : vector<8x8xf32>
    %126 = tpu.matmul %123, %125, %cst_51 {dimension_numbers = #tpu.dot_dimension_numbers<[1], [0], [0], [1], [0, 0, 1, 1], [], []>} : vector<8x32xf32>, vector<32x8xf32>, vector<8x8xf32> -> vector<8x8xf32>
    %c0_52 = arith.constant 0 : index
    %c0_53 = arith.constant 0 : index
    %127 = vector.load %arg13[%c0_52, %c0_53] : memref<1x8xf32, #tpu.memory_space<vmem>>, vector<1x8xf32>
    %128 = vector.broadcast %127 : vector<1x8xf32> to vector<8x8xf32>
    %129 = arith.addf %126, %128 : vector<8x8xf32>
    %cst_54 = arith.constant 0.000000e+00 : f32
    %130 = vector.broadcast %cst_54 : f32 to vector<8x8xf32>
    %131 = arith.maximumf %129, %130 : vector<8x8xf32>
    %c0_55 = arith.constant 0 : index
    %c0_56 = arith.constant 0 : index
    %132 = vector.load %arg14[%c0_55, %c0_56] : memref<8x32xf32, #tpu.memory_space<vmem>>, vector<8x32xf32>
    %cst_57 = arith.constant dense<0.000000e+00> : vector<8x32xf32>
    %133 = tpu.matmul %131, %132, %cst_57 {dimension_numbers = #tpu.dot_dimension_numbers<[1], [0], [0], [1], [0, 0, 1, 1], [], []>} : vector<8x8xf32>, vector<8x32xf32>, vector<8x32xf32> -> vector<8x32xf32>
    %c0_58 = arith.constant 0 : index
    %c0_59 = arith.constant 0 : index
    %134 = vector.load %arg15[%c0_58, %c0_59] : memref<1x32xf32, #tpu.memory_space<vmem>>, vector<1x32xf32>
    %135 = vector.broadcast %134 : vector<1x32xf32> to vector<8x32xf32>
    %136 = arith.addf %133, %135 : vector<8x32xf32>
    %137 = arith.addf %136, %123 : vector<8x32xf32>
    %138 = arith.addf %124, %137 : vector<8x32xf32>
    %cst_60 = arith.constant dense<0.000000e+00> : vector<8xf32>
    %139 = vector.multi_reduction <add>, %138, %cst_60 [1] : vector<8x32xf32> to vector<8xf32>
    %140 = vector.shape_cast %139 : vector<8xf32> to vector<8x1xf32>
    %cst_61 = arith.constant 3.200000e+01 : f32
    %141 = vector.broadcast %cst_61 : f32 to vector<8x1xf32>
    %142 = arith.divf %140, %141 : vector<8x1xf32>
    %143 = vector.broadcast %142 : vector<8x1xf32> to vector<8x32xf32>
    %144 = arith.subf %138, %143 : vector<8x32xf32>
    %145 = arith.mulf %144, %144 : vector<8x32xf32>
    %cst_62 = arith.constant dense<0.000000e+00> : vector<8xf32>
    %146 = vector.multi_reduction <add>, %145, %cst_62 [1] : vector<8x32xf32> to vector<8xf32>
    %147 = vector.shape_cast %146 : vector<8xf32> to vector<8x1xf32>
    %cst_63 = arith.constant 3.200000e+01 : f32
    %148 = vector.broadcast %cst_63 : f32 to vector<8x1xf32>
    %149 = arith.divf %147, %148 : vector<8x1xf32>
    %cst_64 = arith.constant 9.99999974E-6 : f32
    %150 = vector.broadcast %cst_64 : f32 to vector<8x1xf32>
    %151 = arith.addf %149, %150 : vector<8x1xf32>
    %152 = math.sqrt %151 : vector<8x1xf32>
    %153 = vector.broadcast %152 : vector<8x1xf32> to vector<8x32xf32>
    %154 = arith.divf %144, %153 : vector<8x32xf32>
    %c0_65 = arith.constant 0 : index
    %c0_66 = arith.constant 0 : index
    %155 = vector.load %arg16[%c0_65, %c0_66] : memref<1x32xf32, #tpu.memory_space<vmem>>, vector<1x32xf32>
    %156 = vector.broadcast %155 : vector<1x32xf32> to vector<8x32xf32>
    %157 = arith.mulf %154, %156 : vector<8x32xf32>
    %c0_67 = arith.constant 0 : index
    %c0_68 = arith.constant 0 : index
    %158 = vector.load %arg17[%c0_67, %c0_68] : memref<1x32xf32, #tpu.memory_space<vmem>>, vector<1x32xf32>
    %159 = vector.broadcast %158 : vector<1x32xf32> to vector<8x32xf32>
    %160 = arith.addf %157, %159 : vector<8x32xf32>
    %c0_69 = arith.constant 0 : index
    %c0_70 = arith.constant 0 : index
    %161 = vector.load %arg18[%c0_69, %c0_70] : memref<32x128xf32, #tpu.memory_space<vmem>>, vector<32x128xf32>
    %cst_71 = arith.constant dense<0.000000e+00> : vector<8x128xf32>
    %162 = tpu.matmul %160, %161, %cst_71 {dimension_numbers = #tpu.dot_dimension_numbers<[1], [0], [0], [1], [0, 0, 1, 1], [], []>} : vector<8x32xf32>, vector<32x128xf32>, vector<8x128xf32> -> vector<8x128xf32>
    %c0_72 = arith.constant 0 : index
    %c0_73 = arith.constant 0 : index
    %163 = vector.load %arg19[%c0_72, %c0_73] : memref<1x128xf32, #tpu.memory_space<vmem>>, vector<1x128xf32>
    %164 = vector.broadcast %163 : vector<1x128xf32> to vector<8x128xf32>
    %165 = arith.addf %162, %164 : vector<8x128xf32>
    %cst_74 = arith.constant 5.000000e-01 : f32
    %166 = vector.broadcast %cst_74 : f32 to vector<8x128xf32>
    %167 = arith.mulf %165, %166 : vector<8x128xf32>
    %cst_75 = arith.constant 0.707106769 : f32
    %168 = vector.broadcast %cst_75 : f32 to vector<8x128xf32>
    %169 = arith.mulf %165, %168 : vector<8x128xf32>
    %170 = math.absf %169 : vector<8x128xf32>
    %cst_76 = arith.constant 0.327591091 : f32
    %171 = vector.broadcast %cst_76 : f32 to vector<8x128xf32>
    %172 = arith.mulf %171, %170 : vector<8x128xf32>
    %cst_77 = arith.constant 1.000000e+00 : f32
    %173 = vector.broadcast %cst_77 : f32 to vector<8x128xf32>
    %174 = arith.addf %173, %172 : vector<8x128xf32>
    %cst_78 = arith.constant 1.000000e+00 : f32
    %175 = vector.broadcast %cst_78 : f32 to vector<8x128xf32>
    %176 = arith.divf %175, %174 : vector<8x128xf32>
    %cst_79 = arith.constant 1.06140542 : f32
    %177 = vector.broadcast %cst_79 : f32 to vector<8x128xf32>
    %178 = arith.mulf %177, %176 : vector<8x128xf32>
    %cst_80 = arith.constant -1.45315206 : f32
    %179 = vector.broadcast %cst_80 : f32 to vector<8x128xf32>
    %180 = arith.addf %178, %179 : vector<8x128xf32>
    %181 = arith.mulf %180, %176 : vector<8x128xf32>
    %cst_81 = arith.constant 1.42141378 : f32
    %182 = vector.broadcast %cst_81 : f32 to vector<8x128xf32>
    %183 = arith.addf %181, %182 : vector<8x128xf32>
    %184 = arith.mulf %183, %176 : vector<8x128xf32>
    %cst_82 = arith.constant -0.284496725 : f32
    %185 = vector.broadcast %cst_82 : f32 to vector<8x128xf32>
    %186 = arith.addf %184, %185 : vector<8x128xf32>
    %187 = arith.mulf %186, %176 : vector<8x128xf32>
    %cst_83 = arith.constant 0.254829586 : f32
    %188 = vector.broadcast %cst_83 : f32 to vector<8x128xf32>
    %189 = arith.addf %187, %188 : vector<8x128xf32>
    %190 = arith.mulf %189, %176 : vector<8x128xf32>
    %cst_84 = arith.constant 0.000000e+00 : f32
    %191 = vector.broadcast %cst_84 : f32 to vector<8x128xf32>
    %192 = arith.subf %191, %170 : vector<8x128xf32>
    %193 = arith.mulf %192, %170 : vector<8x128xf32>
    %194 = math.exp %193 : vector<8x128xf32>
    %195 = arith.mulf %190, %194 : vector<8x128xf32>
    %cst_85 = arith.constant 1.000000e+00 : f32
    %196 = vector.broadcast %cst_85 : f32 to vector<8x128xf32>
    %197 = arith.subf %196, %195 : vector<8x128xf32>
    %cst_86 = arith.constant 0.000000e+00 : f32
    %198 = vector.broadcast %cst_86 : f32 to vector<8x128xf32>
    %199 = arith.cmpf olt, %169, %198 : vector<8x128xf32>
    %cst_87 = arith.constant 0.000000e+00 : f32
    %200 = vector.broadcast %cst_87 : f32 to vector<8x128xf32>
    %201 = arith.subf %200, %197 : vector<8x128xf32>
    %202 = arith.select %199, %201, %197 : vector<8x128xi1>, vector<8x128xf32>
    %cst_88 = arith.constant 1.000000e+00 : f32
    %203 = vector.broadcast %cst_88 : f32 to vector<8x128xf32>
    %204 = arith.addf %203, %202 : vector<8x128xf32>
    %205 = arith.mulf %167, %204 : vector<8x128xf32>
    %c0_89 = arith.constant 0 : index
    %c0_90 = arith.constant 0 : index
    %206 = vector.load %arg20[%c0_89, %c0_90] : memref<128x32xf32, #tpu.memory_space<vmem>>, vector<128x32xf32>
    %cst_91 = arith.constant dense<0.000000e+00> : vector<8x32xf32>
    %207 = tpu.matmul %205, %206, %cst_91 {dimension_numbers = #tpu.dot_dimension_numbers<[1], [0], [0], [1], [0, 0, 1, 1], [], []>} : vector<8x128xf32>, vector<128x32xf32>, vector<8x32xf32> -> vector<8x32xf32>
    %c0_92 = arith.constant 0 : index
    %c0_93 = arith.constant 0 : index
    %208 = vector.load %arg21[%c0_92, %c0_93] : memref<1x32xf32, #tpu.memory_space<vmem>>, vector<1x32xf32>
    %209 = vector.broadcast %208 : vector<1x32xf32> to vector<8x32xf32>
    %210 = arith.addf %207, %209 : vector<8x32xf32>
    %211 = arith.addf %138, %210 : vector<8x32xf32>
    %c0_94 = arith.constant 0 : index
    %c0_95 = arith.constant 0 : index
    %212 = vector.load %arg12[%c0_94, %c0_95] : memref<32x8xf32, #tpu.memory_space<vmem>>, vector<32x8xf32>
    %cst_96 = arith.constant dense<0.000000e+00> : vector<8x8xf32>
    %213 = tpu.matmul %210, %212, %cst_96 {dimension_numbers = #tpu.dot_dimension_numbers<[1], [0], [0], [1], [0, 0, 1, 1], [], []>} : vector<8x32xf32>, vector<32x8xf32>, vector<8x8xf32> -> vector<8x8xf32>
    %c0_97 = arith.constant 0 : index
    %c0_98 = arith.constant 0 : index
    %214 = vector.load %arg13[%c0_97, %c0_98] : memref<1x8xf32, #tpu.memory_space<vmem>>, vector<1x8xf32>
    %215 = vector.broadcast %214 : vector<1x8xf32> to vector<8x8xf32>
    %216 = arith.addf %213, %215 : vector<8x8xf32>
    %cst_99 = arith.constant 0.000000e+00 : f32
    %217 = vector.broadcast %cst_99 : f32 to vector<8x8xf32>
    %218 = arith.maximumf %216, %217 : vector<8x8xf32>
    %c0_100 = arith.constant 0 : index
    %c0_101 = arith.constant 0 : index
    %219 = vector.load %arg14[%c0_100, %c0_101] : memref<8x32xf32, #tpu.memory_space<vmem>>, vector<8x32xf32>
    %cst_102 = arith.constant dense<0.000000e+00> : vector<8x32xf32>
    %220 = tpu.matmul %218, %219, %cst_102 {dimension_numbers = #tpu.dot_dimension_numbers<[1], [0], [0], [1], [0, 0, 1, 1], [], []>} : vector<8x8xf32>, vector<8x32xf32>, vector<8x32xf32> -> vector<8x32xf32>
    %c0_103 = arith.constant 0 : index
    %c0_104 = arith.constant 0 : index
    %221 = vector.load %arg15[%c0_103, %c0_104] : memref<1x32xf32, #tpu.memory_space<vmem>>, vector<1x32xf32>
    %222 = vector.broadcast %221 : vector<1x32xf32> to vector<8x32xf32>
    %223 = arith.addf %220, %222 : vector<8x32xf32>
    %224 = arith.addf %223, %210 : vector<8x32xf32>
    %225 = arith.addf %211, %224 : vector<8x32xf32>
    %c0_105 = arith.constant 0 : index
    %c0_106 = arith.constant 0 : index
    %226 = vector.load %arg24[%c0_105, %c0_106] : memref<8x32xf32, #tpu.memory_space<vmem>>, vector<8x32xf32>
    tpu.vector_store %arg24[%c0_105, %c0_106], %225 {strides = array<i32>} : memref<8x32xf32, #tpu.memory_space<vmem>>, vector<8x32xf32>,
    return
  }
  func.func @transform_0(%arg0: i32) -> (i32, i32) {
    %c0_i32 = arith.constant 0 : i32
    %c0_i32_0 = arith.constant 0 : i32
    return %arg0, %c0_i32 : i32, i32
  }
  func.func @transform_1(%arg0: i32) -> (i32, i32, i32) {
    %c0_i32 = arith.constant 0 : i32
    %c0_i32_0 = arith.constant 0 : i32
    %c0_i32_1 = arith.constant 0 : i32
    return %arg0, %c0_i32, %c0_i32_0 : i32, i32, i32
  }
  func.func @transform_2(%arg0: i32) -> (i32, i32) {
    %c0_i32 = arith.constant 0 : i32
    %c0_i32_0 = arith.constant 0 : i32
    %c0_i32_1 = arith.constant 0 : i32
    return %c0_i32, %c0_i32_0 : i32, i32
  }
  func.func @transform_3(%arg0: i32) -> (i32, i32) {
    %c0_i32 = arith.constant 0 : i32
    %c0_i32_0 = arith.constant 0 : i32
    %c0_i32_1 = arith.constant 0 : i32
    return %c0_i32, %c0_i32_0 : i32, i32
  }
  func.func @transform_4(%arg0: i32) -> (i32, i32) {
    %c0_i32 = arith.constant 0 : i32
    %c0_i32_0 = arith.constant 0 : i32
    %c0_i32_1 = arith.constant 0 : i32
    return %c0_i32, %c0_i32_0 : i32, i32
  }
  func.func @transform_5(%arg0: i32) -> (i32, i32) {
    %c0_i32 = arith.constant 0 : i32
    %c0_i32_0 = arith.constant 0 : i32
    %c0_i32_1 = arith.constant 0 : i32
    return %c0_i32, %c0_i32_0 : i32, i32
  }
  func.func @transform_6(%arg0: i32) -> (i32, i32) {
    %c0_i32 = arith.constant 0 : i32
    %c0_i32_0 = arith.constant 0 : i32
    %c0_i32_1 = arith.constant 0 : i32
    return %c0_i32, %c0_i32_0 : i32, i32
  }
  func.func @transform_7(%arg0: i32) -> (i32, i32) {
    %c0_i32 = arith.constant 0 : i32
    %c0_i32_0 = arith.constant 0 : i32
    %c0_i32_1 = arith.constant 0 : i32
    return %c0_i32, %c0_i32_0 : i32, i32
  }
  func.func @transform_8(%arg0: i32) -> (i32, i32) {
    %c0_i32 = arith.constant 0 : i32
    %c0_i32_0 = arith.constant 0 : i32
    %c0_i32_1 = arith.constant 0 : i32
    return %c0_i32, %c0_i32_0 : i32, i32
  }
  func.func @transform_9(%arg0: i32) -> (i32, i32) {
    %c0_i32 = arith.constant 0 : i32
    %c0_i32_0 = arith.constant 0 : i32
    %c0_i32_1 = arith.constant 0 : i32
    return %c0_i32, %c0_i32_0 : i32, i32
  }
  func.func @transform_10(%arg0: i32) -> (i32, i32) {
    %c0_i32 = arith.constant 0 : i32
    %c0_i32_0 = arith.constant 0 : i32
    %c0_i32_1 = arith.constant 0 : i32
    return %c0_i32, %c0_i32_0 : i32, i32
  }
  func.func @transform_11(%arg0: i32) -> (i32, i32) {
    %c0_i32 = arith.constant 0 : i32
    %c0_i32_0 = arith.constant 0 : i32
    %c0_i32_1 = arith.constant 0 : i32
    return %c0_i32, %c0_i32_0 : i32, i32
  }
  func.func @transform_12(%arg0: i32) -> (i32, i32) {
    %c0_i32 = arith.constant 0 : i32
    %c0_i32_0 = arith.constant 0 : i32
    %c0_i32_1 = arith.constant 0 : i32
    return %c0_i32, %c0_i32_0 : i32, i32
  }
  func.func @transform_13(%arg0: i32) -> (i32, i32) {
    %c0_i32 = arith.constant 0 : i32
    %c0_i32_0 = arith.constant 0 : i32
    %c0_i32_1 = arith.constant 0 : i32
    return %c0_i32, %c0_i32_0 : i32, i32
  }
  func.func @transform_14(%arg0: i32) -> (i32, i32) {
    %c0_i32 = arith.constant 0 : i32
    %c0_i32_0 = arith.constant 0 : i32
    %c0_i32_1 = arith.constant 0 : i32
    return %c0_i32, %c0_i32_0 : i32, i32
  }
  func.func @transform_15(%arg0: i32) -> (i32, i32) {
    %c0_i32 = arith.constant 0 : i32
    %c0_i32_0 = arith.constant 0 : i32
    %c0_i32_1 = arith.constant 0 : i32
    return %c0_i32, %c0_i32_0 : i32, i32
  }
  func.func @transform_16(%arg0: i32) -> (i32, i32) {
    %c0_i32 = arith.constant 0 : i32
    %c0_i32_0 = arith.constant 0 : i32
    %c0_i32_1 = arith.constant 0 : i32
    return %c0_i32, %c0_i32_0 : i32, i32
  }
  func.func @transform_17(%arg0: i32) -> (i32, i32) {
    %c0_i32 = arith.constant 0 : i32
    %c0_i32_0 = arith.constant 0 : i32
    %c0_i32_1 = arith.constant 0 : i32
    return %c0_i32, %c0_i32_0 : i32, i32
  }
  func.func @transform_18(%arg0: i32) -> (i32, i32) {
    %c0_i32 = arith.constant 0 : i32
    %c0_i32_0 = arith.constant 0 : i32
    %c0_i32_1 = arith.constant 0 : i32
    return %c0_i32, %c0_i32_0 : i32, i32
  }
  func.func @transform_19(%arg0: i32) -> (i32, i32) {
    %c0_i32 = arith.constant 0 : i32
    %c0_i32_0 = arith.constant 0 : i32
    %c0_i32_1 = arith.constant 0 : i32
    return %c0_i32, %c0_i32_0 : i32, i32
  }
  func.func @transform_20(%arg0: i32) -> (i32, i32) {
    %c0_i32 = arith.constant 0 : i32
    %c0_i32_0 = arith.constant 0 : i32
    %c0_i32_1 = arith.constant 0 : i32
    return %c0_i32, %c0_i32_0 : i32, i32
  }
  func.func @transform_21(%arg0: i32) -> (i32, i32) {
    %c0_i32 = arith.constant 0 : i32
    %c0_i32_0 = arith.constant 0 : i32
    %c0_i32_1 = arith.constant 0 : i32
    return %c0_i32, %c0_i32_0 : i32, i32
  }
  func.func @transform_22(%arg0: i32) -> (i32, i32) {
    %c0_i32 = arith.constant 0 : i32
    %c0_i32_0 = arith.constant 0 : i32
    %c0_i32_1 = arith.constant 0 : i32
    return %c0_i32, %c0_i32_0 : i32, i32
  }
  func.func @transform_23(%arg0: i32) -> (i32, i32) {
    %c0_i32 = arith.constant 0 : i32
    %c0_i32_0 = arith.constant 0 : i32
    return %arg0, %c0_i32 : i32, i32
  }
}

module attributes {stable_mosaic.version = 11 : i64} {
  func.func @_layer_kernel(%arg0: i32, %arg1: memref<8x32xf32, #tpu.memory_space<vmem>>, %arg2: memref<1x1x8xf32, #tpu.memory_space<vmem>>, %arg3: memref<8x64xf32, #tpu.memory_space<vmem>>, %arg4: memref<8x64xf32, #tpu.memory_space<vmem>>, %arg5: memref<64x64xf32, #tpu.memory_space<vmem>>, %arg6: memref<1x32xf32, #tpu.memory_space<vmem>>, %arg7: memref<1x32xf32, #tpu.memory_space<vmem>>, %arg8: memref<32x96xf32, #tpu.memory_space<vmem>>, %arg9: memref<1x96xf32, #tpu.memory_space<vmem>>, %arg10: memref<32x32xf32, #tpu.memory_space<vmem>>, %arg11: memref<1x32xf32, #tpu.memory_space<vmem>>, %arg12: memref<32x8xf32, #tpu.memory_space<vmem>>, %arg13: memref<1x8xf32, #tpu.memory_space<vmem>>, %arg14: memref<8x32xf32, #tpu.memory_space<vmem>>, %arg15: memref<1x32xf32, #tpu.memory_space<vmem>>, %arg16: memref<1x32xf32, #tpu.memory_space<vmem>>, %arg17: memref<1x32xf32, #tpu.memory_space<vmem>>, %arg18: memref<32x128xf32, #tpu.memory_space<vmem>>, %arg19: memref<1x128xf32, #tpu.memory_space<vmem>>, %arg20: memref<128x32xf32, #tpu.memory_space<vmem>>, %arg21: memref<1x32xf32, #tpu.memory_space<vmem>>, %arg22: memref<1x32xf32, #tpu.memory_space<vmem>>, %arg23: memref<1x32xf32, #tpu.memory_space<vmem>>, %arg24: memref<8x32xf32, #tpu.memory_space<vmem>>) attributes {dimension_semantics = [#tpu.dimension_semantics<parallel>], iteration_bounds = array<i64: 2>, scalar_prefetch = 0 : i64, scratch_operands = 0 : i64, tpu.core_type = #tpu.core_type<tc>, window_params = [{transform_indices = @transform_0, window_bounds = array<i64: 8, 32>}, {transform_indices = @transform_1, window_bounds = array<i64: 1, 1, 8>}, {pipeline_mode = #tpu.pipeline_mode<synchronous>, transform_indices = @transform_2, window_bounds = array<i64: 8, 64>}, {pipeline_mode = #tpu.pipeline_mode<synchronous>, transform_indices = @transform_3, window_bounds = array<i64: 8, 64>}, {pipeline_mode = #tpu.pipeline_mode<synchronous>, transform_indices = @transform_4, window_bounds = array<i64: 64, 64>}, {pipeline_mode = #tpu.pipeline_mode<synchronous>, transform_indices = @transform_5, window_bounds = array<i64: 1, 32>}, {pipeline_mode = #tpu.pipeline_mode<synchronous>, transform_indices = @transform_6, window_bounds = array<i64: 1, 32>}, {pipeline_mode = #tpu.pipeline_mode<synchronous>, transform_indices = @transform_7, window_bounds = array<i64: 32, 96>}, {pipeline_mode = #tpu.pipeline_mode<synchronous>, transform_indices = @transform_8, window_bounds = array<i64: 1, 96>}, {pipeline_mode = #tpu.pipeline_mode<synchronous>, transform_indices = @transform_9, window_bounds = array<i64: 32, 32>}, {pipeline_mode = #tpu.pipeline_mode<synchronous>, transform_indices = @transform_10, window_bounds = array<i64: 1, 32>}, {pipeline_mode = #tpu.pipeline_mode<synchronous>, transform_indices = @transform_11, window_bounds = array<i64: 32, 8>}, {pipeline_mode = #tpu.pipeline_mode<synchronous>, transform_indices = @transform_12, window_bounds = array<i64: 1, 8>}, {pipeline_mode = #tpu.pipeline_mode<synchronous>, transform_indices = @transform_13, window_bounds = array<i64: 8, 32>}, {pipeline_mode = #tpu.pipeline_mode<synchronous>, transform_indices = @transform_14, window_bounds = array<i64: 1, 32>}, {pipeline_mode = #tpu.pipeline_mode<synchronous>, transform_indices = @transform_15, window_bounds = array<i64: 1, 32>}, {pipeline_mode = #tpu.pipeline_mode<synchronous>, transform_indices = @transform_16, window_bounds = array<i64: 1, 32>}, {pipeline_mode = #tpu.pipeline_mode<synchronous>, transform_indices = @transform_17, window_bounds = array<i64: 32, 128>}, {pipeline_mode = #tpu.pipeline_mode<synchronous>, transform_indices = @transform_18, window_bounds = array<i64: 1, 128>}, {pipeline_mode = #tpu.pipeline_mode<synchronous>, transform_indices = @transform_19, window_bounds = array<i64: 128, 32>}, {pipeline_mode = #tpu.pipeline_mode<synchronous>, transform_indices = @transform_20, window_bounds = array<i64: 1, 32>}, {pipeline_mode = #tpu.pipeline_mode<synchronous>, transform_indices = @transform_21, window_bounds = array<i64: 1, 32>}, {pipeline_mode = #tpu.pipeline_mode<synchronous>, transform_indices = @transform_22, window_bounds = array<i64: 1, 32>}, {transform_indices = @transform_23, window_bounds = array<i64: 8, 32>}]} {
    %c0 = arith.constant 0 : index
    %c0_0 = arith.constant 0 : index
    %0 = vector.load %arg1[%c0, %c0_0] : memref<8x32xf32, #tpu.memory_space<vmem>>, vector<8x32xf32>
    %cst = arith.constant dense<0.000000e+00> : vector<8xf32>
    %1 = vector.multi_reduction <add>, %0, %cst [1] : vector<8x32xf32> to vector<8xf32>
    %2 = vector.shape_cast %1 : vector<8xf32> to vector<8x1xf32>
    %cst_1 = arith.constant 3.200000e+01 : f32
    %3 = vector.broadcast %cst_1 : f32 to vector<8x1xf32>
    %4 = arith.divf %2, %3 : vector<8x1xf32>
    %5 = vector.broadcast %4 : vector<8x1xf32> to vector<8x32xf32>
    %6 = arith.subf %0, %5 : vector<8x32xf32>
    %7 = arith.mulf %6, %6 : vector<8x32xf32>
    %cst_2 = arith.constant dense<0.000000e+00> : vector<8xf32>
    %8 = vector.multi_reduction <add>, %7, %cst_2 [1] : vector<8x32xf32> to vector<8xf32>
    %9 = vector.shape_cast %8 : vector<8xf32> to vector<8x1xf32>
    %cst_3 = arith.constant 3.200000e+01 : f32
    %10 = vector.broadcast %cst_3 : f32 to vector<8x1xf32>
    %11 = arith.divf %9, %10 : vector<8x1xf32>
    %cst_4 = arith.constant 9.99999974E-6 : f32
    %12 = vector.broadcast %cst_4 : f32 to vector<8x1xf32>
    %13 = arith.addf %11, %12 : vector<8x1xf32>
    %14 = math.sqrt %13 : vector<8x1xf32>
    %15 = vector.broadcast %14 : vector<8x1xf32> to vector<8x32xf32>
    %16 = arith.divf %6, %15 : vector<8x32xf32>
    %c0_5 = arith.constant 0 : index
    %c0_6 = arith.constant 0 : index
    %17 = vector.load %arg6[%c0_5, %c0_6] : memref<1x32xf32, #tpu.memory_space<vmem>>, vector<1x32xf32>
    %18 = vector.broadcast %17 : vector<1x32xf32> to vector<8x32xf32>
    %19 = arith.mulf %16, %18 : vector<8x32xf32>
    %c0_7 = arith.constant 0 : index
    %c0_8 = arith.constant 0 : index
    %20 = vector.load %arg7[%c0_7, %c0_8] : memref<1x32xf32, #tpu.memory_space<vmem>>, vector<1x32xf32>
    %21 = vector.broadcast %20 : vector<1x32xf32> to vector<8x32xf32>
    %22 = arith.addf %19, %21 : vector<8x32xf32>
    %c0_9 = arith.constant 0 : index
    %c0_10 = arith.constant 0 : index
    %23 = vector.load %arg8[%c0_9, %c0_10] : memref<32x96xf32, #tpu.memory_space<vmem>>, vector<32x96xf32>
    %cst_11 = arith.constant dense<0.000000e+00> : vector<8x96xf32>
    %24 = tpu.matmul %22, %23, %cst_11 {dimension_numbers = #tpu.dot_dimension_numbers<[1], [0], [0], [1], [0, 0, 1, 1], [], []>} : vector<8x32xf32>, vector<32x96xf32>, vector<8x96xf32> -> vector<8x96xf32>
    %c0_12 = arith.constant 0 : index
    %c0_13 = arith.constant 0 : index
    %25 = vector.load %arg9[%c0_12, %c0_13] : memref<1x96xf32, #tpu.memory_space<vmem>>, vector<1x96xf32>
    %26 = vector.broadcast %25 : vector<1x96xf32> to vector<8x96xf32>
    %27 = arith.addf %24, %26 : vector<8x96xf32>
    %28 = vector.extract_strided_slice %27 {offsets = [0, 0], sizes = [8, 64], strides = [1, 1]} : vector<8x96xf32> to vector<8x64xf32>
    %29 = vector.extract_strided_slice %27 {offsets = [0, 64], sizes = [8, 32], strides = [1, 1]} : vector<8x96xf32> to vector<8x32xf32>
    %c0_14 = arith.constant 0 : index
    %c0_15 = arith.constant 0 : index
    %30 = vector.load %arg3[%c0_14, %c0_15] : memref<8x64xf32, #tpu.memory_space<vmem>>, vector<8x64xf32>
    %31 = arith.mulf %28, %30 : vector<8x64xf32>
    %c0_16 = arith.constant 0 : index
    %c0_17 = arith.constant 0 : index
    %32 = vector.load %arg5[%c0_16, %c0_17] : memref<64x64xf32, #tpu.memory_space<vmem>>, vector<64x64xf32>
    %cst_18 = arith.constant dense<0.000000e+00> : vector<8x64xf32>
    %33 = tpu.matmul %28, %32, %cst_18 {dimension_numbers = #tpu.dot_dimension_numbers<[1], [0], [0], [1], [0, 0, 1, 1], [], []>} : vector<8x64xf32>, vector<64x64xf32>, vector<8x64xf32> -> vector<8x64xf32>
    %c0_19 = arith.constant 0 : index
    %c0_20 = arith.constant 0 : index
    %34 = vector.load %arg4[%c0_19, %c0_20] : memref<8x64xf32, #tpu.memory_space<vmem>>, vector<8x64xf32>
    %35 = arith.mulf %33, %34 : vector<8x64xf32>
    %36 = arith.addf %31, %35 : vector<8x64xf32>
    %c0_21 = arith.constant 0 : index
    %c0_22 = arith.constant 0 : index
    %c0_23 = arith.constant 0 : index
    %37 = vector.load %arg2[%c0_21, %c0_22, %c0_23] : memref<1x1x8xf32, #tpu.memory_space<vmem>>, vector<1x1x8xf32>
    %38 = vector.shape_cast %37 : vector<1x1x8xf32> to vector<1x8xf32>
    %c0_24 = arith.constant 0 : index
    %c0_25 = arith.constant 0 : index
    %39 = vector.load %arg10[%c0_24, %c0_25] : memref<32x32xf32, #tpu.memory_space<vmem>>, vector<32x32xf32>
    %cst_26 = arith.constant 0.000000e+00 : f32
    %40 = vector.broadcast %cst_26 : f32 to vector<8x32xf32>
    %41 = vector.extract_strided_slice %36 {offsets = [0, 0], sizes = [8, 8], strides = [1, 1]} : vector<8x64xf32> to vector<8x8xf32>
    %42 = vector.extract_strided_slice %36 {offsets = [0, 32], sizes = [8, 8], strides = [1, 1]} : vector<8x64xf32> to vector<8x8xf32>
    %43 = vector.extract_strided_slice %29 {offsets = [0, 0], sizes = [8, 8], strides = [1, 1]} : vector<8x32xf32> to vector<8x8xf32>
    %cst_27 = arith.constant dense<0.000000e+00> : vector<8x8xf32>
    %44 = tpu.matmul %41, %42, %cst_27 {dimension_numbers = #tpu.dot_dimension_numbers<[1], [1], [0], [0], [0, 0, 1, 0], [], []>} : vector<8x8xf32>, vector<8x8xf32>, vector<8x8xf32> -> vector<8x8xf32>
    %45 = vector.broadcast %38 : vector<1x8xf32> to vector<8x8xf32>
    %46 = arith.addf %44, %45 : vector<8x8xf32>
    %cst_28 = arith.constant dense<0xFF800000> : vector<8xf32>
    %47 = vector.multi_reduction <maximumf>, %46, %cst_28 [1] : vector<8x8xf32> to vector<8xf32>
    %48 = vector.shape_cast %47 : vector<8xf32> to vector<8x1xf32>
    %49 = vector.broadcast %48 : vector<8x1xf32> to vector<8x8xf32>
    %50 = arith.subf %46, %49 : vector<8x8xf32>
    %51 = math.exp %50 : vector<8x8xf32>
    %cst_29 = arith.constant dense<0.000000e+00> : vector<8x8xf32>
    %52 = tpu.matmul %51, %43, %cst_29 {dimension_numbers = #tpu.dot_dimension_numbers<[1], [0], [0], [1], [0, 0, 1, 1], [], []>} : vector<8x8xf32>, vector<8x8xf32>, vector<8x8xf32> -> vector<8x8xf32>
    %cst_30 = arith.constant dense<0.000000e+00> : vector<8xf32>
    %53 = vector.multi_reduction <add>, %51, %cst_30 [1] : vector<8x8xf32> to vector<8xf32>
    %54 = vector.shape_cast %53 : vector<8xf32> to vector<8x1xf32>
    %55 = tpu.reciprocal %54 {approx = true} : vector<8x1xf32> -> vector<8x1xf32>
    %56 = vector.broadcast %55 : vector<8x1xf32> to vector<8x8xf32>
    %57 = arith.mulf %52, %56 : vector<8x8xf32>
    %58 = vector.extract_strided_slice %39 {offsets = [0, 0], sizes = [8, 32], strides = [1, 1]} : vector<32x32xf32> to vector<8x32xf32>
    %cst_31 = arith.constant dense<0.000000e+00> : vector<8x32xf32>
    %59 = tpu.matmul %57, %58, %cst_31 {dimension_numbers = #tpu.dot_dimension_numbers<[1], [0], [0], [1], [0, 0, 1, 1], [], []>} : vector<8x8xf32>, vector<8x32xf32>, vector<8x32xf32> -> vector<8x32xf32>
    %60 = arith.addf %40, %59 : vector<8x32xf32>
    %61 = vector.extract_strided_slice %36 {offsets = [0, 8], sizes = [8, 8], strides = [1, 1]} : vector<8x64xf32> to vector<8x8xf32>
    %62 = vector.extract_strided_slice %36 {offsets = [0, 40], sizes = [8, 8], strides = [1, 1]} : vector<8x64xf32> to vector<8x8xf32>
    %63 = vector.extract_strided_slice %29 {offsets = [0, 8], sizes = [8, 8], strides = [1, 1]} : vector<8x32xf32> to vector<8x8xf32>
    %cst_32 = arith.constant dense<0.000000e+00> : vector<8x8xf32>
    %64 = tpu.matmul %61, %62, %cst_32 {dimension_numbers = #tpu.dot_dimension_numbers<[1], [1], [0], [0], [0, 0, 1, 0], [], []>} : vector<8x8xf32>, vector<8x8xf32>, vector<8x8xf32> -> vector<8x8xf32>
    %65 = vector.broadcast %38 : vector<1x8xf32> to vector<8x8xf32>
    %66 = arith.addf %64, %65 : vector<8x8xf32>
    %cst_33 = arith.constant dense<0xFF800000> : vector<8xf32>
    %67 = vector.multi_reduction <maximumf>, %66, %cst_33 [1] : vector<8x8xf32> to vector<8xf32>
    %68 = vector.shape_cast %67 : vector<8xf32> to vector<8x1xf32>
    %69 = vector.broadcast %68 : vector<8x1xf32> to vector<8x8xf32>
    %70 = arith.subf %66, %69 : vector<8x8xf32>
    %71 = math.exp %70 : vector<8x8xf32>
    %cst_34 = arith.constant dense<0.000000e+00> : vector<8x8xf32>
    %72 = tpu.matmul %71, %63, %cst_34 {dimension_numbers = #tpu.dot_dimension_numbers<[1], [0], [0], [1], [0, 0, 1, 1], [], []>} : vector<8x8xf32>, vector<8x8xf32>, vector<8x8xf32> -> vector<8x8xf32>
    %cst_35 = arith.constant dense<0.000000e+00> : vector<8xf32>
    %73 = vector.multi_reduction <add>, %71, %cst_35 [1] : vector<8x8xf32> to vector<8xf32>
    %74 = vector.shape_cast %73 : vector<8xf32> to vector<8x1xf32>
    %75 = tpu.reciprocal %74 {approx = true} : vector<8x1xf32> -> vector<8x1xf32>
    %76 = vector.broadcast %75 : vector<8x1xf32> to vector<8x8xf32>
    %77 = arith.mulf %72, %76 : vector<8x8xf32>
    %78 = vector.extract_strided_slice %39 {offsets = [8, 0], sizes = [8, 32], strides = [1, 1]} : vector<32x32xf32> to vector<8x32xf32>
    %cst_36 = arith.constant dense<0.000000e+00> : vector<8x32xf32>
    %79 = tpu.matmul %77, %78, %cst_36 {dimension_numbers = #tpu.dot_dimension_numbers<[1], [0], [0], [1], [0, 0, 1, 1], [], []>} : vector<8x8xf32>, vector<8x32xf32>, vector<8x32xf32> -> vector<8x32xf32>
    %80 = arith.addf %60, %79 : vector<8x32xf32>
    %81 = vector.extract_strided_slice %36 {offsets = [0, 16], sizes = [8, 8], strides = [1, 1]} : vector<8x64xf32> to vector<8x8xf32>
    %82 = vector.extract_strided_slice %36 {offsets = [0, 48], sizes = [8, 8], strides = [1, 1]} : vector<8x64xf32> to vector<8x8xf32>
    %83 = vector.extract_strided_slice %29 {offsets = [0, 16], sizes = [8, 8], strides = [1, 1]} : vector<8x32xf32> to vector<8x8xf32>
    %cst_37 = arith.constant dense<0.000000e+00> : vector<8x8xf32>
    %84 = tpu.matmul %81, %82, %cst_37 {dimension_numbers = #tpu.dot_dimension_numbers<[1], [1], [0], [0], [0, 0, 1, 0], [], []>} : vector<8x8xf32>, vector<8x8xf32>, vector<8x8xf32> -> vector<8x8xf32>
    %85 = vector.broadcast %38 : vector<1x8xf32> to vector<8x8xf32>
    %86 = arith.addf %84, %85 : vector<8x8xf32>
    %cst_38 = arith.constant dense<0xFF800000> : vector<8xf32>
    %87 = vector.multi_reduction <maximumf>, %86, %cst_38 [1] : vector<8x8xf32> to vector<8xf32>
    %88 = vector.shape_cast %87 : vector<8xf32> to vector<8x1xf32>
    %89 = vector.broadcast %88 : vector<8x1xf32> to vector<8x8xf32>
    %90 = arith.subf %86, %89 : vector<8x8xf32>
    %91 = math.exp %90 : vector<8x8xf32>
    %cst_39 = arith.constant dense<0.000000e+00> : vector<8x8xf32>
    %92 = tpu.matmul %91, %83, %cst_39 {dimension_numbers = #tpu.dot_dimension_numbers<[1], [0], [0], [1], [0, 0, 1, 1], [], []>} : vector<8x8xf32>, vector<8x8xf32>, vector<8x8xf32> -> vector<8x8xf32>
    %cst_40 = arith.constant dense<0.000000e+00> : vector<8xf32>
    %93 = vector.multi_reduction <add>, %91, %cst_40 [1] : vector<8x8xf32> to vector<8xf32>
    %94 = vector.shape_cast %93 : vector<8xf32> to vector<8x1xf32>
    %95 = tpu.reciprocal %94 {approx = true} : vector<8x1xf32> -> vector<8x1xf32>
    %96 = vector.broadcast %95 : vector<8x1xf32> to vector<8x8xf32>
    %97 = arith.mulf %92, %96 : vector<8x8xf32>
    %98 = vector.extract_strided_slice %39 {offsets = [16, 0], sizes = [8, 32], strides = [1, 1]} : vector<32x32xf32> to vector<8x32xf32>
    %cst_41 = arith.constant dense<0.000000e+00> : vector<8x32xf32>
    %99 = tpu.matmul %97, %98, %cst_41 {dimension_numbers = #tpu.dot_dimension_numbers<[1], [0], [0], [1], [0, 0, 1, 1], [], []>} : vector<8x8xf32>, vector<8x32xf32>, vector<8x32xf32> -> vector<8x32xf32>
    %100 = arith.addf %80, %99 : vector<8x32xf32>
    %101 = vector.extract_strided_slice %36 {offsets = [0, 24], sizes = [8, 8], strides = [1, 1]} : vector<8x64xf32> to vector<8x8xf32>
    %102 = vector.extract_strided_slice %36 {offsets = [0, 56], sizes = [8, 8], strides = [1, 1]} : vector<8x64xf32> to vector<8x8xf32>
    %103 = vector.extract_strided_slice %29 {offsets = [0, 24], sizes = [8, 8], strides = [1, 1]} : vector<8x32xf32> to vector<8x8xf32>
    %cst_42 = arith.constant dense<0.000000e+00> : vector<8x8xf32>
    %104 = tpu.matmul %101, %102, %cst_42 {dimension_numbers = #tpu.dot_dimension_numbers<[1], [1], [0], [0], [0, 0, 1, 0], [], []>} : vector<8x8xf32>, vector<8x8xf32>, vector<8x8xf32> -> vector<8x8xf32>
    %105 = vector.broadcast %38 : vector<1x8xf32> to vector<8x8xf32>
    %106 = arith.addf %104, %105 : vector<8x8xf32>
    %cst_43 = arith.constant dense<0xFF800000> : vector<8xf32>
    %107 = vector.multi_reduction <maximumf>, %106, %cst_43 [1] : vector<8x8xf32> to vector<8xf32>
    %108 = vector.shape_cast %107 : vector<8xf32> to vector<8x1xf32>
    %109 = vector.broadcast %108 : vector<8x1xf32> to vector<8x8xf32>
    %110 = arith.subf %106, %109 : vector<8x8xf32>
    %111 = math.exp %110 : vector<8x8xf32>
    %cst_44 = arith.constant dense<0.000000e+00> : vector<8x8xf32>
    %112 = tpu.matmul %111, %103, %cst_44 {dimension_numbers = #tpu.dot_dimension_numbers<[1], [0], [0], [1], [0, 0, 1, 1], [], []>} : vector<8x8xf32>, vector<8x8xf32>, vector<8x8xf32> -> vector<8x8xf32>
    %cst_45 = arith.constant dense<0.000000e+00> : vector<8xf32>
    %113 = vector.multi_reduction <add>, %111, %cst_45 [1] : vector<8x8xf32> to vector<8xf32>
    %114 = vector.shape_cast %113 : vector<8xf32> to vector<8x1xf32>
    %115 = tpu.reciprocal %114 {approx = true} : vector<8x1xf32> -> vector<8x1xf32>
    %116 = vector.broadcast %115 : vector<8x1xf32> to vector<8x8xf32>
    %117 = arith.mulf %112, %116 : vector<8x8xf32>
    %118 = vector.extract_strided_slice %39 {offsets = [24, 0], sizes = [8, 32], strides = [1, 1]} : vector<32x32xf32> to vector<8x32xf32>
    %cst_46 = arith.constant dense<0.000000e+00> : vector<8x32xf32>
    %119 = tpu.matmul %117, %118, %cst_46 {dimension_numbers = #tpu.dot_dimension_numbers<[1], [0], [0], [1], [0, 0, 1, 1], [], []>} : vector<8x8xf32>, vector<8x32xf32>, vector<8x32xf32> -> vector<8x32xf32>
    %120 = arith.addf %100, %119 : vector<8x32xf32>
    %c0_47 = arith.constant 0 : index
    %c0_48 = arith.constant 0 : index
    %121 = vector.load %arg11[%c0_47, %c0_48] : memref<1x32xf32, #tpu.memory_space<vmem>>, vector<1x32xf32>
    %122 = vector.broadcast %121 : vector<1x32xf32> to vector<8x32xf32>
    %123 = arith.addf %120, %122 : vector<8x32xf32>
    %124 = arith.addf %0, %123 : vector<8x32xf32>
    %c0_49 = arith.constant 0 : index
    %c0_50 = arith.constant 0 : index
    %125 = vector.load %arg12[%c0_49, %c0_50] : memref<32x8xf32, #tpu.memory_space<vmem>>, vector<32x8xf32>
    %cst_51 = arith.constant dense<0.000000e+00> : vector<8x8xf32>
    %126 = tpu.matmul %123, %125, %cst_51 {dimension_numbers = #tpu.dot_dimension_numbers<[1], [0], [0], [1], [0, 0, 1, 1], [], []>} : vector<8x32xf32>, vector<32x8xf32>, vector<8x8xf32> -> vector<8x8xf32>
    %c0_52 = arith.constant 0 : index
    %c0_53 = arith.constant 0 : index
    %127 = vector.load %arg13[%c0_52, %c0_53] : memref<1x8xf32, #tpu.memory_space<vmem>>, vector<1x8xf32>
    %128 = vector.broadcast %127 : vector<1x8xf32> to vector<8x8xf32>
    %129 = arith.addf %126, %128 : vector<8x8xf32>
    %cst_54 = arith.constant 0.000000e+00 : f32
    %130 = vector.broadcast %cst_54 : f32 to vector<8x8xf32>
    %131 = arith.maximumf %129, %130 : vector<8x8xf32>
    %c0_55 = arith.constant 0 : index
    %c0_56 = arith.constant 0 : index
    %132 = vector.load %arg14[%c0_55, %c0_56] : memref<8x32xf32, #tpu.memory_space<vmem>>, vector<8x32xf32>
    %cst_57 = arith.constant dense<0.000000e+00> : vector<8x32xf32>
    %133 = tpu.matmul %131, %132, %cst_57 {dimension_numbers = #tpu.dot_dimension_numbers<[1], [0], [0], [1], [0, 0, 1, 1], [], []>} : vector<8x8xf32>, vector<8x32xf32>, vector<8x32xf32> -> vector<8x32xf32>
    %c0_58 = arith.constant 0 : index
    %c0_59 = arith.constant 0 : index
    %134 = vector.load %arg15[%c0_58, %c0_59] : memref<1x32xf32, #tpu.memory_space<vmem>>, vector<1x32xf32>
    %135 = vector.broadcast %134 : vector<1x32xf32> to vector<8x32xf32>
    %136 = arith.addf %133, %135 : vector<8x32xf32>
    %137 = arith.addf %136, %123 : vector<8x32xf32>
    %138 = arith.addf %124, %137 : vector<8x32xf32>
    %cst_60 = arith.constant dense<0.000000e+00> : vector<8xf32>
    %139 = vector.multi_reduction <add>, %138, %cst_60 [1] : vector<8x32xf32> to vector<8xf32>
    %140 = vector.shape_cast %139 : vector<8xf32> to vector<8x1xf32>
    %cst_61 = arith.constant 3.200000e+01 : f32
    %141 = vector.broadcast %cst_61 : f32 to vector<8x1xf32>
    %142 = arith.divf %140, %141 : vector<8x1xf32>
    %143 = vector.broadcast %142 : vector<8x1xf32> to vector<8x32xf32>
    %144 = arith.subf %138, %143 : vector<8x32xf32>
    %145 = arith.mulf %144, %144 : vector<8x32xf32>
    %cst_62 = arith.constant dense<0.000000e+00> : vector<8xf32>
    %146 = vector.multi_reduction <add>, %145, %cst_62 [1] : vector<8x32xf32> to vector<8xf32>
    %147 = vector.shape_cast %146 : vector<8xf32> to vector<8x1xf32>
    %cst_63 = arith.constant 3.200000e+01 : f32
    %148 = vector.broadcast %cst_63 : f32 to vector<8x1xf32>
    %149 = arith.divf %147, %148 : vector<8x1xf32>
    %cst_64 = arith.constant 9.99999974E-6 : f32
    %150 = vector.broadcast %cst_64 : f32 to vector<8x1xf32>
    %151 = arith.addf %149, %150 : vector<8x1xf32>
    %152 = math.sqrt %151 : vector<8x1xf32>
    %153 = vector.broadcast %152 : vector<8x1xf32> to vector<8x32xf32>
    %154 = arith.divf %144, %153 : vector<8x32xf32>
    %c0_65 = arith.constant 0 : index
    %c0_66 = arith.constant 0 : index
    %155 = vector.load %arg16[%c0_65, %c0_66] : memref<1x32xf32, #tpu.memory_space<vmem>>, vector<1x32xf32>
    %156 = vector.broadcast %155 : vector<1x32xf32> to vector<8x32xf32>
    %157 = arith.mulf %154, %156 : vector<8x32xf32>
    %c0_67 = arith.constant 0 : index
    %c0_68 = arith.constant 0 : index
    %158 = vector.load %arg17[%c0_67, %c0_68] : memref<1x32xf32, #tpu.memory_space<vmem>>, vector<1x32xf32>
    %159 = vector.broadcast %158 : vector<1x32xf32> to vector<8x32xf32>
    %160 = arith.addf %157, %159 : vector<8x32xf32>
    %c0_69 = arith.constant 0 : index
    %c0_70 = arith.constant 0 : index
    %161 = vector.load %arg18[%c0_69, %c0_70] : memref<32x128xf32, #tpu.memory_space<vmem>>, vector<32x128xf32>
    %cst_71 = arith.constant dense<0.000000e+00> : vector<8x128xf32>
    %162 = tpu.matmul %160, %161, %cst_71 {dimension_numbers = #tpu.dot_dimension_numbers<[1], [0], [0], [1], [0, 0, 1, 1], [], []>} : vector<8x32xf32>, vector<32x128xf32>, vector<8x128xf32> -> vector<8x128xf32>
    %c0_72 = arith.constant 0 : index
    %c0_73 = arith.constant 0 : index
    %163 = vector.load %arg19[%c0_72, %c0_73] : memref<1x128xf32, #tpu.memory_space<vmem>>, vector<1x128xf32>
    %164 = vector.broadcast %163 : vector<1x128xf32> to vector<8x128xf32>
    %165 = arith.addf %162, %164 : vector<8x128xf32>
    %cst_74 = arith.constant 5.000000e-01 : f32
    %166 = vector.broadcast %cst_74 : f32 to vector<8x128xf32>
    %167 = arith.mulf %165, %166 : vector<8x128xf32>
    %cst_75 = arith.constant 0.707106769 : f32
    %168 = vector.broadcast %cst_75 : f32 to vector<8x128xf32>
    %169 = arith.mulf %165, %168 : vector<8x128xf32>
    %170 = math.absf %169 : vector<8x128xf32>
    %cst_76 = arith.constant 0.327591091 : f32
    %171 = vector.broadcast %cst_76 : f32 to vector<8x128xf32>
    %172 = arith.mulf %171, %170 : vector<8x128xf32>
    %cst_77 = arith.constant 1.000000e+00 : f32
    %173 = vector.broadcast %cst_77 : f32 to vector<8x128xf32>
    %174 = arith.addf %173, %172 : vector<8x128xf32>
    %cst_78 = arith.constant 1.000000e+00 : f32
    %175 = vector.broadcast %cst_78 : f32 to vector<8x128xf32>
    %176 = arith.divf %175, %174 : vector<8x128xf32>
    %cst_79 = arith.constant 1.06140542 : f32
    %177 = vector.broadcast %cst_79 : f32 to vector<8x128xf32>
    %178 = arith.mulf %177, %176 : vector<8x128xf32>
    %cst_80 = arith.constant -1.45315206 : f32
    %179 = vector.broadcast %cst_80 : f32 to vector<8x128xf32>
    %180 = arith.addf %178, %179 : vector<8x128xf32>
    %181 = arith.mulf %180, %176 : vector<8x128xf32>
    %cst_81 = arith.constant 1.42141378 : f32
    %182 = vector.broadcast %cst_81 : f32 to vector<8x128xf32>
    %183 = arith.addf %181, %182 : vector<8x128xf32>
    %184 = arith.mulf %183, %176 : vector<8x128xf32>
    %cst_82 = arith.constant -0.284496725 : f32
    %185 = vector.broadcast %cst_82 : f32 to vector<8x128xf32>
    %186 = arith.addf %184, %185 : vector<8x128xf32>
    %187 = arith.mulf %186, %176 : vector<8x128xf32>
    %cst_83 = arith.constant 0.254829586 : f32
    %188 = vector.broadcast %cst_83 : f32 to vector<8x128xf32>
    %189 = arith.addf %187, %188 : vector<8x128xf32>
    %190 = arith.mulf %189, %176 : vector<8x128xf32>
    %cst_84 = arith.constant 0.000000e+00 : f32
    %191 = vector.broadcast %cst_84 : f32 to vector<8x128xf32>
    %192 = arith.subf %191, %170 : vector<8x128xf32>
    %193 = arith.mulf %192, %170 : vector<8x128xf32>
    %194 = math.exp %193 : vector<8x128xf32>
    %195 = arith.mulf %190, %194 : vector<8x128xf32>
    %cst_85 = arith.constant 1.000000e+00 : f32
    %196 = vector.broadcast %cst_85 : f32 to vector<8x128xf32>
    %197 = arith.subf %196, %195 : vector<8x128xf32>
    %cst_86 = arith.constant 0.000000e+00 : f32
    %198 = vector.broadcast %cst_86 : f32 to vector<8x128xf32>
    %199 = arith.cmpf olt, %169, %198 : vector<8x128xf32>
    %cst_87 = arith.constant 0.000000e+00 : f32
    %200 = vector.broadcast %cst_87 : f32 to vector<8x128xf32>
    %201 = arith.subf %200, %197 : vector<8x128xf32>
    %202 = arith.select %199, %201, %197 : vector<8x128xi1>, vector<8x128xf32>
    %cst_88 = arith.constant 1.000000e+00 : f32
    %203 = vector.broadcast %cst_88 : f32 to vector<8x128xf32>
    %204 = arith.addf %203, %202 : vector<8x128xf32>
    %205 = arith.mulf %167, %204 : vector<8x128xf32>
    %c0_89 = arith.constant 0 : index
    %c0_90 = arith.constant 0 : index
    %206 = vector.load %arg20[%c0_89, %c0_90] : memref<128x32xf32, #tpu.memory_space<vmem>>, vector<128x32xf32>
    %cst_91 = arith.constant dense<0.000000e+00> : vector<8x32xf32>
    %207 = tpu.matmul %205, %206, %cst_91 {dimension_numbers = #tpu.dot_dimension_numbers<[1], [0], [0], [1], [0, 0, 1, 1], [], []>} : vector<8x128xf32>, vector<128x32xf32>, vector<8x32xf32> -> vector<8x32xf32>
    %c0_92 = arith.constant 0 : index
    %c0_93 = arith.constant 0 : index
    %208 = vector.load %arg21[%c0_92, %c0_93] : memref<1x32xf32, #tpu.memory_space<vmem>>, vector<1x32xf32>
    %209 = vector.broadcast %208 : vector<1x32xf32> to vector<8x32xf32>
    %210 = arith.addf %207, %209 : vector<8x32xf32>
    %211 = arith.addf %138, %210 : vector<8x32xf32>
    %c0_94 = arith.constant 0 : index
    %c0_95 = arith.constant 0 : index
    %212 = vector.load %arg12[%c0_94, %c0_95] : memref<32x8xf32, #tpu.memory_space<vmem>>, vector<32x8xf32>
    %cst_96 = arith.constant dense<0.000000e+00> : vector<8x8xf32>
    %213 = tpu.matmul %210, %212, %cst_96 {dimension_numbers = #tpu.dot_dimension_numbers<[1], [0], [0], [1], [0, 0, 1, 1], [], []>} : vector<8x32xf32>, vector<32x8xf32>, vector<8x8xf32> -> vector<8x8xf32>
    %c0_97 = arith.constant 0 : index
    %c0_98 = arith.constant 0 : index
    %214 = vector.load %arg13[%c0_97, %c0_98] : memref<1x8xf32, #tpu.memory_space<vmem>>, vector<1x8xf32>
    %215 = vector.broadcast %214 : vector<1x8xf32> to vector<8x8xf32>
    %216 = arith.addf %213, %215 : vector<8x8xf32>
    %cst_99 = arith.constant 0.000000e+00 : f32
    %217 = vector.broadcast %cst_99 : f32 to vector<8x8xf32>
    %218 = arith.maximumf %216, %217 : vector<8x8xf32>
    %c0_100 = arith.constant 0 : index
    %c0_101 = arith.constant 0 : index
    %219 = vector.load %arg14[%c0_100, %c0_101] : memref<8x32xf32, #tpu.memory_space<vmem>>, vector<8x32xf32>
    %cst_102 = arith.constant dense<0.000000e+00> : vector<8x32xf32>
    %220 = tpu.matmul %218, %219, %cst_102 {dimension_numbers = #tpu.dot_dimension_numbers<[1], [0], [0], [1], [0, 0, 1, 1], [], []>} : vector<8x8xf32>, vector<8x32xf32>, vector<8x32xf32> -> vector<8x32xf32>
    %c0_103 = arith.constant 0 : index
    %c0_104 = arith.constant 0 : index
    %221 = vector.load %arg15[%c0_103, %c0_104] : memref<1x32xf32, #tpu.memory_space<vmem>>, vector<1x32xf32>
    %222 = vector.broadcast %221 : vector<1x32xf32> to vector<8x32xf32>
    %223 = arith.addf %220, %222 : vector<8x32xf32>
    %224 = arith.addf %223, %210 : vector<8x32xf32>
    %225 = arith.addf %211, %224 : vector<8x32xf32>
    %cst_105 = arith.constant dense<0.000000e+00> : vector<8xf32>
    %226 = vector.multi_reduction <add>, %225, %cst_105 [1] : vector<8x32xf32> to vector<8xf32>
    %227 = vector.shape_cast %226 : vector<8xf32> to vector<8x1xf32>
    %cst_106 = arith.constant 3.200000e+01 : f32
    %228 = vector.broadcast %cst_106 : f32 to vector<8x1xf32>
    %229 = arith.divf %227, %228 : vector<8x1xf32>
    %230 = vector.broadcast %229 : vector<8x1xf32> to vector<8x32xf32>
    %231 = arith.subf %225, %230 : vector<8x32xf32>
    %232 = arith.mulf %231, %231 : vector<8x32xf32>
    %cst_107 = arith.constant dense<0.000000e+00> : vector<8xf32>
    %233 = vector.multi_reduction <add>, %232, %cst_107 [1] : vector<8x32xf32> to vector<8xf32>
    %234 = vector.shape_cast %233 : vector<8xf32> to vector<8x1xf32>
    %cst_108 = arith.constant 3.200000e+01 : f32
    %235 = vector.broadcast %cst_108 : f32 to vector<8x1xf32>
    %236 = arith.divf %234, %235 : vector<8x1xf32>
    %cst_109 = arith.constant 9.99999974E-6 : f32
    %237 = vector.broadcast %cst_109 : f32 to vector<8x1xf32>
    %238 = arith.addf %236, %237 : vector<8x1xf32>
    %239 = math.sqrt %238 : vector<8x1xf32>
    %240 = vector.broadcast %239 : vector<8x1xf32> to vector<8x32xf32>
    %241 = arith.divf %231, %240 : vector<8x32xf32>
    %c0_110 = arith.constant 0 : index
    %c0_111 = arith.constant 0 : index
    %242 = vector.load %arg22[%c0_110, %c0_111] : memref<1x32xf32, #tpu.memory_space<vmem>>, vector<1x32xf32>
    %243 = vector.broadcast %242 : vector<1x32xf32> to vector<8x32xf32>
    %244 = arith.mulf %241, %243 : vector<8x32xf32>
    %c0_112 = arith.constant 0 : index
    %c0_113 = arith.constant 0 : index
    %245 = vector.load %arg23[%c0_112, %c0_113] : memref<1x32xf32, #tpu.memory_space<vmem>>, vector<1x32xf32>
    %246 = vector.broadcast %245 : vector<1x32xf32> to vector<8x32xf32>
    %247 = arith.addf %244, %246 : vector<8x32xf32>
    %c0_114 = arith.constant 0 : index
    %c0_115 = arith.constant 0 : index
    %248 = vector.load %arg24[%c0_114, %c0_115] : memref<8x32xf32, #tpu.memory_space<vmem>>, vector<8x32xf32>
    tpu.vector_store %arg24[%c0_114, %c0_115], %247 {strides = array<i32>} : memref<8x32xf32, #tpu.memory_space<vmem>>, vector<8x32xf32>,
    return
  }
  func.func @transform_0(%arg0: i32) -> (i32, i32) {
    %c0_i32 = arith.constant 0 : i32
    %c0_i32_0 = arith.constant 0 : i32
    return %arg0, %c0_i32 : i32, i32
  }
  func.func @transform_1(%arg0: i32) -> (i32, i32, i32) {
    %c0_i32 = arith.constant 0 : i32
    %c0_i32_0 = arith.constant 0 : i32
    %c0_i32_1 = arith.constant 0 : i32
    return %arg0, %c0_i32, %c0_i32_0 : i32, i32, i32
  }
  func.func @transform_2(%arg0: i32) -> (i32, i32) {
    %c0_i32 = arith.constant 0 : i32
    %c0_i32_0 = arith.constant 0 : i32
    %c0_i32_1 = arith.constant 0 : i32
    return %c0_i32, %c0_i32_0 : i32, i32
  }
  func.func @transform_3(%arg0: i32) -> (i32, i32) {
    %c0_i32 = arith.constant 0 : i32
    %c0_i32_0 = arith.constant 0 : i32
    %c0_i32_1 = arith.constant 0 : i32
    return %c0_i32, %c0_i32_0 : i32, i32
  }
  func.func @transform_4(%arg0: i32) -> (i32, i32) {
    %c0_i32 = arith.constant 0 : i32
    %c0_i32_0 = arith.constant 0 : i32
    %c0_i32_1 = arith.constant 0 : i32
    return %c0_i32, %c0_i32_0 : i32, i32
  }
  func.func @transform_5(%arg0: i32) -> (i32, i32) {
    %c0_i32 = arith.constant 0 : i32
    %c0_i32_0 = arith.constant 0 : i32
    %c0_i32_1 = arith.constant 0 : i32
    return %c0_i32, %c0_i32_0 : i32, i32
  }
  func.func @transform_6(%arg0: i32) -> (i32, i32) {
    %c0_i32 = arith.constant 0 : i32
    %c0_i32_0 = arith.constant 0 : i32
    %c0_i32_1 = arith.constant 0 : i32
    return %c0_i32, %c0_i32_0 : i32, i32
  }
  func.func @transform_7(%arg0: i32) -> (i32, i32) {
    %c0_i32 = arith.constant 0 : i32
    %c0_i32_0 = arith.constant 0 : i32
    %c0_i32_1 = arith.constant 0 : i32
    return %c0_i32, %c0_i32_0 : i32, i32
  }
  func.func @transform_8(%arg0: i32) -> (i32, i32) {
    %c0_i32 = arith.constant 0 : i32
    %c0_i32_0 = arith.constant 0 : i32
    %c0_i32_1 = arith.constant 0 : i32
    return %c0_i32, %c0_i32_0 : i32, i32
  }
  func.func @transform_9(%arg0: i32) -> (i32, i32) {
    %c0_i32 = arith.constant 0 : i32
    %c0_i32_0 = arith.constant 0 : i32
    %c0_i32_1 = arith.constant 0 : i32
    return %c0_i32, %c0_i32_0 : i32, i32
  }
  func.func @transform_10(%arg0: i32) -> (i32, i32) {
    %c0_i32 = arith.constant 0 : i32
    %c0_i32_0 = arith.constant 0 : i32
    %c0_i32_1 = arith.constant 0 : i32
    return %c0_i32, %c0_i32_0 : i32, i32
  }
  func.func @transform_11(%arg0: i32) -> (i32, i32) {
    %c0_i32 = arith.constant 0 : i32
    %c0_i32_0 = arith.constant 0 : i32
    %c0_i32_1 = arith.constant 0 : i32
    return %c0_i32, %c0_i32_0 : i32, i32
  }
  func.func @transform_12(%arg0: i32) -> (i32, i32) {
    %c0_i32 = arith.constant 0 : i32
    %c0_i32_0 = arith.constant 0 : i32
    %c0_i32_1 = arith.constant 0 : i32
    return %c0_i32, %c0_i32_0 : i32, i32
  }
  func.func @transform_13(%arg0: i32) -> (i32, i32) {
    %c0_i32 = arith.constant 0 : i32
    %c0_i32_0 = arith.constant 0 : i32
    %c0_i32_1 = arith.constant 0 : i32
    return %c0_i32, %c0_i32_0 : i32, i32
  }
  func.func @transform_14(%arg0: i32) -> (i32, i32) {
    %c0_i32 = arith.constant 0 : i32
    %c0_i32_0 = arith.constant 0 : i32
    %c0_i32_1 = arith.constant 0 : i32
    return %c0_i32, %c0_i32_0 : i32, i32
  }
  func.func @transform_15(%arg0: i32) -> (i32, i32) {
    %c0_i32 = arith.constant 0 : i32
    %c0_i32_0 = arith.constant 0 : i32
    %c0_i32_1 = arith.constant 0 : i32
    return %c0_i32, %c0_i32_0 : i32, i32
  }
  func.func @transform_16(%arg0: i32) -> (i32, i32) {
    %c0_i32 = arith.constant 0 : i32
    %c0_i32_0 = arith.constant 0 : i32
    %c0_i32_1 = arith.constant 0 : i32
    return %c0_i32, %c0_i32_0 : i32, i32
  }
  func.func @transform_17(%arg0: i32) -> (i32, i32) {
    %c0_i32 = arith.constant 0 : i32
    %c0_i32_0 = arith.constant 0 : i32
    %c0_i32_1 = arith.constant 0 : i32
    return %c0_i32, %c0_i32_0 : i32, i32
  }
  func.func @transform_18(%arg0: i32) -> (i32, i32) {
    %c0_i32 = arith.constant 0 : i32
    %c0_i32_0 = arith.constant 0 : i32
    %c0_i32_1 = arith.constant 0 : i32
    return %c0_i32, %c0_i32_0 : i32, i32
  }
  func.func @transform_19(%arg0: i32) -> (i32, i32) {
    %c0_i32 = arith.constant 0 : i32
    %c0_i32_0 = arith.constant 0 : i32
    %c0_i32_1 = arith.constant 0 : i32
    return %c0_i32, %c0_i32_0 : i32, i32
  }
  func.func @transform_20(%arg0: i32) -> (i32, i32) {
    %c0_i32 = arith.constant 0 : i32
    %c0_i32_0 = arith.constant 0 : i32
    %c0_i32_1 = arith.constant 0 : i32
    return %c0_i32, %c0_i32_0 : i32, i32
  }
  func.func @transform_21(%arg0: i32) -> (i32, i32) {
    %c0_i32 = arith.constant 0 : i32
    %c0_i32_0 = arith.constant 0 : i32
    %c0_i32_1 = arith.constant 0 : i32
    return %c0_i32, %c0_i32_0 : i32, i32
  }
  func.func @transform_22(%arg0: i32) -> (i32, i32) {
    %c0_i32 = arith.constant 0 : i32
    %c0_i32_0 = arith.constant 0 : i32
    %c0_i32_1 = arith.constant 0 : i32
    return %c0_i32, %c0_i32_0 : i32, i32
  }
  func.func @transform_23(%arg0: i32) -> (i32, i32) {
    %c0_i32 = arith.constant 0 : i32
    %c0_i32_0 = arith.constant 0 : i32
    return %arg0, %c0_i32 : i32, i32
  }
}

</mosaic_0001>

<bundles_post_ra>
// kernel: esm2_forward.3
= control target key start
LH: loop header
LB: loop body
LE: loop exit
PB: predicated region body
PF: predicated region fallthrough
CT: control target
= control target key end

     0   :  { %v563_v3 = vmov 0.0   ;;  %vm82_vm0 = vcmask 130048   ;;  %v564_v29 = vmov 0.0|0.0   ;;  %vm565_vm1 = vmmov 0   ;;  %s661_s1 = inlined_call_operand.vmem [shape: f32[16,1104], index: 1, kind: input, shape index: {}]   ;;  %s662_s0 = inlined_call_operand.vmem [shape: f32[1,16], index: 0, kind: input, shape index: {}]   ;;  %s663_s2 = inlined_call_operand.vmem [shape: f32[1,1104], index: 2, kind: input, shape index: {}]   ;;  %s664_s3 = inlined_call_operand.vmem [shape: f32[1,1104], index: 3, kind: output, shape index: {}]  }
   0x1   :  { %v16_v0 = vld [vmem:[%s661_s1 + $0x8] sm:$0xff]  ;;  %v25_v1 = vld [vmem:[%s661_s1 + $0x50] sm:$0xff]  ;;  %v18_v2 = vld [vmem:[%s661_s1 + $0x18] sm:$0xff]  ;;  %150 = vmatprep.mubr.f32.mxu0 %v563_v3  ;;  %221 = vmatprep.mubr.f32.mxu1 %v563_v3  ;;  %v37_v30 = vlaneseq  ;;  %v566_v36 = vmov 1966171168  }
   0x2   :  { %v540_v4 = vpack.c.bf16 %v25_v1, %v16_v0  ;;  %v27_v5 = vld [vmem:[%s661_s1 + $0x60] sm:$0xff]  ;;  %v24_v7 = vld [vmem:[%s661_s1 + $0x48] sm:$0xff]  ;;  %v17_v10 = vld [vmem:[%s661_s1 + $0x10] sm:$0xff]  ;;  %v454_v37 = vunpack.c.l.s4 %v566_v36 }
   0x3   :  { %v15_v6 = vld [vmem:[%s661_s1] sm:$0xff]  ;;  %v544_v8 = vpack.c.bf16 %v27_v5, %v18_v2  ;;  %v26_v11 = vld [vmem:[%s661_s1 + $0x58] sm:$0xff]  ;;  %v20_v14 = vld [vmem:[%s661_s1 + $0x28] sm:$0xff]  ;;  %v38_v31 = vshrl.u32 %v37_v30, 7  ;;  %vm517_vm2 = vcmp.lt.s32.totalorder %v37_v30, 80 }
   0x4   :  { %v542_v9 = vpack.c.bf16 %v24_v7, %v15_v6  ;;  %v14_v12 = vld [vmem:[%s662_s0] sm:$0x1]  ;;  %541 = vmatprep.subr.bf16.mxu0 %v540_v4  ;;  %v546_v13 = vpack.c.bf16 %v26_v11, %v17_v10  ;;  %v29_v15 = vld [vmem:[%s661_s1 + $0x70] sm:$0xff]  ;;  %v22_v16 = vld [vmem:[%s661_s1 + $0x38] sm:$0xff]  ;;  %v455_v44 = vunpack.c.0.s8 %v454_v37 }
   0x5   :  { %545 = vmatprep.subr.bf16.mxu1 %v544_v8  ;;  %v548_v17 = vpack.c.bf16 %v29_v15, %v20_v14  ;;  %v31_v18 = vld [vmem:[%s661_s1 + $0x80] sm:$0xff]  ;;  %v28_v20 = vld [vmem:[%s661_s1 + $0x68] sm:$0xff]  ;;  %v21_v23 = vld [vmem:[%s661_s1 + $0x30] sm:$0xff]  ;;  %v39_v32 = vsub.s32 0, %v38_v31  ;;  %v47_v34 = vsub.s32 2, %v38_v31  ;;  %v43_v35 = vsub.s32 1, %v38_v31 }
   0x6   :  { %543 = vmatpush1.bf16.msra.mxu0 %v542_v9  ;;  %v19_v19 = vld [vmem:[%s661_s1 + $0x20] sm:$0xff]  ;;  %547 = vmatpush1.bf16.msra.mxu1 %v546_v13  ;;  %v552_v21 = vpack.c.bf16 %v31_v18, %v22_v16  ;;  %v30_v24 = vld [vmem:[%s661_s1 + $0x78] sm:$0xff]  ;;  %v32_v27 = vld [vmem:[%s661_s1 + $0x88] sm:$0xff]  ;;  %v51_v38 = vsub.s32 3, %v38_v31  ;;  %v55_v40 = vsub.s32 4, %v38_v31  ;;  %v63_v41 = vsub.s32 6, %v38_v31 }
   0x7   :  { %v550_v22 = vpack.c.bf16 %v28_v20, %v19_v19  ;;  %v23_v25 = vld [vmem:[%s661_s1 + $0x40] sm:$0xff]  ;;  %549 = vmatprep.subr.bf16.mxu0 %v548_v17  ;;  %v554_v26 = vpack.c.bf16 %v30_v24, %v21_v23  ;;  %v59_v45 = vsub.s32 5, %v38_v31  ;;  %v67_v47 = vsub.s32 7, %v38_v31  ;;  %v524_v7 = vld [vmem:[%s663_s2 + $0x8] ss:$0 sm:$0xff] }
   0x8   :  { %553 = vmatprep.subr.bf16.mxu1 %v552_v21  ;;  %v557_v28 = vpack.c.bf16 %v32_v27, %v23_v25  ;;  %v33_v33 = vld [vmem:[%s663_s2] sm:$0xff]  ;;  %v458_v56 = vsub.s32 %v455_v44, %v38_v31 }
   0x9   :  { %525 = vmatmul.mubr.msk.f32.vlgmr.msra.gmra.mrb[0].mxu0 %vm82_vm0, %v14_v12  ;;  %526 = vmatmul.mubr.msk.f32.vlgmr.msra.gmra.mrb[0].mxu1 %vm82_vm0, %v14_v12  ;;  %v40_v39 = vrot.slane %v33_v33, %v39_v32  ;;  %v48_v42 = vrot.slane %v33_v33, %v47_v34  ;;  %v44_v43 = vrot.slane %v33_v33, %v43_v35 }
   0xa   :  { %551 = vmatpush1.bf16.msra.mxu0 %v550_v22  ;;  %555 = vmatpush1.bf16.msra.mxu1 %v554_v26  ;;  %v52_v46 = vrot.slane %v33_v33, %v51_v38  ;;  %v56_v52 = vrot.slane %v33_v33, %v55_v40  ;;  %v64_v53 = vrot.slane %v33_v33, %v63_v41 }
   0xb   :  { %292 = vmatprep.mubr.f32.mxu0 %v563_v3  ;;  %363 = vmatprep.mubr.f32.mxu1 %v563_v3  ;;  %v60_v58 = vrot.slane %v33_v33, %v59_v45  ;;  %v68_v60 = vrot.slane %v33_v33, %v67_v47 }
   0xc   :  { %556 = vmatprep.subr.bf16.mxu0 %v564_v29 }
   0xd   :  { %527 = vmatmul.mubr.msk.f32.vlgmr.msra.gmra.mrb[2].mxu0 %vm82_vm0, %v14_v12  ;;  %528 = vmatmul.mubr.msk.f32.vlgmr.msra.gmra.mrb[2].mxu1 %vm82_vm0, %v14_v12 }
   0xe   :  { %558 = vmatpush3.bf16.msra.mxu0 %v557_v28  ;;  %537 = vmatprep.mubr.msk.f32.mxu0 %vm565_vm1, %v563_v3 }
  0x11   :  { %538 = vmatmul.mubr.msk.f32.vlgmr.msra.gmra.mrb[4].mxu0 %vm82_vm0, %v14_v12 }
  0xdc   :  { %v152_v48 = vpop.f32.mrb[0].mxu0  ;;  %v223_v50 = vpop.f32.mrb[0].mxu1 }
  0xdd   :  { %v153_v49 = vadd.f32 %v152_v48, %v40_v39  ;;  %v154_v51 = vpop.f32.mrb[1].mxu0  ;;  %v224_v54 = vadd.f32 %v223_v50, %v48_v42  ;;  %v225_v57 = vpop.f32.mrb[1].mxu1 }
  0xde   :  { %v155_v55 = vadd.f32 %v154_v51, %v44_v43  ;;  %v226_v59 = vadd.f32 %v225_v57, %v52_v46 }
  0xe0   :  { %v449_v61 = vcombine.low %v153_v49, %v155_v55  ;;  %v294_v62 = vpop.f32.mrb[2].mxu0  ;;  %v450_v63 = vcombine.low %v224_v54, %v226_v59  ;;  %v365_v1 = vpop.f32.mrb[2].mxu1 }
  0xe1   :  { %v295_v0 = vadd.f32 %v294_v62, %v56_v52  ;;  %v296_v2 = vpop.f32.mrb[3].mxu0  ;;  %v366_v4 = vadd.f32 %v365_v1, %v64_v53  ;;  %v367_v6 = vpop.f32.mrb[3].mxu1 }
  0xe2   :  { %v459_v3 = vrot.slane %v449_v61, %v458_v56  ;;  %v297_v5 = vadd.f32 %v296_v2, %v60_v58  ;;  %v466_v8 = vrot.slane %v450_v63, %v458_v56  ;;  %v368_v9 = vadd.f32 %v367_v6, %v68_v60 }
  0xe4   :  { %v451_v10 = vcombine.low %v295_v0, %v297_v5  ;;  %v436_v11 = vpop.f32.mrb[4].mxu0  ;;  %v481_v12 = vcombine.low %v459_v3, %v466_v8  ;;  %v452_v13 = vcombine.low %v366_v4, %v368_v9 }
  0xe5   :  { %v437_v14 = vadd.f32 %v524_v7, %v436_v11  ;;  %v539_v15 = vpop.f32.mrb[5].mxu0 }
  0xe6   :  { %v473_v16 = vrot.slane %v451_v10, %v458_v56  ;;  %v480_v17 = vrot.slane %v452_v13, %v458_v56  ;;  %v489_v21 = vrot.slane %v481_v12, %v458_v56 }
  0xe7   :  { %v504_v18 = vrot.slane %v437_v14, %v458_v56 }
  0xe8   :  { %v482_v19 = vcombine.low %v473_v16, %v480_v17 }
  0xe9   :  { %v511_v20 = vrot.slane %v504_v18, %v458_v56 }
  0xea   :  { %v496_v22 = vrot.slane %v482_v19, %v458_v56 }
  0xeb   :  { %519 = vst.msk [vmem:[%s664_s3 + $0x8] sm:$0x1] %vm517_vm2, %v511_v20 }
  0xec   :  { %v497_v23 = vcombine.low %v489_v21, %v496_v22 }
  0xee   :  { %514 = vst [vmem:[%s664_s3] sm:$0xff] %v497_v23 }

// kernel: esm2_forward.4
= control target key start
LH: loop header
LB: loop body
LE: loop exit
PB: predicated region body
PF: predicated region fallthrough
CT: control target
= control target key end

     0   :  { %s3412_s0 = inlined_call_operand.vmem [shape: f32[16,32], index: 0, kind: input, shape index: {}]   ;;  %s3413_s1 = inlined_call_operand.vmem [shape: f32[2,1,8], index: 1, kind: input, shape index: {}]   ;;  %s3414_s2 = inlined_call_operand.vmem [shape: f32[8,64], index: 2, kind: input, shape index: {}]   ;;  %s3415_s3 = inlined_call_operand.vmem [shape: f32[8,64], index: 3, kind: input, shape index: {}]   ;;  %s3416_s4 = inlined_call_operand.vmem [shape: f32[64,64], index: 4, kind: input, shape index: {}]   ;;  %s3417_s5 = inlined_call_operand.vmem [shape: f32[1,32], index: 5, kind: input, shape index: {}]   ;;  %s3418_s6 = inlined_call_operand.vmem [shape: f32[1,32], index: 6, kind: input, shape index: {}]   ;;  %s3419_s7 = inlined_call_operand.vmem [shape: f32[32,96], index: 7, kind: input, shape index: {}]   ;;  %s3420_s8 = inlined_call_operand.vmem [shape: f32[1,96], index: 8, kind: input, shape index: {}]   ;;  %s3421_s9 = inlined_call_operand.vmem [shape: f32[32,32], index: 9, kind: input, shape index: {}]   ;;  %s3422_s10 = inlined_call_operand.vmem [shape: f32[1,32], index: 10, kind: input, shape index: {}]   ;;  %s3423_s11 = inlined_call_operand.vmem [shape: f32[32,8], index: 11, kind: input, shape index: {}]   ;;  %s3424_s12 = inlined_call_operand.vmem [shape: f32[1,8], index: 12, kind: input, shape index: {}]   ;;  %s3425_s13 = inlined_call_operand.vmem [shape: f32[8,32], index: 13, kind: input, shape index: {}]   ;;  %s3426_s14 = inlined_call_operand.vmem [shape: f32[1,32], index: 14, kind: input, shape index: {}]   ;;  %s3427_s15 = inlined_call_operand.vmem [shape: f32[1,32], index: 15, kind: input, shape index: {}]   ;;  %s3428_s16 = inlined_call_operand.vmem [shape: f32[1,32], index: 16, kind: input, shape index: {}]   ;;  %s3429_s17 = inlined_call_operand.vmem [shape: f32[32,128], index: 17, kind: input, shape index: {}]   ;;  %s3430_s18 = inlined_call_operand.vmem [shape: f32[1,128], index: 18, kind: input, shape index: {}]   ;;  %s3431_s19 = inlined_call_operand.vmem [shape: f32[128,32], index: 19, kind: input, shape index: {}]   ;;  %s3432_s20 = inlined_call_operand.vmem [shape: f32[1,32], index: 20, kind: input, shape index: {}]   ;;  %s3433_s21 = inlined_call_operand.vmem [shape: f32[1,32], index: 21, kind: input, shape index: {}]   ;;  %s3434_s22 = inlined_call_operand.vmem [shape: f32[1,32], index: 22, kind: input, shape index: {}]   ;;  %s3435_s23 = inlined_call_operand.vmem [shape: f32[16,32], index: 23, kind: output, shape index: {}]  }
   0x1   :  { %3438 = sst [smem:[#allocation2_spill]] %s3412_s0 }
   0x2   :  { %3439 = sst [smem:[#allocation3_spill]] %s3413_s1 }
   0x3   :  { %3440 = sst [smem:[#allocation4_spill]] %s3414_s2 }
   0x4   :  { %3441 = sst [smem:[#allocation5_spill]] %s3415_s3 }
   0x5   :  { %3442 = sst [smem:[#allocation6_spill]] %s3416_s4  ;;  %s3062_s4 = smov 0  }
   0x6   :  { %3443 = sst [smem:[#allocation7_spill]] %s3417_s5 }
   0x7   :  { %3444 = sst [smem:[#allocation8_spill]] %s3418_s6 }
   0x8   :  { %3445 = sst [smem:[#allocation9_spill]] %s3419_s7 }
   0x9 LB: > { %s2525_s30 = sadd.s32 4294967295, %s2926_s4   ;;  %p2529_p0 = scmp.ge.s32.totalorder %s2926_s4, 1  ;;  %s2926_s4 = sphi %s3062_s4, %s33_s4  }
   0xa   : > { %p644_p1 = scmp.lt.s32.totalorder %s2926_s4, 3 }
   0xc   : > { %p645_p2 = pnand %p2529_p0, %p644_p1 }
   0xd   : > { %p709_p3 = scmp.lt.s32.totalorder (!%p645_p2), %s2525_s30, 1  ;;  %vm721_vm0 = vcmask (!%p645_p2), 261120   ;;  %s3446_s25 = sld [smem:[#allocation2_spill]] (!%p645_p2)  ;;  %v2928_v10 = vmov (!%p645_p2), 0.0|0.0   ;;  %vm2929_vm1 = vmmov (!%p645_p2), 0   ;;  %v2930_v13 = vmov (!%p645_p2), 0.0  }
   0xe   : > { %648 = sbr.rel (%p645_p2) target bundleno = 4718 (0x126e), region = 112  ;;  %s3447_s2 = sld [smem:[#allocation9_spill]] (!%p645_p2)  ;;  %2810 = vmatprep.subr.bf16.mxu1 (!%p645_p2), %v2928_v10  ;;  %2650 = vmatprep.mubr.msk.f32.mxu1 (!%p645_p2), %vm2929_vm1, %v2930_v13  ;;  %v2534_v41 = vld [vmem:[%s3420_s8] ss:$0 sm:$0xff] (!%p645_p2)  ;;  %vm853_vm4 = vcmask (!%p645_p2), 523264   ;;  %vm944_vm5 = vcmask (!%p645_p2), 64512  }
   0xf   : > { %2672 = vmatprep.subr.mxu0 (!%p645_p2), %v2930_v13  ;;  %2674 = vmatprep.mubr.msk.f32.mxu0 (!%p645_p2), %vm2929_vm1, %v2930_v13  ;;  %s3448_s24 = sld [smem:[#allocation7_spill]] (!%p645_p2)  ;;  %s3449_s1 = sld [smem:[#allocation6_spill]] (!%p645_p2) }
  0x10   : > { %s3450_s28 = sld [smem:[#allocation8_spill]] (!%p645_p2)  ;;  %s2931_s0 = smov (!%p645_p2), 64  }
  0x11   : > { %s3452_s6 = sld [smem:[#allocation5_spill]] (!%p645_p2)  ;;  %s2932_s27 = smov (!%p645_p2), 88  }
  0x12   : > { %s2933_s7 = smov (!%p645_p2), 96   ;;  %s2938_s26 = smov (!%p645_p2), 48  }
  0x14   : > { %v759_v7 = vld [vmem:[%s3447_s2] sm:$0xff] (!%p645_p2)  ;;  %v760_v8 = vld [vmem:[%s3447_s2 + $0x8] sm:$0xff] (!%p645_p2)  ;;  %v761_v9 = vld [vmem:[%s3447_s2 + $0x10] sm:$0xff] (!%p645_p2) }
  0x15   : > { %s3455_s30 = smov (!%p709_p3, %s2525_s30), 1  ;;  %v2811_v11 = vpack.c.bf16 %v760_v8, %v759_v7  ;;  %v762_v12 = vld [vmem:[%s3447_s2 + $0x18] sm:$0xff]  ;;  %v2532_v24 = vld [vmem:[%s3448_s24] ss:$0 sm:$0xff]  ;;  %v846_v27 = vld [vmem:[%s3449_s1 + $0x8] sm:$0xff]  ;;  %s2935_s24 = smov 56  }
  0x16   : > { %s2530_s21 = sshll.u32 %s3455_s30, 3  ;;  %v2814_v14 = vpack.c.bf16 %v762_v12, %v761_v9  ;;  %v845_v26 = vld [vmem:[%s3449_s1] sm:$0xff]  ;;  %v847_v32 = vld [vmem:[%s3449_s1 + $0x10] sm:$0xff]  ;;  %v848_v33 = vld [vmem:[%s3449_s1 + $0x18] sm:$0xff] }
  0x17   : > { %s712_s5 = scalar_lea.vmem %s3446_s25, %s2530_s21  ;;  %2812 = vmatpush3.bf16.msra.mxu1 %v2811_v11  ;;  %v2533_v28 = vld [vmem:[%s3450_s28] ss:$0 sm:$0xff]  ;;  %v2817_v30 = vpack.c.bf16 %v846_v27, %v845_v26  ;;  %v2820_v34 = vpack.c.bf16 %v848_v33, %v847_v32  ;;  %v850_v36 = vld [vmem:[%s3449_s1 + $0x28] sm:$0xff]  ;;  %v851_v38 = vld [vmem:[%s3449_s1 + $0x30] sm:$0xff]  ;;  %s3451_s25 = sld [smem:[#allocation4_spill]] }
  0x18   : > { %v3078_v0 = vld [vmem:[%s712_s5] sm:$0xff]  ;;  %2813 = vmatprep.subr.bf16.mxu1 %v2928_v10  ;;  %v852_v39 = vld [vmem:[%s3449_s1 + $0x38] sm:$0xff]  ;;  %s2934_s28 = smov 120   ;;  %s2937_s5 = smov 112  }
  0x19   : > { %v722_v1 = vsel %vm721_vm0, %v3078_v0, 0.0  ;;  %v849_v35 = vld [vmem:[%s3449_s1 + $0x20] sm:$0xff]  ;;  %v2826_v40 = vpack.c.bf16 %v852_v39, %v851_v38  ;;  %s719_s3 = scalar_lea.vmem %s3435_s23, %s2530_s21 }
  0x1a   : > { %723 = vadd.xlane.f32.xlu0 %v722_v1  ;;  %v2823_v37 = vpack.c.bf16 %v850_v36, %v849_v35  ;;  %v927_v46 = vld [vmem:[%s3452_s6] sm:$0xff]  ;;  %s2939_s6 = smov 72  }
  0x1b   : > { %2815 = vmatpush3.bf16.msra.mxu1 %v2814_v14 }
  0x1c   : > { %2816 = vmatprep.subr.bf16.mxu1 %v2928_v10 }
  0x1d   : > { %v843_v45 = vld [vmem:[%s3451_s25] sm:$0xff]  ;;  %s2936_s25 = smov 80  }
  0xa7   : > { %v724_v2 = vpop.xlane.xlu0 %723 }
  0xa8   : > { %v726_v3 = vmul.f32 0.03125, %v724_v2 }
  0xaa   : > { %v727_v4 = vsub.f32 %v3078_v0, %v726_v3 }
  0xac   : > { %v728_v5 = vmul.f32 %v727_v4, %v727_v4 }
  0xae   : > { %v729_v6 = vsel %vm721_vm0, %v728_v5, 0.0 }
  0xaf   : > { %730 = vadd.xlane.f32.xlu0 %v729_v6 }
 0x13c   : > { %v731_v15 = vpop.xlane.xlu0 %730 }
 0x13d   : > { %v732_v16 = vmul.f32 0.03125, %v731_v15 }
 0x13f   : > { %v733_v17 = vadd.f32 1e-05, %v732_v16 }
 0x141   : > { %2892 = vrsqrt.f32 %v733_v17  ;;  %vm736_vm2 = vcmp.eq.f32.partialorder %v733_v17, inf  ;;  %v739_v20 = vand.u32 2147483648, %v733_v17  ;;  %vm738_vm3 = vcmp.eq.f32.partialorder %v733_v17, 0.0 }
 0x14b   : > { %v2893_v18 = vpop.eup %2892 }
 0x14c   : > { %v735_v19 = vmul.f32 %v2893_v18, %v733_v17  ;;  %v932_v18 = vld [vmem:[%s3421_s9 + $0x8] sm:$0xff] }
 0x14e   : > { %v737_v21 = vsel %vm736_vm2, %v733_v17, %v735_v19  ;;  %v931_v17 = vld [vmem:[%s3421_s9] sm:$0xff] }
 0x14f   : > { %v740_v22 = vsel %vm738_vm3, %v739_v20, %v737_v21 }
 0x150   : > { %2894 = vrcp.f32 %v740_v22 }
 0x15a   : > { %v2895_v23 = vpop.eup %2894 }
 0x15b   : > { %v742_v25 = vmul.f32 %v2895_v23, %v727_v4 }
 0x15d   : > { %v750_v29 = vmul.f32 %v2532_v24, %v742_v25 }
 0x15f   : > { %v758_v31 = vadd.f32 %v2533_v28, %v750_v29 }
 0x161   : > { %2651 = vmatmul.mubr.msk.f32.vlgmr.msra.gmra.mrb[0].mxu1 %vm721_vm0, %v758_v31 }
 0x162   : > { %2818 = vmatpush3.bf16.msra.mxu1 %v2817_v30  ;;  %2669 = vmatprep.mubr.msk.f32.mxu1 %vm2929_vm1, %v2930_v13 }
 0x163   : > { %2819 = vmatprep.subr.bf16.mxu1 %v2928_v10 }
 0x166   : > { %2821 = vmatpush3.bf16.msra.mxu1 %v2820_v34 }
 0x167   : > { %2822 = vmatprep.subr.bf16.mxu1 %v2928_v10 }
 0x16a   : > { %2824 = vmatpush3.bf16.msra.mxu1 %v2823_v37 }
 0x16b   : > { %2825 = vmatprep.subr.bf16.mxu1 %v2928_v10 }
 0x16e   : > { %2827 = vmatpush3.bf16.msra.mxu1 %v2826_v40 }
 0x16f   : > { %2687 = vmatprep.subr.mxu1 %v2930_v13 }
 0x234   : > { %v839_v42 = vpop.f32.mrb[0].mxu1 }
 0x235   : > { %v3144_v43 = vadd.f32 %v2534_v41, %v839_v42  ;;  %v2652_v44 = vpop.f32.mrb[1].mxu1 }
 0x237   : > { %1025 = vrot.lane.b32.xlu0 %v3144_v43, %s2931_s0  ;;  %2670 = vmatmul.mubr.msk.f32.vlgmr.msra.gmra.mrb[2].mxu1 %vm853_vm4, %v3144_v43  ;;  %v844_v48 = vmul.f32 %v843_v45, %v3144_v43  ;;  %s3453_s0 = sld [smem:[#allocation3_spill]] }
 0x238   : > { %2689 = vmatprep.mubr.msk.f32.mxu1 %vm2929_vm1, %v2930_v13 }
 0x23d   : > { %s715_s22 = scalar_lea.vmem %s3453_s0, %s3455_s30 }
 0x23e   : > { %v3173_v54 = vld [vmem:[%s715_s22] ss:$0 sm:$0xff] }
 0x2a9   : > { %v1026_v53 = vpop.permute.xlu0 %1025 }
 0x30a   : > { %v923_v47 = vpop.f32.mrb[2].mxu1 }
 0x30b   : > { %v928_v49 = vmul.f32 %v927_v46, %v923_v47  ;;  %v2671_v50 = vpop.f32.mrb[3].mxu1  ;;  %v933_v47 = vld [vmem:[%s3421_s9 + $0x10] sm:$0xff] }
 0x30d   : > { %v3157_v51 = vadd.f32 %v928_v49, %v844_v48 }
 0x30f   : > { %1108 = vrot.lane.b32.xlu0 %v3157_v51, %s2932_s27  ;;  %942 = vrot.lane.b32.xlu1 %v3157_v51, %s2933_s7  ;;  %s2940_s27 = smov 104  }
 0x313   : > { %1106 = vrot.lane.b32.xlu0 %v3157_v51, %s2934_s28 }
 0x381   : > { %v943_v52 = vpop.permute.xlu1 %942  ;;  %v1109_v63 = vpop.permute.xlu0 %1108 }
 0x382   : > { %2673 = vmatpush3.xpose.msk.msra.mxu0 %vm944_vm5, %v943_v52 }
 0x383   : > { %2677 = vmatprep.subr.mxu0 %v2930_v13 }
 0x385   : > { %2675 = vmatmul.mubr.msk.f32.vlgmr.msra.gmra.mrb[0].mxu0 %vm944_vm5, %v3157_v51  ;;  %v1107_v2 = vpop.permute.xlu0 %1106 }
 0x386   : > { %2678 = vmatpush3.msra.mxu0 %v1026_v53  ;;  %2679 = vmatprep.mubr.msk.f32.mxu0 %vm2929_vm1, %v2930_v13 }
 0x387   : > { %2682 = vmatprep.subr.mxu0 %v2930_v13 }
 0x458   : > { %v1015_v55 = vpop.f32.mrb[0].mxu0 }
 0x459   : > { %v1016_v56 = vadd.f32 %v3173_v54, %v1015_v55  ;;  %v2676_v57 = vpop.f32.mrb[1].mxu0 }
 0x45b   : > { %v1019_v58 = vsel %vm944_vm5, %v1016_v56, -inf }
 0x45c   : > { %1020 = vmax.xlane.f32.xlu1 %v1019_v58 }
 0x46d   : > { %1190 = vrot.lane.b32.xlu1 %v3144_v43, %s2935_s24  ;;  %s2941_s24 = smov 40  }
 0x4e9   : > { %v1021_v59 = vpop.xlane.xlu1 %1020 }
 0x4ea   : > { %v1022_v60 = vsub.f32 %v1016_v56, %v1021_v59 }
 0x4ec   : > { %v1023_v61 = vmul.f32 1.442695, %v1022_v60 }
 0x4ed   : > { %v1191_v62 = vpop.permute.xlu1 %1190 }
 0x4ee   : > { %2896 = vpow2.f32 %v1023_v61  ;;  %2688 = vmatpush3.msra.mxu1 %v1191_v62 }
 0x4ef   : > { %2697 = vmatprep.subr.mxu1 %v2930_v13 }
 0x4f8   : > { %v2897_v1 = vpop.eup %2896 }
 0x4f9   : > { %2680 = vmatmul.mubr.msk.f32.vlgmr.msra.gmra.mrb[2].mxu0 %vm944_vm5, %v2897_v1  ;;  %v1101_v16 = vsel %vm944_vm5, %v2897_v1, 0.0 }
 0x4fa   : > { %2683 = vmatpush3.xpose.msk.msra.mxu0 %vm944_vm5, %v1109_v63  ;;  %2684 = vmatprep.mubr.msk.f32.mxu0 %vm2929_vm1, %v2930_v13 }
 0x4fb   : > { %2692 = vmatprep.subr.mxu0 %v2930_v13 }
 0x4fd   : > { %2685 = vmatmul.mubr.msk.f32.vlgmr.msra.gmra.mrb[4].mxu0 %vm944_vm5, %v1107_v2 }
 0x4fe   : > { %2694 = vmatprep.mubr.msk.f32.mxu0 %vm2929_vm1, %v2930_v13  ;;  %2693 = vmatpush3.msra.mxu0 %v932_v18 }
 0x4ff   : > { %2702 = vmatprep.subr.mxu0 %v2930_v13 }
 0x5cc   : > { %v1097_v3 = vpop.f32.mrb[2].mxu0 }
 0x5cd   : > { %v2681_v4 = vpop.f32.mrb[3].mxu0 }
 0x5ce   : > { %v1905_v4 = vld [vmem:[%s3423_s11 + $0x8] sm:$0xff] }
 0x5d0   : > { %v1180_v5 = vpop.f32.mrb[4].mxu0 }
 0x5d1   : > { %v1181_v6 = vadd.f32 %v3173_v54, %v1180_v5  ;;  %v2686_v7 = vpop.f32.mrb[5].mxu0 }
 0x5d3   : > { %v1184_v8 = vsel %vm944_vm5, %v1181_v6, -inf }
 0x5d4   : > { %1185 = vmax.xlane.f32.xlu0 %v1184_v8 }
 0x5ea   : > { %1419 = vrot.lane.b32.xlu0 %v3157_v51, %s2936_s25 }
 0x5ee   : > { %1417 = vrot.lane.b32.xlu0 %v3157_v51, %s2937_s5 }
 0x661   : > { %v1186_v9 = vpop.xlane.xlu0 %1185 }
 0x662   : > { %v1187_v11 = vsub.f32 %v1181_v6, %v1186_v9 }
 0x664   : > { %v1188_v12 = vmul.f32 1.442695, %v1187_v11 }
 0x665   : > { %v1420_v25 = vpop.permute.xlu0 %1419 }
 0x666   : > { %2898 = vpow2.f32 %v1188_v12  ;;  %v1906_v12 = vld [vmem:[%s3423_s11 + $0x10] sm:$0xff] }
 0x669   : > { %v1418_v29 = vpop.permute.xlu0 %1417 }
 0x670   : > { %v2899_v14 = vpop.eup %2898 }
 0x671   : > { %2690 = vmatmul.mubr.msk.f32.vlgmr.msra.gmra.mrb[4].mxu1 %vm944_vm5, %v2899_v14  ;;  %v1266_v15 = vsel %vm944_vm5, %v2899_v14, 0.0  ;;  %v1907_v14 = vld [vmem:[%s3423_s11 + $0x18] sm:$0xff] }
 0x672   : > { %1267 = vadd.xlane.f32.xlu1 %v1266_v15  ;;  %2699 = vmatprep.mubr.msk.f32.mxu1 %vm2929_vm1, %v2930_v13  ;;  %v3268_v15 = vpack.c.bf16 %v1907_v14, %v1906_v12  ;;  %v2229_v12 = vld [vmem:[%s3431_s19 + $0x50] sm:$0xff]  ;;  %v2230_v14 = vld [vmem:[%s3431_s19 + $0x58] sm:$0xff] }
 0x673   : > { %2698 = vmatpush3.msra.mxu1 %v931_v17  ;;  %v2554_v17 = vld [vmem:[%s3422_s10] ss:$0 sm:$0xff] }
 0x674   : > { %2707 = vmatprep.subr.mxu1 %v2930_v13 }
 0x676   : > { %1102 = vadd.xlane.f32.xlu1 %v1101_v16 }
 0x687   : > { %1501 = vrot.lane.b32.xlu1 %v3144_v43, %s2938_s26 }
 0x68b   : > { %1658 = vrot.lane.b32.xlu1 %v3157_v51, %s2939_s6 }
 0x68f   : > { %1656 = vrot.lane.b32.xlu1 %v3157_v51, %s2940_s27 }
 0x6ff   : > { %v1268_v19 = vpop.xlane.xlu1 %1267 }
 0x703   : > { %v1103_v20 = vpop.xlane.xlu1 %1102 }
 0x704   : > { %2900 = vrcp.f32 %v1103_v20 }
 0x705   : > { %2902 = vrcp.f32 %v1268_v19 }
 0x707   : > { %v1502_v23 = vpop.permute.xlu1 %1501 }
 0x70b   : > { %v1659_v42 = vpop.permute.xlu1 %1658 }
 0x70e   : > { %v2901_v21 = vpop.eup %2900 }
 0x70f   : > { %v1105_v22 = vmul.f32 %v2901_v21, %v1097_v3  ;;  %v2903_v24 = vpop.eup %2902  ;;  %v1657_v46 = vpop.permute.xlu1 %1656  ;;  %v1904_v3 = vld [vmem:[%s3423_s11] sm:$0xff] }
 0x710   : > { %v3255_v5 = vpack.c.bf16 %v1905_v4, %v1904_v3  ;;  %v3281_v21 = vld [vmem:[%s3425_s13] sm:$0xff]  ;;  %v2224_v3 = vld [vmem:[%s3431_s19 + $0x28] sm:$0xff] }
 0x711   : > { %2700 = vmatmul.mubr.msk.f32.vlgmr.msra.gmra.mrb[6].mxu1 %vm944_vm5, %v1105_v22  ;;  %v3288_v22 = vld [vmem:[%s3424_s12] ss:$0 sm:$0xff] }
 0x712   : > { %2708 = vmatpush3.msra.mxu1 %v1502_v23  ;;  %2709 = vmatprep.mubr.msk.f32.mxu1 %vm2929_vm1, %v2930_v13 }
 0x713   : > { %2717 = vmatprep.subr.mxu1 %v2930_v13 }
 0x744   : > { %v1262_v26 = vpop.f32.mrb[4].mxu1 }
 0x745   : > { %v1270_v27 = vmul.f32 %v2903_v24, %v1262_v26  ;;  %v2691_v28 = vpop.f32.mrb[5].mxu1 }
 0x747   : > { %2695 = vmatmul.mubr.msk.f32.vlgmr.msra.gmra.mrb[6].mxu0 %vm944_vm5, %v1270_v27  ;;  %v3297_v27 = vld [vmem:[%s3426_s14] ss:$0 sm:$0xff] }
 0x748   : > { %2703 = vmatpush3.xpose.msk.msra.mxu0 %vm944_vm5, %v1420_v25  ;;  %2704 = vmatprep.mubr.msk.f32.mxu0 %vm2929_vm1, %v2930_v13 }
 0x749   : > { %2712 = vmatprep.subr.mxu0 %v2930_v13 }
 0x74b   : > { %2705 = vmatmul.mubr.msk.f32.vlgmr.msra.gmra.mrb[8].mxu0 %vm944_vm5, %v1418_v29 }
 0x74c   : > { %2714 = vmatprep.mubr.msk.f32.mxu0 %vm2929_vm1, %v2930_v13  ;;  %2713 = vmatpush3.msra.mxu0 %v933_v47 }
 0x74d   : > { %2722 = vmatprep.subr.mxu0 %v2930_v13 }
 0x7e4   : > { %v1413_v30 = vpop.f32.mrb[6].mxu1 }
 0x7e5   : > { %v2701_v31 = vpop.f32.mrb[7].mxu1 }
 0x81a   : > { %v1340_v32 = vpop.f32.mrb[6].mxu0 }
 0x81b   : > { %v1414_v33 = vadd.f32 %v1413_v30, %v1340_v32  ;;  %v2696_v34 = vpop.f32.mrb[7].mxu0 }
 0x81e   : > { %v1491_v35 = vpop.f32.mrb[8].mxu0 }
 0x81f   : > { %v1492_v36 = vadd.f32 %v3173_v54, %v1491_v35  ;;  %v2706_v37 = vpop.f32.mrb[9].mxu0 }
 0x821   : > { %v1495_v38 = vsel %vm944_vm5, %v1492_v36, -inf }
 0x822   : > { %1496 = vmax.xlane.f32.xlu0 %v1495_v38 }
 0x8af   : > { %v1497_v39 = vpop.xlane.xlu0 %1496 }
 0x8b0   : > { %v1498_v40 = vsub.f32 %v1492_v36, %v1497_v39 }
 0x8b2   : > { %v1499_v41 = vmul.f32 1.442695, %v1498_v40  ;;  %v2108_v40 = vld [vmem:[%s3429_s17] sm:$0xff] }
 0x8b4   : > { %2904 = vpow2.f32 %v1499_v41  ;;  %v2110_v41 = vld [vmem:[%s3429_s17 + $0x10] sm:$0xff] }
 0x8be   : > { %v2905_v44 = vpop.eup %2904 }
 0x8bf   : > { %2710 = vmatmul.mubr.msk.f32.vlgmr.msra.gmra.mrb[8].mxu1 %vm944_vm5, %v2905_v44  ;;  %v1577_v45 = vsel %vm944_vm5, %v2905_v44, 0.0  ;;  %v2111_v44 = vld [vmem:[%s3429_s17 + $0x18] sm:$0xff] }
 0x8c0   : > { %2718 = vmatpush3.xpose.msk.msra.mxu1 %vm944_vm5, %v1659_v42  ;;  %1578 = vadd.xlane.f32.xlu1 %v1577_v45  ;;  %v2838_v45 = vpack.c.bf16 %v2111_v44, %v2110_v41 }
 0x8c1   : > { %2719 = vmatprep.mubr.msk.f32.mxu1 %vm2929_vm1, %v2930_v13  ;;  %2727 = vmatprep.subr.mxu1 %v2930_v13 }
 0x8c3   : > { %2720 = vmatmul.mubr.msk.f32.vlgmr.msra.gmra.mrb[10].mxu1 %vm944_vm5, %v1657_v46 }
 0x8c4   : > { %2729 = vmatprep.mubr.msk.f32.mxu1 %vm2929_vm1, %v2930_v13 }
 0x94d   : > { %v1579_v48 = vpop.xlane.xlu1 %1578 }
 0x94e   : > { %2906 = vrcp.f32 %v1579_v48 }
 0x958   : > { %v2907_v49 = vpop.eup %2906 }
 0x992   : > { %v1573_v50 = vpop.f32.mrb[8].mxu1 }
 0x993   : > { %v1581_v51 = vmul.f32 %v2907_v49, %v1573_v50  ;;  %v2711_v52 = vpop.f32.mrb[9].mxu1 }
 0x995   : > { %2715 = vmatmul.mubr.msk.f32.vlgmr.msra.gmra.mrb[10].mxu0 %vm944_vm5, %v1581_v51 }
 0x996   : > { %v1730_v53 = vpop.f32.mrb[10].mxu1  ;;  %2724 = vmatprep.mubr.msk.f32.mxu0 %vm2929_vm1, %v2930_v13 }
 0x997   : > { %v1731_v55 = vadd.f32 %v3173_v54, %v1730_v53  ;;  %v2721_v56 = vpop.f32.mrb[11].mxu1 }
 0x998   : > { %v2559_v56 = vld [vmem:[%s3427_s15] ss:$0 sm:$0xff] }
 0x999   : > { %v1734_v57 = vsel %vm944_vm5, %v1731_v55, -inf }
 0x99a   : > { %1735 = vmax.xlane.f32.xlu0 %v1734_v57 }
 0x9b0   : > { %1740 = vrot.lane.b32.xlu0 %v3144_v43, %s2941_s24  ;;  %v934_v43 = vld [vmem:[%s3421_s9 + $0x18] sm:$0xff] }
 0x9b1   : > { %2728 = vmatpush3.msra.mxu1 %v934_v43  ;;  %v2221_v43 = vld [vmem:[%s3431_s19 + $0x10] sm:$0xff] }
 0x9b2   : > { %2743 = vmatprep.subr.mxu1 %v2930_v13 }
 0xa27   : > { %v1736_v58 = vpop.xlane.xlu0 %1735 }
 0xa28   : > { %v1737_v59 = vsub.f32 %v1731_v55, %v1736_v58  ;;  %v2560_v58 = vld [vmem:[%s3428_s16] ss:$0 sm:$0xff] }
 0xa2a   : > { %v1738_v60 = vmul.f32 1.442695, %v1737_v59 }
 0xa2b   : > { %v1741_v61 = vpop.permute.xlu0 %1740 }
 0xa2c   : > { %2908 = vpow2.f32 %v1738_v60  ;;  %2723 = vmatpush3.msra.mxu0 %v1741_v61  ;;  %v2219_v61 = vld [vmem:[%s3431_s19] sm:$0xff] }
 0xa2d   : > { %2828 = vmatprep.subr.bf16.mxu0 %v2928_v10 }
 0xa36   : > { %v2909_v62 = vpop.eup %2908 }
 0xa37   : > { %2725 = vmatmul.mubr.msk.f32.vlgmr.msra.gmra.mrb[12].mxu0 %vm944_vm5, %v2909_v62  ;;  %v1816_v54 = vsel %vm944_vm5, %v2909_v62, 0.0  ;;  %v2220_v62 = vld [vmem:[%s3431_s19 + $0x8] sm:$0xff] }
 0xa38   : > { %1817 = vadd.xlane.f32.xlu0 %v1816_v54  ;;  %2740 = vmatprep.mubr.msk.f32.mxu0 %vm2929_vm1, %v2930_v13  ;;  %v2841_v54 = vpack.c.bf16 %v2220_v62, %v2219_v61 }
 0xa39   : > { %2830 = vmatpush3.bf16.msra.mxu0 %v3255_v5 }
 0xa3a   : > { %2831 = vmatprep.subr.bf16.mxu0 %v2928_v10 }
 0xa3d   : > { %2833 = vmatpush3.bf16.msra.mxu0 %v3268_v15 }
 0xa3e   : > { %2840 = vmatprep.subr.bf16.mxu0 %v2928_v10 }
 0xa68   : > { %v1651_v63 = vpop.f32.mrb[10].mxu0 }
 0xa69   : > { %v1655_v1 = vadd.f32 %v1651_v63, %v1414_v33  ;;  %v2716_v2 = vpop.f32.mrb[11].mxu0  ;;  %v2222_v63 = vld [vmem:[%s3431_s19 + $0x18] sm:$0xff] }
 0xa6a   : > { %v2223_v2 = vld [vmem:[%s3431_s19 + $0x20] sm:$0xff] }
 0xa6b   : > { %v2847_v4 = vpack.c.bf16 %v2224_v3, %v2223_v2 }
 0xac5   : > { %v1818_v6 = vpop.xlane.xlu0 %1817 }
 0xac6   : > { %2910 = vrcp.f32 %v1818_v6  ;;  %v2226_v6 = vld [vmem:[%s3431_s19 + $0x38] sm:$0xff] }
 0xad0   : > { %v2911_v7 = vpop.eup %2910 }
 0xb0a   : > { %v1812_v8 = vpop.f32.mrb[12].mxu0 }
 0xb0b   : > { %v1820_v9 = vmul.f32 %v2911_v7, %v1812_v8  ;;  %v2726_v11 = vpop.f32.mrb[13].mxu0  ;;  %v2227_v8 = vld [vmem:[%s3431_s19 + $0x40] sm:$0xff] }
 0xb0d   : > { %2730 = vmatmul.mubr.msk.f32.vlgmr.msra.gmra.mrb[12].mxu1 %vm944_vm5, %v1820_v9  ;;  %v2228_v9 = vld [vmem:[%s3431_s19 + $0x48] sm:$0xff] }
 0xb0e   : > { %2745 = vmatprep.mubr.msk.f32.mxu1 %vm2929_vm1, %v2930_v13  ;;  %2744 = vmatpush3.msra.mxu1 %v3281_v21  ;;  %v2853_v11 = vpack.c.bf16 %v2228_v9, %v2227_v8 }
 0xb0f   : > { %2834 = vmatprep.subr.bf16.mxu1 %v2928_v10 }
 0xbe0   : > { %v1890_v16 = vpop.f32.mrb[12].mxu1 }
 0xbe1   : > { %v1894_v18 = vadd.f32 %v1890_v16, %v1655_v1  ;;  %v2731_v19 = vpop.f32.mrb[13].mxu1  ;;  %v2844_v1 = vpack.c.bf16 %v2222_v63, %v2221_v43  ;;  %v2231_v16 = vld [vmem:[%s3431_s19 + $0x60] sm:$0xff] }
 0xbe2   : > { %v2233_v19 = vld [vmem:[%s3431_s19 + $0x70] sm:$0xff] }
 0xbe3   : > { %v1902_v20 = vadd.f32 %v2554_v17, %v1894_v18  ;;  %v2232_v17 = vld [vmem:[%s3431_s19 + $0x68] sm:$0xff] }
 0xbe4   : > { %v2859_v18 = vpack.c.bf16 %v2232_v17, %v2231_v16 }
 0xbe5   : > { %2741 = vmatmul.mubr.msk.f32.vlgmr.msra.gmra.mrb[14].mxu0 %vm721_vm0, %v1902_v20  ;;  %v1903_v31 = vadd.f32 %v1902_v20, %v3078_v0  ;;  %v2109_v0 = vld [vmem:[%s3429_s17 + $0x8] sm:$0xff] }
 0xbe6   : > { %2791 = vmatprep.mubr.msk.f32.mxu0 %vm2929_vm1, %v2930_v13  ;;  %v2835_v42 = vpack.c.bf16 %v2109_v0, %v2108_v40  ;;  %2842 = vmatpush3.bf16.msra.mxu0 %v2841_v54 }
 0xbe7   : > { %2843 = vmatprep.subr.bf16.mxu0 %v2928_v10 }
 0xbea   : > { %2845 = vmatpush3.bf16.msra.mxu0 %v2844_v1 }
 0xbeb   : > { %2846 = vmatprep.subr.bf16.mxu0 %v2928_v10 }
 0xbee   : > { %2848 = vmatpush3.bf16.msra.mxu0 %v2847_v4 }
 0xbef   : > { %2849 = vmatprep.subr.bf16.mxu0 %v2928_v10 }
 0xcb8   : > { %v1984_v23 = vpop.f32.mrb[14].mxu0 }
 0xcb9   : > { %v1985_v24 = vadd.f32 %v3288_v22, %v1984_v23  ;;  %v2742_v25 = vpop.f32.mrb[15].mxu0 }
 0xcbb   : > { %v1988_v26 = vmax.f32 %v1985_v24, 0.0  ;;  %v2561_v24 = vld [vmem:[%s3430_s18] ss:$0 sm:$0xff] }
 0xcbd   : > { %2746 = vmatmul.mubr.msk.f32.vlgmr.msra.gmra.mrb[14].mxu1 %vm944_vm5, %v1988_v26 }
 0xcbe   : > { %2756 = vmatprep.mubr.msk.f32.mxu1 %vm2929_vm1, %v2930_v13  ;;  %2836 = vmatpush3.bf16.msra.mxu1 %v2835_v42 }
 0xcbf   : > { %2837 = vmatprep.subr.bf16.mxu1 %v2928_v10 }
 0xcc2   : > { %2839 = vmatpush3.bf16.msra.mxu1 %v2838_v45 }
 0xcc3   : > { %2864 = vmatprep.subr.bf16.mxu1 %v2928_v10 }
 0xd90   : > { %v2066_v28 = vpop.f32.mrb[14].mxu1 }
 0xd91   : > { %v2067_v29 = vadd.f32 %v3297_v27, %v2066_v28  ;;  %v2747_v30 = vpop.f32.mrb[15].mxu1 }
 0xd93   : > { %v2070_v32 = vadd.f32 %v2067_v29, %v1902_v20  ;;  %v2234_v20 = vld [vmem:[%s3431_s19 + $0x78] sm:$0xff] }
 0xd94   : > { %v2862_v23 = vpack.c.bf16 %v2234_v20, %v2233_v19 }
 0xd95   : > { %v3301_v33 = vadd.f32 %v2070_v32, %v1903_v31 }
 0xd97   : > { %v2072_v34 = vsel %vm721_vm0, %v3301_v33, 0.0 }
 0xd98   : > { %2073 = vadd.xlane.f32.xlu1 %v2072_v34 }
 0xe25   : > { %v2074_v35 = vpop.xlane.xlu1 %2073 }
 0xe26   : > { %v2075_v36 = vmul.f32 0.03125, %v2074_v35 }
 0xe28   : > { %v2076_v37 = vsub.f32 %v3301_v33, %v2075_v36 }
 0xe2a   : > { %v2077_v38 = vmul.f32 %v2076_v37, %v2076_v37 }
 0xe2c   : > { %v2078_v39 = vsel %vm721_vm0, %v2077_v38, 0.0 }
 0xe2d   : > { %2079 = vadd.xlane.f32.xlu1 %v2078_v39 }
 0xeba   : > { %v2080_v46 = vpop.xlane.xlu1 %2079 }
 0xebb   : > { %v2081_v47 = vmul.f32 0.03125, %v2080_v46 }
 0xebd   : > { %v2082_v48 = vadd.f32 1e-05, %v2081_v47 }
 0xebf   : > { %2912 = vrsqrt.f32 %v2082_v48  ;;  %vm2085_vm6 = vcmp.eq.f32.partialorder %v2082_v48, inf  ;;  %v2088_v51 = vand.u32 2147483648, %v2082_v48  ;;  %vm2087_vm7 = vcmp.eq.f32.partialorder %v2082_v48, 0.0 }
 0xec9   : > { %v2913_v49 = vpop.eup %2912 }
 0xeca   : > { %v2084_v50 = vmul.f32 %v2913_v49, %v2082_v48 }
 0xecc   : > { %v2086_v52 = vsel %vm2085_vm6, %v2082_v48, %v2084_v50 }
 0xecd   : > { %v2089_v53 = vsel %vm2087_vm7, %v2088_v51, %v2086_v52 }
 0xece   : > { %2914 = vrcp.f32 %v2089_v53 }
 0xed8   : > { %v2915_v55 = vpop.eup %2914 }
 0xed9   : > { %v2091_v57 = vmul.f32 %v2915_v55, %v2076_v37  ;;  %v2563_v55 = vld [vmem:[%s3432_s20] ss:$0 sm:$0xff] }
 0xedb   : > { %v2099_v59 = vmul.f32 %v2559_v56, %v2091_v57 }
 0xedd   : > { %v2107_v60 = vadd.f32 %v2560_v58, %v2099_v59 }
 0xedf   : > { %2757 = vmatmul.mubr.msk.f32.vlgmr.msra.gmra.mrb[16].mxu1 %vm721_vm0, %v2107_v60 }
 0xee0   : > { %2866 = vmatpush3.bf16.msra.mxu1 %v3255_v5  ;;  %2802 = vmatprep.mubr.msk.f32.mxu1 %vm2929_vm1, %v2930_v13  ;;  %v2225_v5 = vld [vmem:[%s3431_s19 + $0x30] sm:$0xff] }
 0xee1   : > { %2867 = vmatprep.subr.bf16.mxu1 %v2928_v10  ;;  %v2850_v7 = vpack.c.bf16 %v2226_v6, %v2225_v5 }
 0xee3   : > { %2851 = vmatpush3.bf16.msra.mxu0 %v2850_v7 }
 0xee4   : > { %2869 = vmatpush3.bf16.msra.mxu1 %v3268_v15  ;;  %2852 = vmatprep.subr.bf16.mxu0 %v2928_v10  ;;  %v2856_v15 = vpack.c.bf16 %v2230_v14, %v2229_v12 }
 0xee5   : > { %2805 = vmatprep.subr.mxu1 %v2930_v13 }
 0xee7   : > { %2854 = vmatpush3.bf16.msra.mxu0 %v2853_v11 }
 0xee8   : > { %2855 = vmatprep.subr.bf16.mxu0 %v2928_v10 }
 0xeeb   : > { %2857 = vmatpush3.bf16.msra.mxu0 %v2856_v15 }
 0xeec   : > { %2858 = vmatprep.subr.bf16.mxu0 %v2928_v10 }
 0xeef   : > { %2860 = vmatpush3.bf16.msra.mxu0 %v2859_v18 }
 0xef0   : > { %2861 = vmatprep.subr.bf16.mxu0 %v2928_v10 }
 0xef3   : > { %2863 = vmatpush3.bf16.msra.mxu0 %v2862_v23 }
 0xfb2   : > { %v2188_v25 = vpop.f32.mrb[16].mxu1 }
 0xfb3   : > { %v2189_v26 = vadd.f32 %v2561_v24, %v2188_v25  ;;  %v2758_v28 = vpop.f32.mrb[17].mxu1 }
 0xfb5   : > { %v2193_v29 = vmul.f32 0.70710677, %v2189_v26  ;;  %v2192_v51 = vmul.f32 0.5, %v2189_v26 }
 0xfb7   : > { %v2194_v30 = vand.u32 2147483647, %v2193_v29  ;;  %vm2214_vm8 = vcmp.lt.f32.partialorder %v2193_v29, 0.0 }
 0xfb9   : > { %v2195_v10 = vmul.f32 0.3275911, %v2194_v30  ;;  %v2208_v32 = vsub.f32 0.0, %v2194_v30 }
 0xfbb   : > { %v2196_v31 = vadd.f32 1.0, %v2195_v10  ;;  %v2209_v35 = vmul.f32 %v2208_v32, %v2194_v30 }
 0xfbd   : > { %2916 = vrcp.f32 %v2196_v31  ;;  %v2210_v38 = vmul.f32 1.442695, %v2209_v35 }
 0xfbf   : > { %2918 = vpow2.f32 %v2210_v38 }
 0xfc7   : > { %v2917_v34 = vpop.eup %2916 }
 0xfc8   : > { %v2199_v36 = vmul.f32 1.0614054, %v2917_v34 }
 0xfc9   : > { %v2919_v46 = vpop.eup %2918 }
 0xfca   : > { %v2200_v37 = vadd.f32 -1.4531521, %v2199_v36 }
 0xfcc   : > { %v2201_v39 = vmul.f32 %v2917_v34, %v2200_v37 }
 0xfce   : > { %v2202_v40 = vadd.f32 1.4214138, %v2201_v39 }
 0xfd0   : > { %v2203_v0 = vmul.f32 %v2917_v34, %v2202_v40 }
 0xfd2   : > { %v2204_v41 = vadd.f32 -0.28449672, %v2203_v0 }
 0xfd4   : > { %v2205_v42 = vmul.f32 %v2917_v34, %v2204_v41 }
 0xfd6   : > { %v2206_v44 = vadd.f32 0.2548296, %v2205_v42 }
 0xfd8   : > { %v2207_v45 = vmul.f32 %v2917_v34, %v2206_v44 }
 0xfda   : > { %v2212_v47 = vmul.f32 %v2919_v46, %v2207_v45 }
 0xfdc   : > { %v2213_v48 = vsub.f32 1.0, %v2212_v47 }
 0xfde   : > { %v2215_v49 = vsub.f32 0.0, %v2213_v48 }
 0xfe0   : > { %v2216_v50 = vsel %vm2214_vm8, %v2215_v49, %v2213_v48 }
 0xfe1   : > { %v2217_v52 = vadd.f32 1.0, %v2216_v50 }
 0xfe3   : > { %v2218_v53 = vmul.f32 %v2217_v52, %v2192_v51 }
 0xfe5   : > { %2792 = vmatmul.mubr.f32.vlgmr.msra.gmra.mrb[16].mxu0 %v2218_v53 }
0x10b8   : > { %v2308_v56 = vpop.f32.mrb[16].mxu0 }
0x10b9   : > { %v2309_v57 = vadd.f32 %v2563_v55, %v2308_v56  ;;  %v2793_v58 = vpop.f32.mrb[17].mxu0 }
0x10bb   : > { %2803 = vmatmul.mubr.msk.f32.vlgmr.msra.gmra.mrb[18].mxu1 %vm721_vm0, %v2309_v57  ;;  %v2312_v1 = vadd.f32 %v2309_v57, %v3301_v33 }
0x10bc   : > { %2806 = vmatpush3.msra.mxu1 %v3281_v21  ;;  %2807 = vmatprep.mubr.msk.f32.mxu1 %vm2929_vm1, %v2930_v13 }
0x118e   : > { %v2382_v59 = vpop.f32.mrb[18].mxu1 }
0x118f   : > { %v2383_v60 = vadd.f32 %v3288_v22, %v2382_v59  ;;  %v2804_v61 = vpop.f32.mrb[19].mxu1 }
0x1191   : > { %v2386_v62 = vmax.f32 %v2383_v60, 0.0 }
0x1193   : > { %2808 = vmatmul.mubr.msk.f32.vlgmr.msra.gmra.mrb[20].mxu1 %vm944_vm5, %v2386_v62 }
0x1266   : > { %v2456_v54 = vpop.f32.mrb[20].mxu1 }
0x1267   : > { %v2457_v43 = vadd.f32 %v3297_v27, %v2456_v54  ;;  %v2809_v63 = vpop.f32.mrb[21].mxu1 }
0x1269   : > { %v2460_v2 = vadd.f32 %v2457_v43, %v2309_v57 }
0x126b   : > { %v2461_v13 = vadd.f32 %v2460_v2, %v2312_v1 }
0x126d   : > { %2462 = vst.msk [vmem:[%s719_s3] sm:$0xff] %vm721_vm0, %v2461_v13 }
0x126e PF: > { %s33_s4 = sadd.s32 1, %s2926_s4  }
0x126f   : > { %p30_p4 = scmp.ge.s32.totalorder %s33_s4, 4  }
0x1271   :  { %32 = sbr.rel (!%p30_p4) target bundleno = 9 (0x9), region = 145 }

// kernel: esm2_forward.5
= control target key start
LH: loop header
LB: loop body
LE: loop exit
PB: predicated region body
PF: predicated region fallthrough
CT: control target
= control target key end

     0   :  { %s3650_s0 = inlined_call_operand.vmem [shape: f32[16,32], index: 0, kind: input, shape index: {}]   ;;  %s3651_s1 = inlined_call_operand.vmem [shape: f32[2,1,8], index: 1, kind: input, shape index: {}]   ;;  %s3652_s2 = inlined_call_operand.vmem [shape: f32[8,64], index: 2, kind: input, shape index: {}]   ;;  %s3653_s3 = inlined_call_operand.vmem [shape: f32[8,64], index: 3, kind: input, shape index: {}]   ;;  %s3654_s4 = inlined_call_operand.vmem [shape: f32[64,64], index: 4, kind: input, shape index: {}]   ;;  %s3655_s5 = inlined_call_operand.vmem [shape: f32[1,32], index: 5, kind: input, shape index: {}]   ;;  %s3656_s6 = inlined_call_operand.vmem [shape: f32[1,32], index: 6, kind: input, shape index: {}]   ;;  %s3657_s7 = inlined_call_operand.vmem [shape: f32[32,96], index: 7, kind: input, shape index: {}]   ;;  %s3658_s8 = inlined_call_operand.vmem [shape: f32[1,96], index: 8, kind: input, shape index: {}]   ;;  %s3659_s9 = inlined_call_operand.vmem [shape: f32[32,32], index: 9, kind: input, shape index: {}]   ;;  %s3660_s10 = inlined_call_operand.vmem [shape: f32[1,32], index: 10, kind: input, shape index: {}]   ;;  %s3661_s11 = inlined_call_operand.vmem [shape: f32[32,8], index: 11, kind: input, shape index: {}]   ;;  %s3662_s12 = inlined_call_operand.vmem [shape: f32[1,8], index: 12, kind: input, shape index: {}]   ;;  %s3663_s13 = inlined_call_operand.vmem [shape: f32[8,32], index: 13, kind: input, shape index: {}]   ;;  %s3664_s14 = inlined_call_operand.vmem [shape: f32[1,32], index: 14, kind: input, shape index: {}]   ;;  %s3665_s15 = inlined_call_operand.vmem [shape: f32[1,32], index: 15, kind: input, shape index: {}]   ;;  %s3666_s16 = inlined_call_operand.vmem [shape: f32[1,32], index: 16, kind: input, shape index: {}]   ;;  %s3667_s17 = inlined_call_operand.vmem [shape: f32[32,128], index: 17, kind: input, shape index: {}]   ;;  %s3668_s18 = inlined_call_operand.vmem [shape: f32[1,128], index: 18, kind: input, shape index: {}]   ;;  %s3669_s19 = inlined_call_operand.vmem [shape: f32[128,32], index: 19, kind: input, shape index: {}]   ;;  %s3670_s20 = inlined_call_operand.vmem [shape: f32[1,32], index: 20, kind: input, shape index: {}]   ;;  %s3671_s21 = inlined_call_operand.vmem [shape: f32[1,32], index: 21, kind: input, shape index: {}]   ;;  %s3672_s22 = inlined_call_operand.vmem [shape: f32[1,32], index: 22, kind: input, shape index: {}]   ;;  %s3673_s23 = inlined_call_operand.hbm [shape: f32[16,32], index: 23, kind: output, shape index: {}]  }
   0x1   :  { %3685 = sst [smem:[#allocation11_spill]] %s3650_s0 }
   0x2   :  { %3686 = sst [smem:[#allocation12_spill]] %s3651_s1 }
   0x3   :  { %3687 = sst [smem:[#allocation13_spill]] %s3652_s2 }
   0x4   :  { %3688 = sst [smem:[#allocation14_spill]] %s3653_s3 }
   0x5   :  { %3689 = sst [smem:[#allocation15_spill]] %s3654_s4 }
   0x6   :  { %3690 = sst [smem:[#allocation16_spill]] %s3655_s5 }
   0x7   :  { %3691 = sst [smem:[#allocation17_spill]] %s3656_s6 }
   0x8   :  { %3692 = sst [smem:[#allocation18_spill]] %s3657_s7 }
   0x9   :  { %3693 = sst [smem:[#allocation19_spill]] %s3658_s8 }
   0xa   :  { %3694 = sst [smem:[#allocation20_spill]] %s3672_s22 }
   0xb   :  { %3695 = sst [smem:[#allocation21_spill]] %s3673_s23 }
   0xc   :  { %28 = vsyncpa [#allocation3], 0 }
   0xd   :  { %30 = vsyncpa [#allocation3 + $0x1], 0  ;;  %s3213_s4 = smov 0   ;;  %s3215_s30 = smov 0  }
   0xe   :  { %s3217_s24 = smov 0   ;;  %s3219_s25 = smov 0  }
   0xf LB: > { %3696 = sst [smem:[#allocation5_spill]] %s3064_s4  ;;  %s3234_s5 = sadd.s32 4294967295, %s3076_s25   ;;  %s3076_s25 = sphi %s3219_s25, %s3719_s25   ;;  %s3072_s24 = sphi %s3217_s24, %s3721_s24   ;;  %s3068_s30 = sphi %s3215_s30, %s3723_s30   ;;  %s3064_s4 = sphi %s3213_s4, %s3722_s4  }
  0x10   : > { %3697 = sst [smem:[#allocation6_spill]] %s3072_s24  ;;  %s2581_s1 = sadd.s32 4294967294, %s3076_s25  }
  0x11   : > { %3698 = sst [smem:[#allocation7_spill]] %s3076_s25  ;;  %s3238_s26 = sadd.s32 1, %s3076_s25  }
  0x12   : > { %3699 = sst [smem:[#allocation8_spill]] %s3238_s26  ;;  %s536_s2 = sadd.s32 1, %s3072_s24 }
  0x13   : > { %s533_s6 = ssub.s32 %s3076_s25, %s3238_s26  ;;  %p546_p0 = scmp.ne.s32.totalorder %s3072_s24, %s3068_s30 }
  0x14   : > { %p534_p1 = scmp.eq.s32.totalorder %s533_s6, 0  ;;  %p547_p2 = scmp.eq.s32.totalorder %s3234_s5, 1 }
  0x15   : > { %p552_p3 = scmp.ne.s32.totalorder %s3068_s30, %s3064_s4  ;;  %p553_p4 = scmp.eq.s32.totalorder %s2581_s1, 1 }
  0x16   : > { %s3249_s27 = scalar_select %p534_p1, %s3072_s24, %s536_s2  }
  0x17   : > { %p3251_p5 = por %p547_p2, %p546_p0  ;;  %p3255_p6 = por %p553_p4, %p552_p3 }
  0x18   : > { %3700 = sst [smem:[#allocation9_spill]] %s3249_s27  ;;  %p2584_p7 = scmp.ge.s32.totalorder %s3076_s25, 1 }
  0x19   : > { %s3702_s28 = scalar_select %p3255_p6, 1, 0 }
  0x1a   : > { %p647_p8 = scmp.lt.s32.totalorder %s3076_s25, 3 }
  0x1b   : > { %3703 = sst [smem:[#allocation10_spill]] %s3702_s28 }
  0x1c   : > { %p648_p9 = pnand %p2584_p7, %p647_p8 }
  0x1d   : > { %p713_p10 = scmp.lt.s32.totalorder (!%p648_p9), %s3234_s5, 1  ;;  %vm721_vm0 = vcmask (!%p648_p9), 261120   ;;  %s3704_s2 = sld [smem:[#allocation11_spill]] (!%p648_p9)  ;;  %v3078_v10 = vmov (!%p648_p9), 0.0|0.0   ;;  %vm3079_vm1 = vmmov (!%p648_p9), 0   ;;  %v3080_v13 = vmov (!%p648_p9), 0.0  }
  0x1e   : > { %651 = sbr.rel (%p648_p9) target bundleno = 5076 (0x13d4), region = 112  ;;  %s3705_s26 = sld [smem:[#allocation18_spill]] (!%p648_p9)  ;;  %2869 = vmatprep.subr.bf16.mxu1 (!%p648_p9), %v3078_v10  ;;  %2709 = vmatprep.mubr.msk.f32.mxu1 (!%p648_p9), %vm3079_vm1, %v3080_v13  ;;  %vm853_vm4 = vcmask (!%p648_p9), 523264   ;;  %vm944_vm5 = vcmask (!%p648_p9), 64512  }
  0x1f   : > { %2731 = vmatprep.subr.mxu0 (!%p648_p9), %v3080_v13  ;;  %2733 = vmatprep.mubr.msk.f32.mxu0 (!%p648_p9), %vm3079_vm1, %v3080_v13  ;;  %s3706_s28 = sld [smem:[#allocation16_spill]] (!%p648_p9)  ;;  %s3707_s1 = sld [smem:[#allocation15_spill]] (!%p648_p9) }
  0x20   : > { %s3708_s25 = sld [smem:[#allocation17_spill]] (!%p648_p9)  ;;  %s3709_s8 = sld [smem:[#allocation19_spill]] (!%p648_p9) }
  0x21   : > { %s3081_s24 = smov (!%p648_p9), 64   ;;  %s3711_s23 = sld [smem:[#allocation14_spill]] (!%p648_p9) }
  0x22   : > { %s3083_s0 = smov (!%p648_p9), 96   ;;  %s3085_s4 = smov (!%p648_p9), 56  }
  0x23   : > { %s3089_s22 = smov (!%p648_p9), 72  }
  0x24   : > { %v759_v7 = vld [vmem:[%s3705_s26] sm:$0xff] (!%p648_p9)  ;;  %v760_v8 = vld [vmem:[%s3705_s26 + $0x8] sm:$0xff] (!%p648_p9)  ;;  %v761_v9 = vld [vmem:[%s3705_s26 + $0x10] sm:$0xff] (!%p648_p9) }
  0x25   : > { %s3263_s29 = scalar_select %p713_p10, %s3234_s5, 1  ;;  %v2870_v11 = vpack.c.bf16 %v760_v8, %v759_v7  ;;  %v762_v12 = vld [vmem:[%s3705_s26 + $0x18] sm:$0xff]  ;;  %v2587_v24 = vld [vmem:[%s3706_s28] ss:$0 sm:$0xff]  ;;  %v846_v27 = vld [vmem:[%s3707_s1 + $0x8] sm:$0xff] }
  0x26   : > { %v2873_v14 = vpack.c.bf16 %v762_v12, %v761_v9  ;;  %v845_v26 = vld [vmem:[%s3707_s1] sm:$0xff]  ;;  %v847_v32 = vld [vmem:[%s3707_s1 + $0x10] sm:$0xff]  ;;  %v848_v33 = vld [vmem:[%s3707_s1 + $0x18] sm:$0xff]  ;;  %s3082_s28 = smov 88   ;;  %s3088_s26 = smov 48  }
  0x27   : > { %s2586_s3 = sshll.u32 %s3263_s29, 3  ;;  %2871 = vmatpush3.bf16.msra.mxu1 %v2870_v11  ;;  %v2588_v28 = vld [vmem:[%s3708_s25] ss:$0 sm:$0xff]  ;;  %v2876_v30 = vpack.c.bf16 %v846_v27, %v845_v26  ;;  %v2879_v34 = vpack.c.bf16 %v848_v33, %v847_v32  ;;  %v850_v36 = vld [vmem:[%s3707_s1 + $0x28] sm:$0xff]  ;;  %v851_v38 = vld [vmem:[%s3707_s1 + $0x30] sm:$0xff]  ;;  %s3710_s25 = sld [smem:[#allocation13_spill]] }
  0x28   : > { %s716_s6 = scalar_lea.vmem %s3704_s2, %s2586_s3  ;;  %2872 = vmatprep.subr.bf16.mxu1 %v3078_v10  ;;  %v849_v35 = vld [vmem:[%s3707_s1 + $0x20] sm:$0xff]  ;;  %v852_v39 = vld [vmem:[%s3707_s1 + $0x38] sm:$0xff]  ;;  %s3084_s3 = smov 120  }
  0x29   : > { %v3269_v0 = vld [vmem:[%s716_s6] sm:$0xff]  ;;  %v2882_v37 = vpack.c.bf16 %v850_v36, %v849_v35  ;;  %v2885_v40 = vpack.c.bf16 %v852_v39, %v851_v38 }
  0x2a   : > { %v722_v1 = vsel %vm721_vm0, %v3269_v0, 0.0  ;;  %v2589_v41 = vld [vmem:[%s3709_s8] ss:$0 sm:$0xff] }
  0x2b   : > { %723 = vadd.xlane.f32.xlu0 %v722_v1  ;;  %2874 = vmatpush3.bf16.msra.mxu1 %v2873_v14  ;;  %v927_v46 = vld [vmem:[%s3711_s23] sm:$0xff]  ;;  %s3090_s23 = smov 104  }
  0x2c   : > { %2875 = vmatprep.subr.bf16.mxu1 %v3078_v10 }
  0x2d   : > { %v843_v45 = vld [vmem:[%s3710_s25] sm:$0xff]  ;;  %s3087_s25 = smov 112  }
  0xb8   : > { %v724_v2 = vpop.xlane.xlu0 %723 }
  0xb9   : > { %v726_v3 = vmul.f32 0.03125, %v724_v2 }
  0xbb   : > { %v727_v4 = vsub.f32 %v3269_v0, %v726_v3 }
  0xbd   : > { %v728_v5 = vmul.f32 %v727_v4, %v727_v4 }
  0xbf   : > { %v729_v6 = vsel %vm721_vm0, %v728_v5, 0.0 }
  0xc0   : > { %730 = vadd.xlane.f32.xlu0 %v729_v6 }
 0x14d   : > { %v731_v15 = vpop.xlane.xlu0 %730 }
 0x14e   : > { %v732_v16 = vmul.f32 0.03125, %v731_v15 }
 0x150   : > { %v733_v17 = vadd.f32 1e-05, %v732_v16 }
 0x152   : > { %2982 = vrsqrt.f32 %v733_v17  ;;  %vm736_vm2 = vcmp.eq.f32.partialorder %v733_v17, inf  ;;  %v739_v20 = vand.u32 2147483648, %v733_v17  ;;  %vm738_vm3 = vcmp.eq.f32.partialorder %v733_v17, 0.0 }
 0x15c   : > { %v2983_v18 = vpop.eup %2982 }
 0x15d   : > { %v735_v19 = vmul.f32 %v2983_v18, %v733_v17  ;;  %v932_v18 = vld [vmem:[%s3659_s9 + $0x8] sm:$0xff] }
 0x15f   : > { %v737_v21 = vsel %vm736_vm2, %v733_v17, %v735_v19  ;;  %v931_v17 = vld [vmem:[%s3659_s9] sm:$0xff] }
 0x160   : > { %v740_v22 = vsel %vm738_vm3, %v739_v20, %v737_v21 }
 0x161   : > { %2984 = vrcp.f32 %v740_v22 }
 0x16b   : > { %v2985_v23 = vpop.eup %2984 }
 0x16c   : > { %v742_v25 = vmul.f32 %v2985_v23, %v727_v4 }
 0x16e   : > { %v750_v29 = vmul.f32 %v2587_v24, %v742_v25 }
 0x170   : > { %v758_v31 = vadd.f32 %v2588_v28, %v750_v29 }
 0x172   : > { %2710 = vmatmul.mubr.msk.f32.vlgmr.msra.gmra.mrb[0].mxu1 %vm721_vm0, %v758_v31 }
 0x173   : > { %2877 = vmatpush3.bf16.msra.mxu1 %v2876_v30  ;;  %2728 = vmatprep.mubr.msk.f32.mxu1 %vm3079_vm1, %v3080_v13 }
 0x174   : > { %2878 = vmatprep.subr.bf16.mxu1 %v3078_v10 }
 0x177   : > { %2880 = vmatpush3.bf16.msra.mxu1 %v2879_v34 }
 0x178   : > { %2881 = vmatprep.subr.bf16.mxu1 %v3078_v10 }
 0x17b   : > { %2883 = vmatpush3.bf16.msra.mxu1 %v2882_v37 }
 0x17c   : > { %2884 = vmatprep.subr.bf16.mxu1 %v3078_v10 }
 0x17f   : > { %2886 = vmatpush3.bf16.msra.mxu1 %v2885_v40 }
 0x180   : > { %2746 = vmatprep.subr.mxu1 %v3080_v13 }
 0x245   : > { %v839_v42 = vpop.f32.mrb[0].mxu1 }
 0x246   : > { %v3335_v43 = vadd.f32 %v2589_v41, %v839_v42  ;;  %v2711_v44 = vpop.f32.mrb[1].mxu1 }
 0x248   : > { %1025 = vrot.lane.b32.xlu0 %v3335_v43, %s3081_s24  ;;  %2729 = vmatmul.mubr.msk.f32.vlgmr.msra.gmra.mrb[2].mxu1 %vm853_vm4, %v3335_v43  ;;  %v844_v48 = vmul.f32 %v843_v45, %v3335_v43  ;;  %s3712_s24 = sld [smem:[#allocation12_spill]] }
 0x249   : > { %2748 = vmatprep.mubr.msk.f32.mxu1 %vm3079_vm1, %v3080_v13 }
 0x24e   : > { %s719_s27 = scalar_lea.vmem %s3712_s24, %s3263_s29  ;;  %s3086_s29 = smov 80  }
 0x24f   : > { %v3364_v54 = vld [vmem:[%s719_s27] ss:$0 sm:$0xff]  ;;  %s3091_s27 = smov 40  }
 0x2ba   : > { %v1026_v53 = vpop.permute.xlu0 %1025 }
 0x31b   : > { %v923_v47 = vpop.f32.mrb[2].mxu1 }
 0x31c   : > { %v928_v49 = vmul.f32 %v927_v46, %v923_v47  ;;  %v2730_v50 = vpop.f32.mrb[3].mxu1  ;;  %v933_v47 = vld [vmem:[%s3659_s9 + $0x10] sm:$0xff] }
 0x31e   : > { %v3348_v51 = vadd.f32 %v928_v49, %v844_v48 }
 0x320   : > { %1108 = vrot.lane.b32.xlu0 %v3348_v51, %s3082_s28  ;;  %942 = vrot.lane.b32.xlu1 %v3348_v51, %s3083_s0  ;;  %s3713_s0 = sld [smem:[#allocation20_spill]] }
 0x324   : > { %1106 = vrot.lane.b32.xlu0 %v3348_v51, %s3084_s3  ;;  %s2624_s3 = sshll.u32 %s3234_s5, 7  ;;  %s3092_s5 = smov [#allocation2]  }
 0x392   : > { %v943_v52 = vpop.permute.xlu1 %942  ;;  %v1109_v63 = vpop.permute.xlu0 %1108 }
 0x393   : > { %2732 = vmatpush3.xpose.msk.msra.mxu0 %vm944_vm5, %v943_v52 }
 0x394   : > { %2736 = vmatprep.subr.mxu0 %v3080_v13 }
 0x396   : > { %2734 = vmatmul.mubr.msk.f32.vlgmr.msra.gmra.mrb[0].mxu0 %vm944_vm5, %v3348_v51  ;;  %v1107_v2 = vpop.permute.xlu0 %1106 }
 0x397   : > { %2737 = vmatpush3.msra.mxu0 %v1026_v53  ;;  %2738 = vmatprep.mubr.msk.f32.mxu0 %vm3079_vm1, %v3080_v13 }
 0x398   : > { %2741 = vmatprep.subr.mxu0 %v3080_v13 }
 0x469   : > { %v1015_v55 = vpop.f32.mrb[0].mxu0 }
 0x46a   : > { %v1016_v56 = vadd.f32 %v3364_v54, %v1015_v55  ;;  %v2735_v57 = vpop.f32.mrb[1].mxu0 }
 0x46c   : > { %v1019_v58 = vsel %vm944_vm5, %v1016_v56, -inf }
 0x46d   : > { %1020 = vmax.xlane.f32.xlu1 %v1019_v58 }
 0x47e   : > { %1190 = vrot.lane.b32.xlu1 %v3335_v43, %s3085_s4  ;;  %s3714_s4 = sld [smem:[#allocation21_spill]] }
 0x484   : > { %s3715_s1 = smov %s3714_s4  ;;  %s3607_s8 = scalar_lea.hbm %s3714_s4, %s2624_s3 }
 0x4fa   : > { %v1021_v59 = vpop.xlane.xlu1 %1020 }
 0x4fb   : > { %v1022_v60 = vsub.f32 %v1016_v56, %v1021_v59 }
 0x4fd   : > { %v1023_v61 = vmul.f32 1.442695, %v1022_v60 }
 0x4fe   : > { %v1191_v62 = vpop.permute.xlu1 %1190 }
 0x4ff   : > { %2986 = vpow2.f32 %v1023_v61  ;;  %2747 = vmatpush3.msra.mxu1 %v1191_v62 }
 0x500   : > { %2756 = vmatprep.subr.mxu1 %v3080_v13 }
 0x509   : > { %v2987_v1 = vpop.eup %2986 }
 0x50a   : > { %2739 = vmatmul.mubr.msk.f32.vlgmr.msra.gmra.mrb[2].mxu0 %vm944_vm5, %v2987_v1  ;;  %v1101_v16 = vsel %vm944_vm5, %v2987_v1, 0.0 }
 0x50b   : > { %2742 = vmatpush3.xpose.msk.msra.mxu0 %vm944_vm5, %v1109_v63  ;;  %2743 = vmatprep.mubr.msk.f32.mxu0 %vm3079_vm1, %v3080_v13 }
 0x50c   : > { %2751 = vmatprep.subr.mxu0 %v3080_v13 }
 0x50e   : > { %2744 = vmatmul.mubr.msk.f32.vlgmr.msra.gmra.mrb[4].mxu0 %vm944_vm5, %v1107_v2 }
 0x50f   : > { %2753 = vmatprep.mubr.msk.f32.mxu0 %vm3079_vm1, %v3080_v13  ;;  %2752 = vmatpush3.msra.mxu0 %v932_v18 }
 0x510   : > { %2761 = vmatprep.subr.mxu0 %v3080_v13 }
 0x5dd   : > { %v1097_v3 = vpop.f32.mrb[2].mxu0 }
 0x5de   : > { %v2740_v4 = vpop.f32.mrb[3].mxu0 }
 0x5df   : > { %v1905_v4 = vld [vmem:[%s3661_s11 + $0x8] sm:$0xff] }
 0x5e1   : > { %v1180_v5 = vpop.f32.mrb[4].mxu0 }
 0x5e2   : > { %v1181_v6 = vadd.f32 %v3364_v54, %v1180_v5  ;;  %v2745_v7 = vpop.f32.mrb[5].mxu0 }
 0x5e4   : > { %v1184_v8 = vsel %vm944_vm5, %v1181_v6, -inf }
 0x5e5   : > { %1185 = vmax.xlane.f32.xlu0 %v1184_v8 }
 0x5fb   : > { %1419 = vrot.lane.b32.xlu0 %v3348_v51, %s3086_s29  ;;  %s710_s29 = sand.u32 1, %s3068_s30  }
 0x5ff   : > { %1417 = vrot.lane.b32.xlu0 %v3348_v51, %s3087_s25  ;;  %s2585_s25 = sshll.u32 %s710_s29, 3 }
 0x600   : > { %s712_s2 = scalar_lea.vmem [#allocation2], %s2585_s25  ;;  %s3018_s25 = sshll.u32 %s3092_s5, 4  ;;  %s3019_s25 = int_to_ptr.vmem [resolvable:$false] %s3018_s25 }
 0x601   : > { %s2513_s6 = sshll.u32 %s712_s2, 4  ;;  %s3609_s6 = int_to_ptr.vmem [resolvable:$true] %s2513_s6 }
 0x602   : > { %p3021_p0 = scmp.lt.s32.totalorder %s3609_s6, %s3019_s25 }
 0x672   : > { %v1186_v9 = vpop.xlane.xlu0 %1185 }
 0x673   : > { %v1187_v11 = vsub.f32 %v1181_v6, %v1186_v9 }
 0x675   : > { %v1188_v12 = vmul.f32 1.442695, %v1187_v11 }
 0x676   : > { %v1420_v25 = vpop.permute.xlu0 %1419 }
 0x677   : > { %2988 = vpow2.f32 %v1188_v12  ;;  %v1906_v12 = vld [vmem:[%s3661_s11 + $0x10] sm:$0xff] }
 0x67a   : > { %v1418_v29 = vpop.permute.xlu0 %1417 }
 0x681   : > { %v2989_v14 = vpop.eup %2988 }
 0x682   : > { %2749 = vmatmul.mubr.msk.f32.vlgmr.msra.gmra.mrb[4].mxu1 %vm944_vm5, %v2989_v14  ;;  %v1266_v15 = vsel %vm944_vm5, %v2989_v14, 0.0  ;;  %v1907_v14 = vld [vmem:[%s3661_s11 + $0x18] sm:$0xff] }
 0x683   : > { %1267 = vadd.xlane.f32.xlu1 %v1266_v15  ;;  %2758 = vmatprep.mubr.msk.f32.mxu1 %vm3079_vm1, %v3080_v13  ;;  %v3459_v15 = vpack.c.bf16 %v1907_v14, %v1906_v12  ;;  %v2229_v12 = vld [vmem:[%s3669_s19 + $0x50] sm:$0xff]  ;;  %v2230_v14 = vld [vmem:[%s3669_s19 + $0x58] sm:$0xff] }
 0x684   : > { %2757 = vmatpush3.msra.mxu1 %v931_v17  ;;  %v2609_v17 = vld [vmem:[%s3660_s10] ss:$0 sm:$0xff] }
 0x685   : > { %2766 = vmatprep.subr.mxu1 %v3080_v13 }
 0x687   : > { %1102 = vadd.xlane.f32.xlu1 %v1101_v16 }
 0x698   : > { %1501 = vrot.lane.b32.xlu1 %v3335_v43, %s3088_s26  ;;  %s2500_s26 = scalar_lea.sflag [#allocation3], %s710_s29 }
 0x69c   : > { %1658 = vrot.lane.b32.xlu1 %v3348_v51, %s3089_s22  ;;  %s3014_s22 = scalar_lea.vmem %s3609_s6, 128 }
 0x69d   : > { %p3015_p11 = scmp.ne.s32.totalorder %s3609_s6, %s3014_s22 }
 0x69f   : > { %p3016_p12 = pnand %p3015_p11, %p3251_p5 }
 0x6a0   : > { %1656 = vrot.lane.b32.xlu1 %v3348_v51, %s3090_s23  ;;  %s3020_s23 = scalar_lea.vmem %s3019_s25, 256 }
 0x6a1   : > { %p3017_p13 = pneg %p3016_p12  ;;  %p3022_p1 = scmp.lt.s32.totalorder %s3020_s23, %s3014_s22 }
 0x6a3   : > { %p3023_p2 = por %p3022_p1, %p3021_p0 }
 0x6a5   : > { %p3024_p3 = pnand %p3023_p2, %p3017_p13 }
 0x710   : > { %v1268_v19 = vpop.xlane.xlu1 %1267 }
 0x714   : > { %v1103_v20 = vpop.xlane.xlu1 %1102 }
 0x715   : > { %2990 = vrcp.f32 %v1103_v20 }
 0x716   : > { %2992 = vrcp.f32 %v1268_v19 }
 0x718   : > { %v1502_v23 = vpop.permute.xlu1 %1501 }
 0x71c   : > { %v1659_v42 = vpop.permute.xlu1 %1658 }
 0x71f   : > { %v2991_v21 = vpop.eup %2990 }
 0x720   : > { %v1105_v22 = vmul.f32 %v2991_v21, %v1097_v3  ;;  %v2993_v24 = vpop.eup %2992  ;;  %v1657_v46 = vpop.permute.xlu1 %1656  ;;  %v1904_v3 = vld [vmem:[%s3661_s11] sm:$0xff] }
 0x721   : > { %v3446_v5 = vpack.c.bf16 %v1905_v4, %v1904_v3  ;;  %v3472_v21 = vld [vmem:[%s3663_s13] sm:$0xff]  ;;  %v2224_v3 = vld [vmem:[%s3669_s19 + $0x28] sm:$0xff] }
 0x722   : > { %2759 = vmatmul.mubr.msk.f32.vlgmr.msra.gmra.mrb[6].mxu1 %vm944_vm5, %v1105_v22  ;;  %v3479_v22 = vld [vmem:[%s3662_s12] ss:$0 sm:$0xff] }
 0x723   : > { %2767 = vmatpush3.msra.mxu1 %v1502_v23  ;;  %2768 = vmatprep.mubr.msk.f32.mxu1 %vm3079_vm1, %v3080_v13 }
 0x724   : > { %2776 = vmatprep.subr.mxu1 %v3080_v13 }
 0x755   : > { %v1262_v26 = vpop.f32.mrb[4].mxu1 }
 0x756   : > { %v1270_v27 = vmul.f32 %v2993_v24, %v1262_v26  ;;  %v2750_v28 = vpop.f32.mrb[5].mxu1 }
 0x758   : > { %2754 = vmatmul.mubr.msk.f32.vlgmr.msra.gmra.mrb[6].mxu0 %vm944_vm5, %v1270_v27  ;;  %v3488_v27 = vld [vmem:[%s3664_s14] ss:$0 sm:$0xff] }
 0x759   : > { %2762 = vmatpush3.xpose.msk.msra.mxu0 %vm944_vm5, %v1420_v25  ;;  %2763 = vmatprep.mubr.msk.f32.mxu0 %vm3079_vm1, %v3080_v13 }
 0x75a   : > { %2771 = vmatprep.subr.mxu0 %v3080_v13 }
 0x75c   : > { %2764 = vmatmul.mubr.msk.f32.vlgmr.msra.gmra.mrb[8].mxu0 %vm944_vm5, %v1418_v29 }
 0x75d   : > { %2773 = vmatprep.mubr.msk.f32.mxu0 %vm3079_vm1, %v3080_v13  ;;  %2772 = vmatpush3.msra.mxu0 %v933_v47 }
 0x75e   : > { %2781 = vmatprep.subr.mxu0 %v3080_v13 }
 0x7f5   : > { %v1413_v30 = vpop.f32.mrb[6].mxu1 }
 0x7f6   : > { %v2760_v31 = vpop.f32.mrb[7].mxu1 }
 0x82b   : > { %v1340_v32 = vpop.f32.mrb[6].mxu0 }
 0x82c   : > { %v1414_v33 = vadd.f32 %v1413_v30, %v1340_v32  ;;  %v2755_v34 = vpop.f32.mrb[7].mxu0 }
 0x82f   : > { %v1491_v35 = vpop.f32.mrb[8].mxu0 }
 0x830   : > { %v1492_v36 = vadd.f32 %v3364_v54, %v1491_v35  ;;  %v2765_v37 = vpop.f32.mrb[9].mxu0 }
 0x832   : > { %v1495_v38 = vsel %vm944_vm5, %v1492_v36, -inf }
 0x833   : > { %1496 = vmax.xlane.f32.xlu0 %v1495_v38 }
 0x8c0   : > { %v1497_v39 = vpop.xlane.xlu0 %1496 }
 0x8c1   : > { %v1498_v40 = vsub.f32 %v1492_v36, %v1497_v39 }
 0x8c3   : > { %v1499_v41 = vmul.f32 1.442695, %v1498_v40  ;;  %v2108_v40 = vld [vmem:[%s3667_s17] sm:$0xff] }
 0x8c5   : > { %2994 = vpow2.f32 %v1499_v41  ;;  %v2110_v41 = vld [vmem:[%s3667_s17 + $0x10] sm:$0xff] }
 0x8cf   : > { %v2995_v44 = vpop.eup %2994 }
 0x8d0   : > { %2769 = vmatmul.mubr.msk.f32.vlgmr.msra.gmra.mrb[8].mxu1 %vm944_vm5, %v2995_v44  ;;  %v1577_v45 = vsel %vm944_vm5, %v2995_v44, 0.0  ;;  %v2111_v44 = vld [vmem:[%s3667_s17 + $0x18] sm:$0xff] }
 0x8d1   : > { %2777 = vmatpush3.xpose.msk.msra.mxu1 %vm944_vm5, %v1659_v42  ;;  %1578 = vadd.xlane.f32.xlu1 %v1577_v45  ;;  %v2897_v45 = vpack.c.bf16 %v2111_v44, %v2110_v41 }
 0x8d2   : > { %2778 = vmatprep.mubr.msk.f32.mxu1 %vm3079_vm1, %v3080_v13  ;;  %2786 = vmatprep.subr.mxu1 %v3080_v13 }
 0x8d4   : > { %2779 = vmatmul.mubr.msk.f32.vlgmr.msra.gmra.mrb[10].mxu1 %vm944_vm5, %v1657_v46 }
 0x8d5   : > { %2788 = vmatprep.mubr.msk.f32.mxu1 %vm3079_vm1, %v3080_v13 }
 0x95e   : > { %v1579_v48 = vpop.xlane.xlu1 %1578 }
 0x95f   : > { %2996 = vrcp.f32 %v1579_v48 }
 0x969   : > { %v2997_v49 = vpop.eup %2996 }
 0x9a3   : > { %v1573_v50 = vpop.f32.mrb[8].mxu1 }
 0x9a4   : > { %v1581_v51 = vmul.f32 %v2997_v49, %v1573_v50  ;;  %v2770_v52 = vpop.f32.mrb[9].mxu1 }
 0x9a6   : > { %2774 = vmatmul.mubr.msk.f32.vlgmr.msra.gmra.mrb[10].mxu0 %vm944_vm5, %v1581_v51 }
 0x9a7   : > { %v1730_v53 = vpop.f32.mrb[10].mxu1  ;;  %2783 = vmatprep.mubr.msk.f32.mxu0 %vm3079_vm1, %v3080_v13 }
 0x9a8   : > { %v1731_v55 = vadd.f32 %v3364_v54, %v1730_v53  ;;  %v2780_v56 = vpop.f32.mrb[11].mxu1 }
 0x9a9   : > { %v2614_v56 = vld [vmem:[%s3665_s15] ss:$0 sm:$0xff] }
 0x9aa   : > { %v1734_v57 = vsel %vm944_vm5, %v1731_v55, -inf }
 0x9ab   : > { %1735 = vmax.xlane.f32.xlu0 %v1734_v57 }
 0x9c1   : > { %1740 = vrot.lane.b32.xlu0 %v3335_v43, %s3091_s27  ;;  %v934_v43 = vld [vmem:[%s3659_s9 + $0x18] sm:$0xff] }
 0x9c2   : > { %2787 = vmatpush3.msra.mxu1 %v934_v43  ;;  %v2221_v43 = vld [vmem:[%s3669_s19 + $0x10] sm:$0xff] }
 0x9c3   : > { %2802 = vmatprep.subr.mxu1 %v3080_v13 }
 0xa38   : > { %v1736_v58 = vpop.xlane.xlu0 %1735 }
 0xa39   : > { %v1737_v59 = vsub.f32 %v1731_v55, %v1736_v58  ;;  %v2615_v58 = vld [vmem:[%s3666_s16] ss:$0 sm:$0xff] }
 0xa3b   : > { %v1738_v60 = vmul.f32 1.442695, %v1737_v59 }
 0xa3c   : > { %v1741_v61 = vpop.permute.xlu0 %1740 }
 0xa3d   : > { %2998 = vpow2.f32 %v1738_v60  ;;  %2782 = vmatpush3.msra.mxu0 %v1741_v61  ;;  %v2219_v61 = vld [vmem:[%s3669_s19] sm:$0xff] }
 0xa3e   : > { %2887 = vmatprep.subr.bf16.mxu0 %v3078_v10 }
 0xa47   : > { %v2999_v62 = vpop.eup %2998 }
 0xa48   : > { %2784 = vmatmul.mubr.msk.f32.vlgmr.msra.gmra.mrb[12].mxu0 %vm944_vm5, %v2999_v62  ;;  %v1816_v54 = vsel %vm944_vm5, %v2999_v62, 0.0  ;;  %v2220_v62 = vld [vmem:[%s3669_s19 + $0x8] sm:$0xff] }
 0xa49   : > { %1817 = vadd.xlane.f32.xlu0 %v1816_v54  ;;  %2799 = vmatprep.mubr.msk.f32.mxu0 %vm3079_vm1, %v3080_v13  ;;  %v2900_v54 = vpack.c.bf16 %v2220_v62, %v2219_v61 }
 0xa4a   : > { %2889 = vmatpush3.bf16.msra.mxu0 %v3446_v5 }
 0xa4b   : > { %2890 = vmatprep.subr.bf16.mxu0 %v3078_v10 }
 0xa4e   : > { %2892 = vmatpush3.bf16.msra.mxu0 %v3459_v15 }
 0xa4f   : > { %2899 = vmatprep.subr.bf16.mxu0 %v3078_v10 }
 0xa79   : > { %v1651_v63 = vpop.f32.mrb[10].mxu0 }
 0xa7a   : > { %v1655_v1 = vadd.f32 %v1651_v63, %v1414_v33  ;;  %v2775_v2 = vpop.f32.mrb[11].mxu0  ;;  %v2222_v63 = vld [vmem:[%s3669_s19 + $0x18] sm:$0xff] }
 0xa7b   : > { %v2223_v2 = vld [vmem:[%s3669_s19 + $0x20] sm:$0xff] }
 0xa7c   : > { %v2906_v4 = vpack.c.bf16 %v2224_v3, %v2223_v2 }
 0xad6   : > { %v1818_v6 = vpop.xlane.xlu0 %1817 }
 0xad7   : > { %3000 = vrcp.f32 %v1818_v6  ;;  %v2226_v6 = vld [vmem:[%s3669_s19 + $0x38] sm:$0xff] }
 0xae1   : > { %v3001_v7 = vpop.eup %3000 }
 0xb1b   : > { %v1812_v8 = vpop.f32.mrb[12].mxu0 }
 0xb1c   : > { %v1820_v9 = vmul.f32 %v3001_v7, %v1812_v8  ;;  %v2785_v11 = vpop.f32.mrb[13].mxu0  ;;  %v2227_v8 = vld [vmem:[%s3669_s19 + $0x40] sm:$0xff] }
 0xb1e   : > { %2789 = vmatmul.mubr.msk.f32.vlgmr.msra.gmra.mrb[12].mxu1 %vm944_vm5, %v1820_v9  ;;  %v2228_v9 = vld [vmem:[%s3669_s19 + $0x48] sm:$0xff] }
 0xb1f   : > { %2804 = vmatprep.mubr.msk.f32.mxu1 %vm3079_vm1, %v3080_v13  ;;  %2803 = vmatpush3.msra.mxu1 %v3472_v21  ;;  %v2912_v11 = vpack.c.bf16 %v2228_v9, %v2227_v8 }
 0xb20   : > { %2893 = vmatprep.subr.bf16.mxu1 %v3078_v10 }
 0xbf1   : > { %v1890_v16 = vpop.f32.mrb[12].mxu1 }
 0xbf2   : > { %v1894_v18 = vadd.f32 %v1890_v16, %v1655_v1  ;;  %v2790_v19 = vpop.f32.mrb[13].mxu1  ;;  %v2903_v1 = vpack.c.bf16 %v2222_v63, %v2221_v43  ;;  %v2231_v16 = vld [vmem:[%s3669_s19 + $0x60] sm:$0xff] }
 0xbf3   : > { %v2233_v19 = vld [vmem:[%s3669_s19 + $0x70] sm:$0xff] }
 0xbf4   : > { %v1902_v20 = vadd.f32 %v2609_v17, %v1894_v18  ;;  %v2232_v17 = vld [vmem:[%s3669_s19 + $0x68] sm:$0xff] }
 0xbf5   : > { %v2918_v18 = vpack.c.bf16 %v2232_v17, %v2231_v16  ;;  %v2621_v16 = vld [vmem:[%s3671_s21] ss:$0 sm:$0xff] }
 0xbf6   : > { %2800 = vmatmul.mubr.msk.f32.vlgmr.msra.gmra.mrb[14].mxu0 %vm721_vm0, %v1902_v20  ;;  %v1903_v31 = vadd.f32 %v1902_v20, %v3269_v0  ;;  %v2109_v0 = vld [vmem:[%s3667_s17 + $0x8] sm:$0xff] }
 0xbf7   : > { %2850 = vmatprep.mubr.msk.f32.mxu0 %vm3079_vm1, %v3080_v13  ;;  %v2894_v42 = vpack.c.bf16 %v2109_v0, %v2108_v40  ;;  %2901 = vmatpush3.bf16.msra.mxu0 %v2900_v54 }
 0xbf8   : > { %2902 = vmatprep.subr.bf16.mxu0 %v3078_v10 }
 0xbfb   : > { %2904 = vmatpush3.bf16.msra.mxu0 %v2903_v1 }
 0xbfc   : > { %2905 = vmatprep.subr.bf16.mxu0 %v3078_v10 }
 0xbff   : > { %2907 = vmatpush3.bf16.msra.mxu0 %v2906_v4 }
 0xc00   : > { %2908 = vmatprep.subr.bf16.mxu0 %v3078_v10 }
 0xcc9   : > { %v1984_v23 = vpop.f32.mrb[14].mxu0 }
 0xcca   : > { %v1985_v24 = vadd.f32 %v3479_v22, %v1984_v23  ;;  %v2801_v25 = vpop.f32.mrb[15].mxu0 }
 0xccc   : > { %v1988_v26 = vmax.f32 %v1985_v24, 0.0  ;;  %v2616_v24 = vld [vmem:[%s3668_s18] ss:$0 sm:$0xff] }
 0xcce   : > { %2805 = vmatmul.mubr.msk.f32.vlgmr.msra.gmra.mrb[14].mxu1 %vm944_vm5, %v1988_v26 }
 0xccf   : > { %2815 = vmatprep.mubr.msk.f32.mxu1 %vm3079_vm1, %v3080_v13  ;;  %2895 = vmatpush3.bf16.msra.mxu1 %v2894_v42 }
 0xcd0   : > { %2896 = vmatprep.subr.bf16.mxu1 %v3078_v10 }
 0xcd3   : > { %2898 = vmatpush3.bf16.msra.mxu1 %v2897_v45 }
 0xcd4   : > { %2923 = vmatprep.subr.bf16.mxu1 %v3078_v10 }
 0xda1   : > { %v2066_v28 = vpop.f32.mrb[14].mxu1 }
 0xda2   : > { %v2067_v29 = vadd.f32 %v3488_v27, %v2066_v28  ;;  %v2806_v30 = vpop.f32.mrb[15].mxu1 }
 0xda4   : > { %v2070_v32 = vadd.f32 %v2067_v29, %v1902_v20  ;;  %v2234_v20 = vld [vmem:[%s3669_s19 + $0x78] sm:$0xff] }
 0xda5   : > { %v2921_v23 = vpack.c.bf16 %v2234_v20, %v2233_v19 }
 0xda6   : > { %v3492_v33 = vadd.f32 %v2070_v32, %v1903_v31 }
 0xda8   : > { %v2072_v34 = vsel %vm721_vm0, %v3492_v33, 0.0 }
 0xda9   : > { %2073 = vadd.xlane.f32.xlu1 %v2072_v34 }
 0xe36   : > { %v2074_v35 = vpop.xlane.xlu1 %2073 }
 0xe37   : > { %v2075_v36 = vmul.f32 0.03125, %v2074_v35 }
 0xe39   : > { %v2076_v37 = vsub.f32 %v3492_v33, %v2075_v36 }
 0xe3b   : > { %v2077_v38 = vmul.f32 %v2076_v37, %v2076_v37 }
 0xe3d   : > { %v2078_v39 = vsel %vm721_vm0, %v2077_v38, 0.0 }
 0xe3e   : > { %2079 = vadd.xlane.f32.xlu1 %v2078_v39 }
 0xecb   : > { %v2080_v46 = vpop.xlane.xlu1 %2079 }
 0xecc   : > { %v2081_v47 = vmul.f32 0.03125, %v2080_v46 }
 0xece   : > { %v2082_v48 = vadd.f32 1e-05, %v2081_v47 }
 0xed0   : > { %3002 = vrsqrt.f32 %v2082_v48  ;;  %vm2085_vm6 = vcmp.eq.f32.partialorder %v2082_v48, inf  ;;  %v2088_v51 = vand.u32 2147483648, %v2082_v48  ;;  %vm2087_vm7 = vcmp.eq.f32.partialorder %v2082_v48, 0.0 }
 0xeda   : > { %v3003_v49 = vpop.eup %3002 }
 0xedb   : > { %v2084_v50 = vmul.f32 %v3003_v49, %v2082_v48 }
 0xedd   : > { %v2086_v52 = vsel %vm2085_vm6, %v2082_v48, %v2084_v50 }
 0xede   : > { %v2089_v53 = vsel %vm2087_vm7, %v2088_v51, %v2086_v52 }
 0xedf   : > { %3004 = vrcp.f32 %v2089_v53 }
 0xee9   : > { %v3005_v55 = vpop.eup %3004 }
 0xeea   : > { %v2091_v57 = vmul.f32 %v3005_v55, %v2076_v37  ;;  %v2618_v55 = vld [vmem:[%s3670_s20] ss:$0 sm:$0xff] }
 0xeec   : > { %v2099_v59 = vmul.f32 %v2614_v56, %v2091_v57 }
 0xeee   : > { %v2107_v60 = vadd.f32 %v2615_v58, %v2099_v59 }
 0xef0   : > { %2816 = vmatmul.mubr.msk.f32.vlgmr.msra.gmra.mrb[16].mxu1 %vm721_vm0, %v2107_v60 }
 0xef1   : > { %2925 = vmatpush3.bf16.msra.mxu1 %v3446_v5  ;;  %2861 = vmatprep.mubr.msk.f32.mxu1 %vm3079_vm1, %v3080_v13  ;;  %v2225_v5 = vld [vmem:[%s3669_s19 + $0x30] sm:$0xff] }
 0xef2   : > { %2926 = vmatprep.subr.bf16.mxu1 %v3078_v10  ;;  %v2909_v7 = vpack.c.bf16 %v2226_v6, %v2225_v5 }
 0xef4   : > { %2910 = vmatpush3.bf16.msra.mxu0 %v2909_v7 }
 0xef5   : > { %2928 = vmatpush3.bf16.msra.mxu1 %v3459_v15  ;;  %2911 = vmatprep.subr.bf16.mxu0 %v3078_v10  ;;  %v2915_v15 = vpack.c.bf16 %v2230_v14, %v2229_v12 }
 0xef6   : > { %2864 = vmatprep.subr.mxu1 %v3080_v13 }
 0xef8   : > { %2913 = vmatpush3.bf16.msra.mxu0 %v2912_v11 }
 0xef9   : > { %2914 = vmatprep.subr.bf16.mxu0 %v3078_v10 }
 0xefc   : > { %2916 = vmatpush3.bf16.msra.mxu0 %v2915_v15 }
 0xefd   : > { %2917 = vmatprep.subr.bf16.mxu0 %v3078_v10 }
 0xf00   : > { %2919 = vmatpush3.bf16.msra.mxu0 %v2918_v18  ;;  %v2622_v18 = vld [vmem:[%s3713_s0] ss:$0 sm:$0xff] }
 0xf01   : > { %2920 = vmatprep.subr.bf16.mxu0 %v3078_v10 }
 0xf04   : > { %2922 = vmatpush3.bf16.msra.mxu0 %v2921_v23 }
 0xfc3   : > { %v2188_v25 = vpop.f32.mrb[16].mxu1 }
 0xfc4   : > { %v2189_v26 = vadd.f32 %v2616_v24, %v2188_v25  ;;  %v2817_v28 = vpop.f32.mrb[17].mxu1 }
 0xfc6   : > { %v2193_v29 = vmul.f32 0.70710677, %v2189_v26  ;;  %v2192_v51 = vmul.f32 0.5, %v2189_v26 }
 0xfc8   : > { %v2194_v30 = vand.u32 2147483647, %v2193_v29  ;;  %vm2214_vm8 = vcmp.lt.f32.partialorder %v2193_v29, 0.0 }
 0xfca   : > { %v2195_v10 = vmul.f32 0.3275911, %v2194_v30  ;;  %v2208_v32 = vsub.f32 0.0, %v2194_v30 }
 0xfcc   : > { %v2196_v31 = vadd.f32 1.0, %v2195_v10  ;;  %v2209_v35 = vmul.f32 %v2208_v32, %v2194_v30 }
 0xfce   : > { %3006 = vrcp.f32 %v2196_v31  ;;  %v2210_v38 = vmul.f32 1.442695, %v2209_v35 }
 0xfd0   : > { %3008 = vpow2.f32 %v2210_v38 }
 0xfd8   : > { %v3007_v34 = vpop.eup %3006 }
 0xfd9   : > { %v2199_v36 = vmul.f32 1.0614054, %v3007_v34 }
 0xfda   : > { %v3009_v46 = vpop.eup %3008 }
 0xfdb   : > { %v2200_v37 = vadd.f32 -1.4531521, %v2199_v36 }
 0xfdd   : > { %v2201_v39 = vmul.f32 %v3007_v34, %v2200_v37 }
 0xfdf   : > { %v2202_v40 = vadd.f32 1.4214138, %v2201_v39 }
 0xfe1   : > { %v2203_v0 = vmul.f32 %v3007_v34, %v2202_v40 }
 0xfe3   : > { %v2204_v41 = vadd.f32 -0.28449672, %v2203_v0 }
 0xfe5   : > { %v2205_v42 = vmul.f32 %v3007_v34, %v2204_v41 }
 0xfe7   : > { %v2206_v44 = vadd.f32 0.2548296, %v2205_v42 }
 0xfe9   : > { %v2207_v45 = vmul.f32 %v3007_v34, %v2206_v44 }
 0xfeb   : > { %v2212_v47 = vmul.f32 %v3009_v46, %v2207_v45 }
 0xfed   : > { %v2213_v48 = vsub.f32 1.0, %v2212_v47 }
 0xfef   : > { %v2215_v49 = vsub.f32 0.0, %v2213_v48 }
 0xff1   : > { %v2216_v50 = vsel %vm2214_vm8, %v2215_v49, %v2213_v48 }
 0xff2   : > { %v2217_v52 = vadd.f32 1.0, %v2216_v50 }
 0xff4   : > { %v2218_v53 = vmul.f32 %v2217_v52, %v2192_v51 }
 0xff6   : > { %2851 = vmatmul.mubr.f32.vlgmr.msra.gmra.mrb[16].mxu0 %v2218_v53 }
0x10c9   : > { %v2308_v56 = vpop.f32.mrb[16].mxu0 }
0x10ca   : > { %v2309_v57 = vadd.f32 %v2618_v55, %v2308_v56  ;;  %v2852_v58 = vpop.f32.mrb[17].mxu0 }
0x10cc   : > { %2862 = vmatmul.mubr.msk.f32.vlgmr.msra.gmra.mrb[18].mxu1 %vm721_vm0, %v2309_v57  ;;  %v2312_v2 = vadd.f32 %v2309_v57, %v3492_v33 }
0x10cd   : > { %2865 = vmatpush3.msra.mxu1 %v3472_v21  ;;  %2866 = vmatprep.mubr.msk.f32.mxu1 %vm3079_vm1, %v3080_v13 }
0x119f   : > { %v2382_v59 = vpop.f32.mrb[18].mxu1 }
0x11a0   : > { %v2383_v60 = vadd.f32 %v3479_v22, %v2382_v59  ;;  %v2863_v61 = vpop.f32.mrb[19].mxu1 }
0x11a2   : > { %v2386_v62 = vmax.f32 %v2383_v60, 0.0 }
0x11a4   : > { %2867 = vmatmul.mubr.msk.f32.vlgmr.msra.gmra.mrb[20].mxu1 %vm944_vm5, %v2386_v62 }
0x1277   : > { %v2456_v54 = vpop.f32.mrb[20].mxu1 }
0x1278   : > { %v2457_v43 = vadd.f32 %v3488_v27, %v2456_v54  ;;  %v2868_v63 = vpop.f32.mrb[21].mxu1 }
0x127a   : > { %v2460_v1 = vadd.f32 %v2457_v43, %v2309_v57 }
0x127c   : > { %v2461_v3 = vadd.f32 %v2460_v1, %v2312_v2 }
0x127e   : > { %v2462_v21 = vsel %vm721_vm0, %v2461_v3, 0.0 }
0x127f   : > { %2463 = vadd.xlane.f32.xlu1 %v2462_v21 }
0x130c   : > { %v2464_v4 = vpop.xlane.xlu1 %2463 }
0x130d   : > { %v2465_v13 = vmul.f32 0.03125, %v2464_v4 }
0x130f   : > { %v2466_v5 = vsub.f32 %v2461_v3, %v2465_v13 }
0x1311   : > { %v2467_v22 = vmul.f32 %v2466_v5, %v2466_v5 }
0x1313   : > { %v2468_v6 = vsel %vm721_vm0, %v2467_v22, 0.0 }
0x1314   : > { %2469 = vadd.xlane.f32.xlu1 %v2468_v6 }
0x13a1   : > { %v2470_v7 = vpop.xlane.xlu1 %2469 }
0x13a2   : > { %v2471_v8 = vmul.f32 0.03125, %v2470_v7 }
0x13a4   : > { %v2472_v9 = vadd.f32 1e-05, %v2471_v8 }
0x13a6   : > { %3010 = vrsqrt.f32 %v2472_v9  ;;  %vm2475_vm9 = vcmp.eq.f32.partialorder %v2472_v9, inf  ;;  %v2478_v33 = vand.u32 2147483648, %v2472_v9  ;;  %vm2477_vm10 = vcmp.eq.f32.partialorder %v2472_v9, 0.0 }
0x13b0   : > { %v3011_v27 = vpop.eup %3010 }
0x13b1   : > { %v2474_v11 = vmul.f32 %v3011_v27, %v2472_v9 }
0x13b3   : > { %v2476_v12 = vsel %vm2475_vm9, %v2472_v9, %v2474_v11 }
0x13b4   : > { %v2479_v14 = vsel %vm2477_vm10, %v2478_v33, %v2476_v12 }
0x13b5   : > { %3012 = vrcp.f32 %v2479_v14 }
0x13bf   : > { %v3013_v15 = vpop.eup %3012 }
0x13c0   : > { %v2481_v17 = vmul.f32 %v3013_v15, %v2466_v5 }
0x13c2   : > { %v2489_v19 = vmul.f32 %v2621_v16, %v2481_v17 }
0x13c4   : > { %v2497_v20 = vadd.f32 %v2622_v18, %v2489_v19 }
0x13c6   : > { %2498 = vst.msk [vmem:[%s712_s2] sm:$0xff] %vm721_vm0, %v2497_v20 }
0x13c7   : > { %3027 = shalt.err (!%p3024_p3)
}
0x13c8   : > { %s3028_s29 = scalar_lea.hbm %s3607_s8, 128  ;;  %s3032_s3 = scalar_lea.hbm %s3715_s1, 256 }
0x13c9   : > { %p3029_p4 = scmp.ne.s32.totalorder %s3607_s8, %s3028_s29  ;;  %p3033_p9 = scmp.lt.u32.totalorder %s3607_s8, %s3715_s1 }
0x13ca   : > { %p3034_p10 = scmp.lt.u32.totalorder %s3032_s3, %s3028_s29  ;;  %p3036_p12 = scmp.lt.u32.totalorder %s3028_s29, %s3607_s8 }
0x13cb   : > { %p3030_p7 = pnand %p3029_p4, %p3251_p5 }
0x13cc   : > { %p3035_p11 = por %p3034_p10, %p3033_p9 }
0x13cd   : > { %p3031_p8 = pneg %p3030_p7 }
0x13ce   : > { %p3037_p13 = por %p3036_p12, %p3035_p11 }
0x13d0   : > { %p3038_p0 = pnand %p3037_p13, %p3031_p8 }
0x13d2   : > { %3041 = shalt.err (!%p3038_p0)
}
0x13d3   : > { %2929 = dma.vmem_to_hbm [thread:$0]  (%p3251_p5), %s3609_s6, 128, %s3607_s8, %s2500_s26  }
0x13d4 PF: > { %s3716_s27 = sld [smem:[#allocation7_spill]]  ;;  %s3717_s4 = sld [smem:[#allocation5_spill]] }
0x13da   : > { %p2935_p1 = scmp.ge.s32.totalorder %s3716_s27, 2  ;;  %s2525_s5 = sand.u32 1, %s3717_s4  }
0x13db   : > { %s2526_s25 = scalar_lea.sflag [#allocation3], %s2525_s5 }
0x13dc   : > { %p2932_p2 = pnand %p2935_p1, %p3255_p6 }
0x13de   : > { %3059 = dma.done.wait (!%p2932_p2), %s2526_s25, 128  }
0x13df   : > { %3061 = vsyncadd (!%p2932_p2), %s2526_s25, 4294967168  ;;  %s3719_s25 = sld [smem:[#allocation8_spill]]  ;;  %s3720_s23 = sld [smem:[#allocation6_spill]] }
0x13e0   : > { %s3721_s24 = sld [smem:[#allocation9_spill]]  ;;  %s3722_s4 = smov %s3068_s30 }
0x13e5   : > { %p33_p3 = scmp.ge.s32.totalorder %s3719_s25, 4   ;;  %s3723_s30 = smov %s3720_s23 }
0x13e7   :  { %35 = sbr.rel (!%p33_p3) target bundleno = 15 (0xf), region = 150 }
0x13ee   :  { %2531 = vsyncpa [#allocation3], 1 }
0x13ef   :  { %2533 = vsyncpa [#allocation3 + $0x1], 1 }

</bundles_post_ra>
